<compile_context>
chip_gen: v7x
topology: tpu7x:2x2x1
jax: 0.10.0
libtpu: 0.0.40
codegen_flags: <defaults>
</compile_context>

<pallas_src>
import jax
import jax.numpy as jnp
from jax.experimental import pallas as pl
from jax.experimental.pallas import tpu as pltpu


def _down_kernel(x_ref, w1_ref, s1_ref, b1_ref, w2_ref, s2_ref, b2_ref,
                 o_ref, pad1_ref, pad2_ref, col1_ref, col2_ref):
    """Fused MaxPool2x2 + (Conv3x3 pad1 + BN + ReLU) x 2 for `bt` images.

    x_ref     : (bt, 2*Hp, 2*Wp, Cin)  input block (pre-pool resolution)
    w1_ref    : (9*Cin, Cmid)   conv1 weights, taps flattened (ky, kx, cin) row-major, bf16
    s1, b1    : (1, Cmid)       folded BN1 scale / bias (incl. conv bias), f32
    w2_ref    : (9*Cmid, Cout)  conv2 weights, bf16
    s2, b2    : (1, Cout)
    o_ref     : (bt*Hp*Wp, Cout)
    pad1_ref  : VMEM (bt, Hp+2, Wp+2, Cin)   zero-halo scratch for conv1
    pad2_ref  : VMEM (bt, Hp+2, Wp+2, Cmid)  zero-halo scratch for conv2
    col1_ref  : VMEM (bt*Hp*Wp, 9*Cin)       im2col slab for conv1
    col2_ref  : VMEM (bt*Hp*Wp, 9*Cmid)      im2col slab for conv2
    """
    bt = x_ref.shape[0]
    Hp = x_ref.shape[1] // 2
    Wp = x_ref.shape[2] // 2
    M = bt * Hp * Wp

    # ---- zero only the 1-element halo border (interior is overwritten) ----
    def zero_border(pad_ref):
        _, hp2, wp2, c = pad_ref.shape
        zrow = jnp.zeros((bt, 1, wp2, c), jnp.float32)
        zcol = jnp.zeros((bt, hp2, 1, c), jnp.float32)
        pad_ref[:, 0:1, :, :] = zrow
        pad_ref[:, hp2 - 1:hp2, :, :] = zrow
        pad_ref[:, :, 0:1, :] = zcol
        pad_ref[:, :, wp2 - 1:wp2, :] = zcol

    zero_border(pad1_ref)
    zero_border(pad2_ref)

    # ---- MaxPool2d(2): max of the four 2x2 phases, read as strided slices ----
    hs0 = pl.ds(0, Hp, stride=2)
    hs1 = pl.ds(1, Hp, stride=2)
    ws0 = pl.ds(0, Wp, stride=2)
    ws1 = pl.ds(1, Wp, stride=2)
    pooled = jnp.maximum(
        jnp.maximum(x_ref[:, hs0, ws0, :], x_ref[:, hs0, ws1, :]),
        jnp.maximum(x_ref[:, hs1, ws0, :], x_ref[:, hs1, ws1, :]))

    # ---- 3x3 conv (padding=1) + folded BN + ReLU, as ONE matmul (K = 9*C) ----
    def conv_bn_relu(pad_ref, col_ref, interior, w_ref, s_ref, b_ref):
        c = pad_ref.shape[-1]
        pad_ref[:, 1:Hp + 1, 1:Wp + 1, :] = interior
        for k in range(9):                       # unrolled at trace time
            ky, kx = divmod(k, 3)
            col_ref[:, k * c:(k + 1) * c] = (
                pad_ref[:, ky:ky + Hp, kx:kx + Wp, :].reshape(M, c))
        acc = jnp.dot(col_ref[...].astype(w_ref.dtype), w_ref[...],
                      preferred_element_type=jnp.float32)
        return jnp.maximum(acc * s_ref[...] + b_ref[...], 0.0)   # f32 elementwise

    cmid = w1_ref.shape[1]
    h1 = conv_bn_relu(pad1_ref, col1_ref, pooled,
                      w1_ref, s1_ref, b1_ref)                    # (M, Cmid)
    h2 = conv_bn_relu(pad2_ref, col2_ref, h1.reshape(bt, Hp, Wp, cmid),
                      w2_ref, s2_ref, b2_ref)                    # (M, Cout)

    o_ref[...] = h2


def _pick_block_batch(B, Hp, Wp):
    """Batch images per grid step so the matmul M dim is ~256 rows."""
    target_rows = 256
    bt = max(1, min(B, max(1, target_rows // max(1, Hp * Wp))))
    while B % bt:
        bt -= 1
    return bt


def down_pallas(x_nhwc, w1, s1, b1, w2, s2, b2, *,
                mxu_dtype=jnp.bfloat16, block_batch=None):
    """x_nhwc: (B, H, W, Cin) f32.  w1: (3,3,Cin,Cmid), w2: (3,3,Cmid,Cout) HWIO.
    s*/b*: per-channel folded BN scale/bias.  Returns (B, H//2, W//2, Cout) f32."""
    B, H, W, Cin = x_nhwc.shape
    if H % 2 or W % 2:
        # TODO(synk): odd H/W would need the floor-cropping MaxPool2d(2) applies.
        raise ValueError("down_pallas requires even H and W")
    Hp, Wp = H // 2, W // 2
    Cmid = w1.shape[-1]
    Cout = w2.shape[-1]

    bt = block_batch if block_batch is not None else _pick_block_batch(B, Hp, Wp)
    while B % bt:
        bt -= 1
    M = bt * Hp * Wp
    grid = (B // bt,)

    # Taps flattened (ky, kx, cin) row-major -> matches the im2col slab order.
    w1f = w1.reshape(9 * Cin, Cmid).astype(mxu_dtype)
    w2f = w2.reshape(9 * Cmid, Cout).astype(mxu_dtype)
    s1 = jnp.asarray(s1, jnp.float32).reshape(1, Cmid)
    b1 = jnp.asarray(b1, jnp.float32).reshape(1, Cmid)
    s2 = jnp.asarray(s2, jnp.float32).reshape(1, Cout)
    b2 = jnp.asarray(b2, jnp.float32).reshape(1, Cout)

    out2d = pl.pallas_call(
        _down_kernel,
        out_shape=jax.ShapeDtypeStruct((B * Hp * Wp, Cout), jnp.float32),
        grid_spec=pltpu.PrefetchScalarGridSpec(
            num_scalar_prefetch=0,
            grid=grid,
            in_specs=[
                pl.BlockSpec((bt, H, W, Cin), lambda b: (b, 0, 0, 0)),
                pl.BlockSpec((9 * Cin, Cmid), lambda b: (0, 0)),
                pl.BlockSpec((1, Cmid), lambda b: (0, 0)),
                pl.BlockSpec((1, Cmid), lambda b: (0, 0)),
                pl.BlockSpec((9 * Cmid, Cout), lambda b: (0, 0)),
                pl.BlockSpec((1, Cout), lambda b: (0, 0)),
                pl.BlockSpec((1, Cout), lambda b: (0, 0)),
            ],
            out_specs=pl.BlockSpec((M, Cout), lambda b: (b, 0)),
            scratch_shapes=[
                pltpu.VMEM((bt, Hp + 2, Wp + 2, Cin), jnp.float32),
                pltpu.VMEM((bt, Hp + 2, Wp + 2, Cmid), jnp.float32),
                pltpu.VMEM((M, 9 * Cin), jnp.float32),
                pltpu.VMEM((M, 9 * Cmid), jnp.float32),
            ]),
        compiler_params=pltpu.CompilerParams(
            dimension_semantics=("parallel",)),
    )(x_nhwc, w1f, s1, b1, w2f, s2, b2)

    # Free row-major metadata reshape back to NHWC.
    return out2d.reshape(B, Hp, Wp, Cout)


def down_reference(x_nhwc, w1, s1, b1, w2, s2, b2, mxu_dtype=jnp.bfloat16):
    """Pure-JAX reference (maxpool + conv + folded BN + relu, twice) that
    mirrors the kernel's mixed precision (bf16 matmul operands, f32 accum)."""
    pooled = jax.lax.reduce_window(x_nhwc, -jnp.inf, jax.lax.max,
                                   (1, 2, 2, 1), (1, 2, 2, 1), 'VALID')

    def conv(h, w):
        return jax.lax.conv_general_dilated(
            h.astype(mxu_dtype), w.astype(mxu_dtype),
            window_strides=(1, 1), padding='SAME',
            dimension_numbers=('NHWC', 'HWIO', 'NHWC'),
            preferred_element_type=jnp.float32)

    h1 = jnp.maximum(conv(pooled, w1) * s1.reshape(1, 1, 1, -1)
                     + b1.reshape(1, 1, 1, -1), 0.0)
    h2 = jnp.maximum(conv(h1, w2) * s2.reshape(1, 1, 1, -1)
                     + b2.reshape(1, 1, 1, -1), 0.0)
    return h2


if __name__ == "__main__":
    # Small shapes consistent with Down(in_channels=4, out_channels=8).
    B, Cin, H, W = 2, 4, 16, 16
    Cout = 8
    Cmid = Cout  # DoubleConv with mid_channels=None -> mid == out
    eps = 1e-5

    key = jax.random.PRNGKey(0)
    ks = jax.random.split(key, 9)

    # PyTorch-style parameter shapes, deterministic synthetic init.
    x_nchw = jax.random.normal(ks[0], (B, Cin, H, W), jnp.float32)
    w1_oihw = 0.1 * jax.random.normal(ks[1], (Cmid, Cin, 3, 3), jnp.float32)
    cb1 = 0.1 * jax.random.normal(ks[2], (Cmid,), jnp.float32)       # conv1 bias
    w2_oihw = 0.1 * jax.random.normal(ks[3], (Cout, Cmid, 3, 3), jnp.float32)
    cb2 = 0.1 * jax.random.normal(ks[4], (Cout,), jnp.float32)       # conv2 bias
    g1 = 1.0 + 0.1 * jax.random.normal(ks[5], (Cmid,), jnp.float32)  # BN1 gamma
    be1 = 0.1 * jax.random.normal(ks[6], (Cmid,), jnp.float32)       # BN1 beta
    g2 = 1.0 + 0.1 * jax.random.normal(ks[7], (Cout,), jnp.float32)  # BN2 gamma
    be2 = 0.1 * jax.random.normal(ks[8], (Cout,), jnp.float32)       # BN2 beta
    rm1, rv1 = jnp.zeros((Cmid,)), jnp.ones((Cmid,))                 # BN1 running stats
    rm2, rv2 = jnp.zeros((Cout,)), jnp.ones((Cout,))                 # BN2 running stats

    # Fold conv bias + eval-mode BN into per-channel scale / bias.
    scale1 = g1 / jnp.sqrt(rv1 + eps)
    bias1 = be1 + (cb1 - rm1) * scale1
    scale2 = g2 / jnp.sqrt(rv2 + eps)
    bias2 = be2 + (cb2 - rm2) * scale2

    # Convert to the kernel's layouts.
    x_nhwc = jnp.transpose(x_nchw, (0, 2, 3, 1))          # NCHW -> NHWC
    w1 = jnp.transpose(w1_oihw, (2, 3, 1, 0))             # OIHW -> HWIO
    w2 = jnp.transpose(w2_oihw, (2, 3, 1, 0))

    out = down_pallas(x_nhwc, w1, scale1, bias1, w2, scale2, bias2)
    out = jax.block_until_ready(out)

    ref = down_reference(x_nhwc, w1, scale1, bias1, w2, scale2, bias2)
    assert out.shape == (B, H // 2, W // 2, Cout), out.shape
    err = float(jnp.max(jnp.abs(out - ref)))
    # bf16 MXU operands (f32 accumulation) on both sides; tolerance covers
    # accumulation-order differences only.
    assert jnp.allclose(out, ref, atol=5e-3, rtol=5e-3), err

    print("KERNEL_OK")
</pallas_src>

<mosaic_0001>
module attributes {stable_mosaic.version = 11 : i64} {
  func.func @_down_kernel(%arg0: i32, %arg1: memref<2x16x16x4xf32, #tpu.memory_space<vmem>>, %arg2: memref<36x8xbf16, #tpu.memory_space<vmem>>, %arg3: memref<1x8xf32, #tpu.memory_space<vmem>>, %arg4: memref<1x8xf32, #tpu.memory_space<vmem>>, %arg5: memref<72x8xbf16, #tpu.memory_space<vmem>>, %arg6: memref<1x8xf32, #tpu.memory_space<vmem>>, %arg7: memref<1x8xf32, #tpu.memory_space<vmem>>, %arg8: memref<128x8xf32, #tpu.memory_space<vmem>>, %arg9: memref<2x10x10x4xf32, #tpu.memory_space<vmem>>, %arg10: memref<2x10x10x8xf32, #tpu.memory_space<vmem>>, %arg11: memref<128x36xf32, #tpu.memory_space<vmem>>, %arg12: memref<128x72xf32, #tpu.memory_space<vmem>>) attributes {dimension_semantics = [#tpu.dimension_semantics<parallel>], iteration_bounds = array<i64: 1>, scalar_prefetch = 0 : i64, scratch_operands = 4 : i64, tpu.core_type = #tpu.core_type<tc>, window_params = [{transform_indices = @transform_0, window_bounds = array<i64: 2, 16, 16, 4>}, {pipeline_mode = #tpu.pipeline_mode<synchronous>, transform_indices = @transform_1, window_bounds = array<i64: 36, 8>}, {pipeline_mode = #tpu.pipeline_mode<synchronous>, transform_indices = @transform_2, window_bounds = array<i64: 1, 8>}, {pipeline_mode = #tpu.pipeline_mode<synchronous>, transform_indices = @transform_3, window_bounds = array<i64: 1, 8>}, {pipeline_mode = #tpu.pipeline_mode<synchronous>, transform_indices = @transform_4, window_bounds = array<i64: 72, 8>}, {pipeline_mode = #tpu.pipeline_mode<synchronous>, transform_indices = @transform_5, window_bounds = array<i64: 1, 8>}, {pipeline_mode = #tpu.pipeline_mode<synchronous>, transform_indices = @transform_6, window_bounds = array<i64: 1, 8>}, {transform_indices = @transform_7, window_bounds = array<i64: 128, 8>}]} {
    %cst = arith.constant 0.000000e+00 : f32
    %0 = vector.broadcast %cst : f32 to vector<2x1x10x4xf32>
    %cst_0 = arith.constant 0.000000e+00 : f32
    %1 = vector.broadcast %cst_0 : f32 to vector<2x10x1x4xf32>
    %c0 = arith.constant 0 : index
    %c0_1 = arith.constant 0 : index
    %c0_2 = arith.constant 0 : index
    %c0_3 = arith.constant 0 : index
    %2 = vector.load %arg9[%c0, %c0_1, %c0_2, %c0_3] : memref<2x10x10x4xf32, #tpu.memory_space<vmem>>, vector<2x1x10x4xf32>
    tpu.vector_store %arg9[%c0, %c0_1, %c0_2, %c0_3], %0 {strides = array<i32>} : memref<2x10x10x4xf32, #tpu.memory_space<vmem>>, vector<2x1x10x4xf32>,
    %c0_4 = arith.constant 0 : index
    %c9 = arith.constant 9 : index
    %c0_5 = arith.constant 0 : index
    %c0_6 = arith.constant 0 : index
    %3 = vector.load %arg9[%c0_4, %c9, %c0_5, %c0_6] : memref<2x10x10x4xf32, #tpu.memory_space<vmem>>, vector<2x1x10x4xf32>
    tpu.vector_store %arg9[%c0_4, %c9, %c0_5, %c0_6], %0 {strides = array<i32>} : memref<2x10x10x4xf32, #tpu.memory_space<vmem>>, vector<2x1x10x4xf32>,
    %c0_7 = arith.constant 0 : index
    %c0_8 = arith.constant 0 : index
    %c0_9 = arith.constant 0 : index
    %c0_10 = arith.constant 0 : index
    %4 = vector.load %arg9[%c0_7, %c0_8, %c0_9, %c0_10] : memref<2x10x10x4xf32, #tpu.memory_space<vmem>>, vector<2x10x1x4xf32>
    tpu.vector_store %arg9[%c0_7, %c0_8, %c0_9, %c0_10], %1 {strides = array<i32>} : memref<2x10x10x4xf32, #tpu.memory_space<vmem>>, vector<2x10x1x4xf32>,
    %c0_11 = arith.constant 0 : index
    %c0_12 = arith.constant 0 : index
    %c9_13 = arith.constant 9 : index
    %c0_14 = arith.constant 0 : index
    %5 = vector.load %arg9[%c0_11, %c0_12, %c9_13, %c0_14] : memref<2x10x10x4xf32, #tpu.memory_space<vmem>>, vector<2x10x1x4xf32>
    tpu.vector_store %arg9[%c0_11, %c0_12, %c9_13, %c0_14], %1 {strides = array<i32>} : memref<2x10x10x4xf32, #tpu.memory_space<vmem>>, vector<2x10x1x4xf32>,
    %cst_15 = arith.constant 0.000000e+00 : f32
    %6 = vector.broadcast %cst_15 : f32 to vector<2x1x10x8xf32>
    %cst_16 = arith.constant 0.000000e+00 : f32
    %7 = vector.broadcast %cst_16 : f32 to vector<2x10x1x8xf32>
    %c0_17 = arith.constant 0 : index
    %c0_18 = arith.constant 0 : index
    %c0_19 = arith.constant 0 : index
    %c0_20 = arith.constant 0 : index
    %8 = vector.load %arg10[%c0_17, %c0_18, %c0_19, %c0_20] : memref<2x10x10x8xf32, #tpu.memory_space<vmem>>, vector<2x1x10x8xf32>
    tpu.vector_store %arg10[%c0_17, %c0_18, %c0_19, %c0_20], %6 {strides = array<i32>} : memref<2x10x10x8xf32, #tpu.memory_space<vmem>>, vector<2x1x10x8xf32>,
    %c0_21 = arith.constant 0 : index
    %c9_22 = arith.constant 9 : index
    %c0_23 = arith.constant 0 : index
    %c0_24 = arith.constant 0 : index
    %9 = vector.load %arg10[%c0_21, %c9_22, %c0_23, %c0_24] : memref<2x10x10x8xf32, #tpu.memory_space<vmem>>, vector<2x1x10x8xf32>
    tpu.vector_store %arg10[%c0_21, %c9_22, %c0_23, %c0_24], %6 {strides = array<i32>} : memref<2x10x10x8xf32, #tpu.memory_space<vmem>>, vector<2x1x10x8xf32>,
    %c0_25 = arith.constant 0 : index
    %c0_26 = arith.constant 0 : index
    %c0_27 = arith.constant 0 : index
    %c0_28 = arith.constant 0 : index
    %10 = vector.load %arg10[%c0_25, %c0_26, %c0_27, %c0_28] : memref<2x10x10x8xf32, #tpu.memory_space<vmem>>, vector<2x10x1x8xf32>
    tpu.vector_store %arg10[%c0_25, %c0_26, %c0_27, %c0_28], %7 {strides = array<i32>} : memref<2x10x10x8xf32, #tpu.memory_space<vmem>>, vector<2x10x1x8xf32>,
    %c0_29 = arith.constant 0 : index
    %c0_30 = arith.constant 0 : index
    %c9_31 = arith.constant 9 : index
    %c0_32 = arith.constant 0 : index
    %11 = vector.load %arg10[%c0_29, %c0_30, %c9_31, %c0_32] : memref<2x10x10x8xf32, #tpu.memory_space<vmem>>, vector<2x10x1x8xf32>
    tpu.vector_store %arg10[%c0_29, %c0_30, %c9_31, %c0_32], %7 {strides = array<i32>} : memref<2x10x10x8xf32, #tpu.memory_space<vmem>>, vector<2x10x1x8xf32>,
    %c0_33 = arith.constant 0 : index
    %c0_34 = arith.constant 0 : index
    %c0_35 = arith.constant 0 : index
    %c0_36 = arith.constant 0 : index
    %12 = tpu.strided_load %arg1[%c0_33, %c0_34, %c0_35, %c0_36] {strides = array<i32: 1, 2, 2, 1>} : memref<2x16x16x4xf32, #tpu.memory_space<vmem>>, vector<2x8x8x4xf32>
    %c0_37 = arith.constant 0 : index
    %c0_38 = arith.constant 0 : index
    %c1 = arith.constant 1 : index
    %c0_39 = arith.constant 0 : index
    %13 = tpu.strided_load %arg1[%c0_37, %c0_38, %c1, %c0_39] {strides = array<i32: 1, 2, 2, 1>} : memref<2x16x16x4xf32, #tpu.memory_space<vmem>>, vector<2x8x8x4xf32>
    %14 = arith.maximumf %12, %13 : vector<2x8x8x4xf32>
    %c0_40 = arith.constant 0 : index
    %c1_41 = arith.constant 1 : index
    %c0_42 = arith.constant 0 : index
    %c0_43 = arith.constant 0 : index
    %15 = tpu.strided_load %arg1[%c0_40, %c1_41, %c0_42, %c0_43] {strides = array<i32: 1, 2, 2, 1>} : memref<2x16x16x4xf32, #tpu.memory_space<vmem>>, vector<2x8x8x4xf32>
    %c0_44 = arith.constant 0 : index
    %c1_45 = arith.constant 1 : index
    %c1_46 = arith.constant 1 : index
    %c0_47 = arith.constant 0 : index
    %16 = tpu.strided_load %arg1[%c0_44, %c1_45, %c1_46, %c0_47] {strides = array<i32: 1, 2, 2, 1>} : memref<2x16x16x4xf32, #tpu.memory_space<vmem>>, vector<2x8x8x4xf32>
    %17 = arith.maximumf %15, %16 : vector<2x8x8x4xf32>
    %18 = arith.maximumf %14, %17 : vector<2x8x8x4xf32>
    %c0_48 = arith.constant 0 : index
    %c1_49 = arith.constant 1 : index
    %c1_50 = arith.constant 1 : index
    %c0_51 = arith.constant 0 : index
    %19 = vector.load %arg9[%c0_48, %c1_49, %c1_50, %c0_51] : memref<2x10x10x4xf32, #tpu.memory_space<vmem>>, vector<2x8x8x4xf32>
    tpu.vector_store %arg9[%c0_48, %c1_49, %c1_50, %c0_51], %18 {strides = array<i32>} : memref<2x10x10x4xf32, #tpu.memory_space<vmem>>, vector<2x8x8x4xf32>,
    %c0_52 = arith.constant 0 : index
    %c0_53 = arith.constant 0 : index
    %c0_54 = arith.constant 0 : index
    %c0_55 = arith.constant 0 : index
    %20 = vector.load %arg9[%c0_52, %c0_53, %c0_54, %c0_55] : memref<2x10x10x4xf32, #tpu.memory_space<vmem>>, vector<2x8x8x4xf32>
    %21 = vector.shape_cast %20 : vector<2x8x8x4xf32> to vector<128x4xf32>
    %c0_56 = arith.constant 0 : index
    %c0_57 = arith.constant 0 : index
    %22 = vector.load %arg11[%c0_56, %c0_57] : memref<128x36xf32, #tpu.memory_space<vmem>>, vector<128x4xf32>
    tpu.vector_store %arg11[%c0_56, %c0_57], %21 {strides = array<i32>} : memref<128x36xf32, #tpu.memory_space<vmem>>, vector<128x4xf32>,
    %c0_58 = arith.constant 0 : index
    %c0_59 = arith.constant 0 : index
    %c1_60 = arith.constant 1 : index
    %c0_61 = arith.constant 0 : index
    %23 = vector.load %arg9[%c0_58, %c0_59, %c1_60, %c0_61] : memref<2x10x10x4xf32, #tpu.memory_space<vmem>>, vector<2x8x8x4xf32>
    %24 = vector.shape_cast %23 : vector<2x8x8x4xf32> to vector<128x4xf32>
    %c0_62 = arith.constant 0 : index
    %c4 = arith.constant 4 : index
    %25 = vector.load %arg11[%c0_62, %c4] : memref<128x36xf32, #tpu.memory_space<vmem>>, vector<128x4xf32>
    tpu.vector_store %arg11[%c0_62, %c4], %24 {strides = array<i32>} : memref<128x36xf32, #tpu.memory_space<vmem>>, vector<128x4xf32>,
    %c0_63 = arith.constant 0 : index
    %c0_64 = arith.constant 0 : index
    %c2 = arith.constant 2 : index
    %c0_65 = arith.constant 0 : index
    %26 = vector.load %arg9[%c0_63, %c0_64, %c2, %c0_65] : memref<2x10x10x4xf32, #tpu.memory_space<vmem>>, vector<2x8x8x4xf32>
    %27 = vector.shape_cast %26 : vector<2x8x8x4xf32> to vector<128x4xf32>
    %c0_66 = arith.constant 0 : index
    %c8 = arith.constant 8 : index
    %28 = vector.load %arg11[%c0_66, %c8] : memref<128x36xf32, #tpu.memory_space<vmem>>, vector<128x4xf32>
    tpu.vector_store %arg11[%c0_66, %c8], %27 {strides = array<i32>} : memref<128x36xf32, #tpu.memory_space<vmem>>, vector<128x4xf32>,
    %c0_67 = arith.constant 0 : index
    %c1_68 = arith.constant 1 : index
    %c0_69 = arith.constant 0 : index
    %c0_70 = arith.constant 0 : index
    %29 = vector.load %arg9[%c0_67, %c1_68, %c0_69, %c0_70] : memref<2x10x10x4xf32, #tpu.memory_space<vmem>>, vector<2x8x8x4xf32>
    %30 = vector.shape_cast %29 : vector<2x8x8x4xf32> to vector<128x4xf32>
    %c0_71 = arith.constant 0 : index
    %c12 = arith.constant 12 : index
    %31 = vector.load %arg11[%c0_71, %c12] : memref<128x36xf32, #tpu.memory_space<vmem>>, vector<128x4xf32>
    tpu.vector_store %arg11[%c0_71, %c12], %30 {strides = array<i32>} : memref<128x36xf32, #tpu.memory_space<vmem>>, vector<128x4xf32>,
    %c0_72 = arith.constant 0 : index
    %c1_73 = arith.constant 1 : index
    %c1_74 = arith.constant 1 : index
    %c0_75 = arith.constant 0 : index
    %32 = vector.load %arg9[%c0_72, %c1_73, %c1_74, %c0_75] : memref<2x10x10x4xf32, #tpu.memory_space<vmem>>, vector<2x8x8x4xf32>
    %33 = vector.shape_cast %32 : vector<2x8x8x4xf32> to vector<128x4xf32>
    %c0_76 = arith.constant 0 : index
    %c16 = arith.constant 16 : index
    %34 = vector.load %arg11[%c0_76, %c16] : memref<128x36xf32, #tpu.memory_space<vmem>>, vector<128x4xf32>
    tpu.vector_store %arg11[%c0_76, %c16], %33 {strides = array<i32>} : memref<128x36xf32, #tpu.memory_space<vmem>>, vector<128x4xf32>,
    %c0_77 = arith.constant 0 : index
    %c1_78 = arith.constant 1 : index
    %c2_79 = arith.constant 2 : index
    %c0_80 = arith.constant 0 : index
    %35 = vector.load %arg9[%c0_77, %c1_78, %c2_79, %c0_80] : memref<2x10x10x4xf32, #tpu.memory_space<vmem>>, vector<2x8x8x4xf32>
    %36 = vector.shape_cast %35 : vector<2x8x8x4xf32> to vector<128x4xf32>
    %c0_81 = arith.constant 0 : index
    %c20 = arith.constant 20 : index
    %37 = vector.load %arg11[%c0_81, %c20] : memref<128x36xf32, #tpu.memory_space<vmem>>, vector<128x4xf32>
    tpu.vector_store %arg11[%c0_81, %c20], %36 {strides = array<i32>} : memref<128x36xf32, #tpu.memory_space<vmem>>, vector<128x4xf32>,
    %c0_82 = arith.constant 0 : index
    %c2_83 = arith.constant 2 : index
    %c0_84 = arith.constant 0 : index
    %c0_85 = arith.constant 0 : index
    %38 = vector.load %arg9[%c0_82, %c2_83, %c0_84, %c0_85] : memref<2x10x10x4xf32, #tpu.memory_space<vmem>>, vector<2x8x8x4xf32>
    %39 = vector.shape_cast %38 : vector<2x8x8x4xf32> to vector<128x4xf32>
    %c0_86 = arith.constant 0 : index
    %c24 = arith.constant 24 : index
    %40 = vector.load %arg11[%c0_86, %c24] : memref<128x36xf32, #tpu.memory_space<vmem>>, vector<128x4xf32>
    tpu.vector_store %arg11[%c0_86, %c24], %39 {strides = array<i32>} : memref<128x36xf32, #tpu.memory_space<vmem>>, vector<128x4xf32>,
    %c0_87 = arith.constant 0 : index
    %c2_88 = arith.constant 2 : index
    %c1_89 = arith.constant 1 : index
    %c0_90 = arith.constant 0 : index
    %41 = vector.load %arg9[%c0_87, %c2_88, %c1_89, %c0_90] : memref<2x10x10x4xf32, #tpu.memory_space<vmem>>, vector<2x8x8x4xf32>
    %42 = vector.shape_cast %41 : vector<2x8x8x4xf32> to vector<128x4xf32>
    %c0_91 = arith.constant 0 : index
    %c28 = arith.constant 28 : index
    %43 = vector.load %arg11[%c0_91, %c28] : memref<128x36xf32, #tpu.memory_space<vmem>>, vector<128x4xf32>
    tpu.vector_store %arg11[%c0_91, %c28], %42 {strides = array<i32>} : memref<128x36xf32, #tpu.memory_space<vmem>>, vector<128x4xf32>,
    %c0_92 = arith.constant 0 : index
    %c2_93 = arith.constant 2 : index
    %c2_94 = arith.constant 2 : index
    %c0_95 = arith.constant 0 : index
    %44 = vector.load %arg9[%c0_92, %c2_93, %c2_94, %c0_95] : memref<2x10x10x4xf32, #tpu.memory_space<vmem>>, vector<2x8x8x4xf32>
    %45 = vector.shape_cast %44 : vector<2x8x8x4xf32> to vector<128x4xf32>
    %c0_96 = arith.constant 0 : index
    %c32 = arith.constant 32 : index
    %46 = vector.load %arg11[%c0_96, %c32] : memref<128x36xf32, #tpu.memory_space<vmem>>, vector<128x4xf32>
    tpu.vector_store %arg11[%c0_96, %c32], %45 {strides = array<i32>} : memref<128x36xf32, #tpu.memory_space<vmem>>, vector<128x4xf32>,
    %c0_97 = arith.constant 0 : index
    %c0_98 = arith.constant 0 : index
    %47 = vector.load %arg11[%c0_97, %c0_98] : memref<128x36xf32, #tpu.memory_space<vmem>>, vector<128x36xf32>
    %48 = arith.truncf %47 : vector<128x36xf32> to vector<128x36xbf16>
    %c0_99 = arith.constant 0 : index
    %c0_100 = arith.constant 0 : index
    %49 = vector.load %arg2[%c0_99, %c0_100] : memref<36x8xbf16, #tpu.memory_space<vmem>>, vector<36x8xbf16>
    %cst_101 = arith.constant dense<0.000000e+00> : vector<128x8xf32>
    %50 = tpu.matmul %48, %49, %cst_101 {dimension_numbers = #tpu.dot_dimension_numbers<[1], [0], [0], [1], [0, 0, 1, 1], [], []>} : vector<128x36xbf16>, vector<36x8xbf16>, vector<128x8xf32> -> vector<128x8xf32>
    %c0_102 = arith.constant 0 : index
    %c0_103 = arith.constant 0 : index
    %51 = vector.load %arg3[%c0_102, %c0_103] : memref<1x8xf32, #tpu.memory_space<vmem>>, vector<1x8xf32>
    %52 = vector.broadcast %51 : vector<1x8xf32> to vector<128x8xf32>
    %53 = arith.mulf %50, %52 : vector<128x8xf32>
    %c0_104 = arith.constant 0 : index
    %c0_105 = arith.constant 0 : index
    %54 = vector.load %arg4[%c0_104, %c0_105] : memref<1x8xf32, #tpu.memory_space<vmem>>, vector<1x8xf32>
    %55 = vector.broadcast %54 : vector<1x8xf32> to vector<128x8xf32>
    %56 = arith.addf %53, %55 : vector<128x8xf32>
    %cst_106 = arith.constant 0.000000e+00 : f32
    %57 = vector.broadcast %cst_106 : f32 to vector<128x8xf32>
    %58 = arith.maximumf %56, %57 : vector<128x8xf32>
    %59 = vector.shape_cast %58 : vector<128x8xf32> to vector<2x8x8x8xf32>
    %c0_107 = arith.constant 0 : index
    %c1_108 = arith.constant 1 : index
    %c1_109 = arith.constant 1 : index
    %c0_110 = arith.constant 0 : index
    %60 = vector.load %arg10[%c0_107, %c1_108, %c1_109, %c0_110] : memref<2x10x10x8xf32, #tpu.memory_space<vmem>>, vector<2x8x8x8xf32>
    tpu.vector_store %arg10[%c0_107, %c1_108, %c1_109, %c0_110], %59 {strides = array<i32>} : memref<2x10x10x8xf32, #tpu.memory_space<vmem>>, vector<2x8x8x8xf32>,
    %c0_111 = arith.constant 0 : index
    %c0_112 = arith.constant 0 : index
    %c0_113 = arith.constant 0 : index
    %c0_114 = arith.constant 0 : index
    %61 = vector.load %arg10[%c0_111, %c0_112, %c0_113, %c0_114] : memref<2x10x10x8xf32, #tpu.memory_space<vmem>>, vector<2x8x8x8xf32>
    %62 = vector.shape_cast %61 : vector<2x8x8x8xf32> to vector<128x8xf32>
    %c0_115 = arith.constant 0 : index
    %c0_116 = arith.constant 0 : index
    %63 = vector.load %arg12[%c0_115, %c0_116] : memref<128x72xf32, #tpu.memory_space<vmem>>, vector<128x8xf32>
    tpu.vector_store %arg12[%c0_115, %c0_116], %62 {strides = array<i32>} : memref<128x72xf32, #tpu.memory_space<vmem>>, vector<128x8xf32>,
    %c0_117 = arith.constant 0 : index
    %c0_118 = arith.constant 0 : index
    %c1_119 = arith.constant 1 : index
    %c0_120 = arith.constant 0 : index
    %64 = vector.load %arg10[%c0_117, %c0_118, %c1_119, %c0_120] : memref<2x10x10x8xf32, #tpu.memory_space<vmem>>, vector<2x8x8x8xf32>
    %65 = vector.shape_cast %64 : vector<2x8x8x8xf32> to vector<128x8xf32>
    %c0_121 = arith.constant 0 : index
    %c8_122 = arith.constant 8 : index
    %66 = vector.load %arg12[%c0_121, %c8_122] : memref<128x72xf32, #tpu.memory_space<vmem>>, vector<128x8xf32>
    tpu.vector_store %arg12[%c0_121, %c8_122], %65 {strides = array<i32>} : memref<128x72xf32, #tpu.memory_space<vmem>>, vector<128x8xf32>,
    %c0_123 = arith.constant 0 : index
    %c0_124 = arith.constant 0 : index
    %c2_125 = arith.constant 2 : index
    %c0_126 = arith.constant 0 : index
    %67 = vector.load %arg10[%c0_123, %c0_124, %c2_125, %c0_126] : memref<2x10x10x8xf32, #tpu.memory_space<vmem>>, vector<2x8x8x8xf32>
    %68 = vector.shape_cast %67 : vector<2x8x8x8xf32> to vector<128x8xf32>
    %c0_127 = arith.constant 0 : index
    %c16_128 = arith.constant 16 : index
    %69 = vector.load %arg12[%c0_127, %c16_128] : memref<128x72xf32, #tpu.memory_space<vmem>>, vector<128x8xf32>
    tpu.vector_store %arg12[%c0_127, %c16_128], %68 {strides = array<i32>} : memref<128x72xf32, #tpu.memory_space<vmem>>, vector<128x8xf32>,
    %c0_129 = arith.constant 0 : index
    %c1_130 = arith.constant 1 : index
    %c0_131 = arith.constant 0 : index
    %c0_132 = arith.constant 0 : index
    %70 = vector.load %arg10[%c0_129, %c1_130, %c0_131, %c0_132] : memref<2x10x10x8xf32, #tpu.memory_space<vmem>>, vector<2x8x8x8xf32>
    %71 = vector.shape_cast %70 : vector<2x8x8x8xf32> to vector<128x8xf32>
    %c0_133 = arith.constant 0 : index
    %c24_134 = arith.constant 24 : index
    %72 = vector.load %arg12[%c0_133, %c24_134] : memref<128x72xf32, #tpu.memory_space<vmem>>, vector<128x8xf32>
    tpu.vector_store %arg12[%c0_133, %c24_134], %71 {strides = array<i32>} : memref<128x72xf32, #tpu.memory_space<vmem>>, vector<128x8xf32>,
    %c0_135 = arith.constant 0 : index
    %c1_136 = arith.constant 1 : index
    %c1_137 = arith.constant 1 : index
    %c0_138 = arith.constant 0 : index
    %73 = vector.load %arg10[%c0_135, %c1_136, %c1_137, %c0_138] : memref<2x10x10x8xf32, #tpu.memory_space<vmem>>, vector<2x8x8x8xf32>
    %74 = vector.shape_cast %73 : vector<2x8x8x8xf32> to vector<128x8xf32>
    %c0_139 = arith.constant 0 : index
    %c32_140 = arith.constant 32 : index
    %75 = vector.load %arg12[%c0_139, %c32_140] : memref<128x72xf32, #tpu.memory_space<vmem>>, vector<128x8xf32>
    tpu.vector_store %arg12[%c0_139, %c32_140], %74 {strides = array<i32>} : memref<128x72xf32, #tpu.memory_space<vmem>>, vector<128x8xf32>,
    %c0_141 = arith.constant 0 : index
    %c1_142 = arith.constant 1 : index
    %c2_143 = arith.constant 2 : index
    %c0_144 = arith.constant 0 : index
    %76 = vector.load %arg10[%c0_141, %c1_142, %c2_143, %c0_144] : memref<2x10x10x8xf32, #tpu.memory_space<vmem>>, vector<2x8x8x8xf32>
    %77 = vector.shape_cast %76 : vector<2x8x8x8xf32> to vector<128x8xf32>
    %c0_145 = arith.constant 0 : index
    %c40 = arith.constant 40 : index
    %78 = vector.load %arg12[%c0_145, %c40] : memref<128x72xf32, #tpu.memory_space<vmem>>, vector<128x8xf32>
    tpu.vector_store %arg12[%c0_145, %c40], %77 {strides = array<i32>} : memref<128x72xf32, #tpu.memory_space<vmem>>, vector<128x8xf32>,
    %c0_146 = arith.constant 0 : index
    %c2_147 = arith.constant 2 : index
    %c0_148 = arith.constant 0 : index
    %c0_149 = arith.constant 0 : index
    %79 = vector.load %arg10[%c0_146, %c2_147, %c0_148, %c0_149] : memref<2x10x10x8xf32, #tpu.memory_space<vmem>>, vector<2x8x8x8xf32>
    %80 = vector.shape_cast %79 : vector<2x8x8x8xf32> to vector<128x8xf32>
    %c0_150 = arith.constant 0 : index
    %c48 = arith.constant 48 : index
    %81 = vector.load %arg12[%c0_150, %c48] : memref<128x72xf32, #tpu.memory_space<vmem>>, vector<128x8xf32>
    tpu.vector_store %arg12[%c0_150, %c48], %80 {strides = array<i32>} : memref<128x72xf32, #tpu.memory_space<vmem>>, vector<128x8xf32>,
    %c0_151 = arith.constant 0 : index
    %c2_152 = arith.constant 2 : index
    %c1_153 = arith.constant 1 : index
    %c0_154 = arith.constant 0 : index
    %82 = vector.load %arg10[%c0_151, %c2_152, %c1_153, %c0_154] : memref<2x10x10x8xf32, #tpu.memory_space<vmem>>, vector<2x8x8x8xf32>
    %83 = vector.shape_cast %82 : vector<2x8x8x8xf32> to vector<128x8xf32>
    %c0_155 = arith.constant 0 : index
    %c56 = arith.constant 56 : index
    %84 = vector.load %arg12[%c0_155, %c56] : memref<128x72xf32, #tpu.memory_space<vmem>>, vector<128x8xf32>
    tpu.vector_store %arg12[%c0_155, %c56], %83 {strides = array<i32>} : memref<128x72xf32, #tpu.memory_space<vmem>>, vector<128x8xf32>,
    %c0_156 = arith.constant 0 : index
    %c2_157 = arith.constant 2 : index
    %c2_158 = arith.constant 2 : index
    %c0_159 = arith.constant 0 : index
    %85 = vector.load %arg10[%c0_156, %c2_157, %c2_158, %c0_159] : memref<2x10x10x8xf32, #tpu.memory_space<vmem>>, vector<2x8x8x8xf32>
    %86 = vector.shape_cast %85 : vector<2x8x8x8xf32> to vector<128x8xf32>
    %c0_160 = arith.constant 0 : index
    %c64 = arith.constant 64 : index
    %87 = vector.load %arg12[%c0_160, %c64] : memref<128x72xf32, #tpu.memory_space<vmem>>, vector<128x8xf32>
    tpu.vector_store %arg12[%c0_160, %c64], %86 {strides = array<i32>} : memref<128x72xf32, #tpu.memory_space<vmem>>, vector<128x8xf32>,
    %c0_161 = arith.constant 0 : index
    %c0_162 = arith.constant 0 : index
    %88 = vector.load %arg12[%c0_161, %c0_162] : memref<128x72xf32, #tpu.memory_space<vmem>>, vector<128x72xf32>
    %89 = arith.truncf %88 : vector<128x72xf32> to vector<128x72xbf16>
    %c0_163 = arith.constant 0 : index
    %c0_164 = arith.constant 0 : index
    %90 = vector.load %arg5[%c0_163, %c0_164] : memref<72x8xbf16, #tpu.memory_space<vmem>>, vector<72x8xbf16>
    %cst_165 = arith.constant dense<0.000000e+00> : vector<128x8xf32>
    %91 = tpu.matmul %89, %90, %cst_165 {dimension_numbers = #tpu.dot_dimension_numbers<[1], [0], [0], [1], [0, 0, 1, 1], [], []>} : vector<128x72xbf16>, vector<72x8xbf16>, vector<128x8xf32> -> vector<128x8xf32>
    %c0_166 = arith.constant 0 : index
    %c0_167 = arith.constant 0 : index
    %92 = vector.load %arg6[%c0_166, %c0_167] : memref<1x8xf32, #tpu.memory_space<vmem>>, vector<1x8xf32>
    %93 = vector.broadcast %92 : vector<1x8xf32> to vector<128x8xf32>
    %94 = arith.mulf %91, %93 : vector<128x8xf32>
    %c0_168 = arith.constant 0 : index
    %c0_169 = arith.constant 0 : index
    %95 = vector.load %arg7[%c0_168, %c0_169] : memref<1x8xf32, #tpu.memory_space<vmem>>, vector<1x8xf32>
    %96 = vector.broadcast %95 : vector<1x8xf32> to vector<128x8xf32>
    %97 = arith.addf %94, %96 : vector<128x8xf32>
    %cst_170 = arith.constant 0.000000e+00 : f32
    %98 = vector.broadcast %cst_170 : f32 to vector<128x8xf32>
    %99 = arith.maximumf %97, %98 : vector<128x8xf32>
    %c0_171 = arith.constant 0 : index
    %c0_172 = arith.constant 0 : index
    %100 = vector.load %arg8[%c0_171, %c0_172] : memref<128x8xf32, #tpu.memory_space<vmem>>, vector<128x8xf32>
    tpu.vector_store %arg8[%c0_171, %c0_172], %99 {strides = array<i32>} : memref<128x8xf32, #tpu.memory_space<vmem>>, vector<128x8xf32>,
    return
  }
  func.func @transform_0(%arg0: i32) -> (i32, i32, i32, i32) {
    %c0_i32 = arith.constant 0 : i32
    %c0_i32_0 = arith.constant 0 : i32
    %c0_i32_1 = arith.constant 0 : i32
    %c0_i32_2 = arith.constant 0 : i32
    return %arg0, %c0_i32, %c0_i32_0, %c0_i32_1 : i32, i32, i32, i32
  }
  func.func @transform_1(%arg0: i32) -> (i32, i32) {
    %c0_i32 = arith.constant 0 : i32
    %c0_i32_0 = arith.constant 0 : i32
    %c0_i32_1 = arith.constant 0 : i32
    return %c0_i32, %c0_i32_0 : i32, i32
  }
  func.func @transform_2(%arg0: i32) -> (i32, i32) {
    %c0_i32 = arith.constant 0 : i32
    %c0_i32_0 = arith.constant 0 : i32
    %c0_i32_1 = arith.constant 0 : i32
    return %c0_i32, %c0_i32_0 : i32, i32
  }
  func.func @transform_3(%arg0: i32) -> (i32, i32) {
    %c0_i32 = arith.constant 0 : i32
    %c0_i32_0 = arith.constant 0 : i32
    %c0_i32_1 = arith.constant 0 : i32
    return %c0_i32, %c0_i32_0 : i32, i32
  }
  func.func @transform_4(%arg0: i32) -> (i32, i32) {
    %c0_i32 = arith.constant 0 : i32
    %c0_i32_0 = arith.constant 0 : i32
    %c0_i32_1 = arith.constant 0 : i32
    return %c0_i32, %c0_i32_0 : i32, i32
  }
  func.func @transform_5(%arg0: i32) -> (i32, i32) {
    %c0_i32 = arith.constant 0 : i32
    %c0_i32_0 = arith.constant 0 : i32
    %c0_i32_1 = arith.constant 0 : i32
    return %c0_i32, %c0_i32_0 : i32, i32
  }
  func.func @transform_6(%arg0: i32) -> (i32, i32) {
    %c0_i32 = arith.constant 0 : i32
    %c0_i32_0 = arith.constant 0 : i32
    %c0_i32_1 = arith.constant 0 : i32
    return %c0_i32, %c0_i32_0 : i32, i32
  }
  func.func @transform_7(%arg0: i32) -> (i32, i32) {
    %c0_i32 = arith.constant 0 : i32
    %c0_i32_0 = arith.constant 0 : i32
    return %arg0, %c0_i32 : i32, i32
  }
}

</mosaic_0001>

<bundles_post_ra>
// kernel: tpu_custom_call.1
= control target key start
LH: loop header
LB: loop body
LE: loop exit
PB: predicated region body
PF: predicated region fallthrough
CT: control target
= control target key end

     0   :  { %vm27_vm0 = vcmask 31744   ;;  %vm29_vm1 = vcmask 25600   ;;  %vm38_vm2 = vcmask 24576   ;;  %v2675_v0 = vmov 0.0   ;;  %s2676_s18 = smov 4   ;;  %s2677_s19 = smov 8   ;;  %s4126_s0 = inlined_call_operand.vmem [shape: f32[2,16,16,4], index: 0, kind: input, shape index: {}]   ;;  %s4127_s1 = inlined_call_operand.vmem [shape: bf16[36,8], index: 1, kind: input, shape index: {}]   ;;  %s4128_s2 = inlined_call_operand.vmem [shape: f32[1,8], index: 2, kind: input, shape index: {}]   ;;  %s4129_s3 = inlined_call_operand.vmem [shape: f32[1,8], index: 3, kind: input, shape index: {}]   ;;  %s4130_s4 = inlined_call_operand.vmem [shape: bf16[72,8], index: 4, kind: input, shape index: {}]   ;;  %s4131_s5 = inlined_call_operand.vmem [shape: f32[1,8], index: 5, kind: input, shape index: {}]   ;;  %s4132_s6 = inlined_call_operand.vmem [shape: f32[1,8], index: 6, kind: input, shape index: {}]   ;;  %s4133_s7 = inlined_call_operand.vmem [shape: f32[128,8], index: 7, kind: output, shape index: {}]  }
   0x1   :  { %28 = vst.msk [vmem:[#allocation2] sm:$0xff] %vm27_vm0, %v2675_v0  ;;  %31 = vst.msk [vmem:[#allocation2 + $0xa0] sm:$0xff] %vm27_vm0, %v2675_v0  ;;  %v2489_v1 = vld [vmem:[%s4126_s0 + $0x20] ss:$2 sm:$0xff]  ;;  %v2505_v2 = vld [vmem:[%s4126_s0 + $0x21] ss:$2 sm:$0xff] }
   0x2   :  { %30 = vst.msk [vmem:[#allocation2 + $0x8] sm:$0x3] %vm29_vm1, %v2675_v0  ;;  %32 = vst.msk [vmem:[#allocation2 + $0xa8] sm:$0x3] %vm29_vm1, %v2675_v0  ;;  %v2521_v3 = vld [vmem:[%s4126_s0 + $0x30] ss:$2 sm:$0xff]  ;;  %v195_v4 = vmax.f32 %v2489_v1, %v2505_v2 }
   0x3   :  { %34 = vst.msk [vmem:[#allocation2 + $0x90] sm:$0xff] %vm27_vm0, %v2675_v0  ;;  %36 = vst.msk [vmem:[#allocation2 + $0x130] sm:$0xff] %vm27_vm0, %v2675_v0  ;;  %v2537_v5 = vld [vmem:[%s4126_s0 + $0x31] ss:$2 sm:$0xff]  ;;  %v2490_v6 = vld [vmem:[%s4126_s0 + $0x40] ss:$2 sm:$0xff] }
   0x4   :  { %35 = vst.msk [vmem:[#allocation2 + $0x98] sm:$0x3] %vm29_vm1, %v2675_v0  ;;  %37 = vst.msk [vmem:[#allocation2 + $0x138] sm:$0x3] %vm29_vm1, %v2675_v0  ;;  %v2506_v7 = vld [vmem:[%s4126_s0 + $0x41] ss:$2 sm:$0xff]  ;;  %v275_v8 = vmax.f32 %v2521_v3, %v2537_v5 }
   0x5   :  { %40 = vst.msk [vmem:[#allocation2 + $0x10] sm:$0x1] %vm38_vm2, %v2675_v0  ;;  %41 = vst.msk [vmem:[#allocation2 + $0x20] sm:$0x1] %vm38_vm2, %v2675_v0  ;;  %v196_v9 = vmax.f32 %v2490_v6, %v2506_v7  ;;  %v2522_v10 = vld [vmem:[%s4126_s0 + $0x50] ss:$2 sm:$0xff] }
   0x6   :  { %42 = vst.msk [vmem:[#allocation2 + $0x30] sm:$0x1] %vm38_vm2, %v2675_v0  ;;  %43 = vst.msk [vmem:[#allocation2 + $0x40] sm:$0x1] %vm38_vm2, %v2675_v0  ;;  %v2538_v11 = vld [vmem:[%s4126_s0 + $0x51] ss:$2 sm:$0xff]  ;;  %v291_v17 = vmax.f32 %v195_v4, %v275_v8 }
   0x7   :  { %44 = vst.msk [vmem:[#allocation2 + $0x50] sm:$0x1] %vm38_vm2, %v2675_v0  ;;  %45 = vst.msk [vmem:[#allocation2 + $0x60] sm:$0x1] %vm38_vm2, %v2675_v0  ;;  %v131_v12 = vld [vmem:[%s4126_s0] ss:$2 sm:$0xff]  ;;  %v276_v13 = vmax.f32 %v2522_v10, %v2538_v11 }
   0x8   :  { %46 = vst.msk [vmem:[#allocation2 + $0x70] sm:$0x1] %vm38_vm2, %v2675_v0  ;;  %47 = vst.msk [vmem:[#allocation2 + $0x80] sm:$0x1] %vm38_vm2, %v2675_v0  ;;  %v2504_v14 = vld [vmem:[%s4126_s0 + $0x1] ss:$2 sm:$0xff] }
   0x9   :  { %50 = vst.msk [vmem:[#allocation2 + $0xb0] sm:$0x1] %vm38_vm2, %v2675_v0  ;;  %51 = vst.msk [vmem:[#allocation2 + $0xc0] sm:$0x1] %vm38_vm2, %v2675_v0  ;;  %v2520_v15 = vld [vmem:[%s4126_s0 + $0x10] ss:$2 sm:$0xff]  ;;  %v194_v18 = vmax.f32 %v131_v12, %v2504_v14  ;;  %v292_v22 = vmax.f32 %v196_v9, %v276_v13 }
   0xa   :  { %52 = vst.msk [vmem:[#allocation2 + $0xd0] sm:$0x1] %vm38_vm2, %v2675_v0  ;;  %53 = vst.msk [vmem:[#allocation2 + $0xe0] sm:$0x1] %vm38_vm2, %v2675_v0  ;;  %v2536_v16 = vld [vmem:[%s4126_s0 + $0x11] ss:$2 sm:$0xff] }
   0xb   :  { %54 = vst.msk [vmem:[#allocation2 + $0xf0] sm:$0x1] %vm38_vm2, %v2675_v0  ;;  %55 = vst.msk [vmem:[#allocation2 + $0x100] sm:$0x1] %vm38_vm2, %v2675_v0  ;;  %v274_v19 = vmax.f32 %v2520_v15, %v2536_v16  ;;  %v2491_v20 = vld [vmem:[%s4126_s0 + $0x60] ss:$2 sm:$0xff] }
   0xc   :  { %56 = vst.msk [vmem:[#allocation2 + $0x110] sm:$0x1] %vm38_vm2, %v2675_v0  ;;  %57 = vst.msk [vmem:[#allocation2 + $0x120] sm:$0x1] %vm38_vm2, %v2675_v0  ;;  %v2507_v21 = vld [vmem:[%s4126_s0 + $0x61] ss:$2 sm:$0xff] }
   0xd   :  { %60 = vst.msk [vmem:[#allocation2 + $0x19] sm:$0x1] %vm38_vm2, %v2675_v0  ;;  %61 = vst.msk [vmem:[#allocation2 + $0x29] sm:$0x1] %vm38_vm2, %v2675_v0  ;;  %v197_v23 = vmax.f32 %v2491_v20, %v2507_v21  ;;  %v2523_v24 = vld [vmem:[%s4126_s0 + $0x70] ss:$2 sm:$0xff]  ;;  %v290_v26 = vmax.f32 %v194_v18, %v274_v19 }
   0xe   :  { %62 = vst.msk [vmem:[#allocation2 + $0x39] sm:$0x1] %vm38_vm2, %v2675_v0  ;;  %63 = vst.msk [vmem:[#allocation2 + $0x49] sm:$0x1] %vm38_vm2, %v2675_v0  ;;  %v2539_v25 = vld [vmem:[%s4126_s0 + $0x71] ss:$2 sm:$0xff] }
   0xf   :  { %64 = vst.msk [vmem:[#allocation2 + $0x59] sm:$0x1] %vm38_vm2, %v2675_v0  ;;  %65 = vst.msk [vmem:[#allocation2 + $0x69] sm:$0x1] %vm38_vm2, %v2675_v0  ;;  %v277_v27 = vmax.f32 %v2523_v24, %v2539_v25  ;;  %v2492_v28 = vld [vmem:[%s4126_s0 + $0x80] ss:$2 sm:$0xff] }
  0x10   :  { %66 = vst.msk [vmem:[#allocation2 + $0x79] sm:$0x1] %vm38_vm2, %v2675_v0  ;;  %67 = vst.msk [vmem:[#allocation2 + $0x89] sm:$0x1] %vm38_vm2, %v2675_v0  ;;  %v2508_v29 = vld [vmem:[%s4126_s0 + $0x81] ss:$2 sm:$0xff] }
  0x11   :  { %70 = vst.msk [vmem:[#allocation2 + $0xb9] sm:$0x1] %vm38_vm2, %v2675_v0  ;;  %71 = vst.msk [vmem:[#allocation2 + $0xc9] sm:$0x1] %vm38_vm2, %v2675_v0  ;;  %v2524_v30 = vld [vmem:[%s4126_s0 + $0x90] ss:$2 sm:$0xff]  ;;  %v198_v32 = vmax.f32 %v2492_v28, %v2508_v29  ;;  %v293_v35 = vmax.f32 %v197_v23, %v277_v27 }
  0x12   :  { %72 = vst.msk [vmem:[#allocation2 + $0xd9] sm:$0x1] %vm38_vm2, %v2675_v0  ;;  %73 = vst.msk [vmem:[#allocation2 + $0xe9] sm:$0x1] %vm38_vm2, %v2675_v0  ;;  %v355_v31 = vld [vmem:[#allocation2 + $0x1] sm:$0xff]  ;;  %s2678_s17 = smov 12  }
  0x13   :  { %74 = vst.msk [vmem:[#allocation2 + $0xf9] sm:$0x1] %vm38_vm2, %v2675_v0  ;;  %75 = vst.msk [vmem:[#allocation2 + $0x109] sm:$0x1] %vm38_vm2, %v2675_v0  ;;  %v2540_v33 = vld [vmem:[%s4126_s0 + $0x91] ss:$2 sm:$0xff]  ;;  %387 = vrot.lane.b32.xlu0 %v355_v31, %s2676_s18 }
  0x14   :  { %76 = vst.msk [vmem:[#allocation2 + $0x119] sm:$0x1] %vm38_vm2, %v2675_v0  ;;  %77 = vst.msk [vmem:[#allocation2 + $0x129] sm:$0x1] %vm38_vm2, %v2675_v0  ;;  %v278_v36 = vmax.f32 %v2524_v30, %v2540_v33  ;;  %v2494_v37 = vld [vmem:[%s4126_s0 + $0xc0] ss:$2 sm:$0xff] }
  0x15   :  { %39 = vst.msk [vmem:[#allocation2] sm:$0x1] %vm38_vm2, %v2675_v0  ;;  %59 = vst.msk [vmem:[#allocation2 + $0x9] sm:$0x1] %vm38_vm2, %v2675_v0  ;;  %v2510_v38 = vld [vmem:[%s4126_s0 + $0xc1] ss:$2 sm:$0xff] }
  0x16   :  { %48 = vst.msk [vmem:[#allocation2 + $0x90] sm:$0x1] %vm38_vm2, %v2675_v0  ;;  %49 = vst.msk [vmem:[#allocation2 + $0xa0] sm:$0x1] %vm38_vm2, %v2675_v0  ;;  %v200_v39 = vmax.f32 %v2494_v37, %v2510_v38  ;;  %v2526_v40 = vld [vmem:[%s4126_s0 + $0xd0] ss:$2 sm:$0xff]  ;;  %v294_v43 = vmax.f32 %v198_v32, %v278_v36 }
  0x17   :  { %58 = vst.msk [vmem:[#allocation2 + $0x130] sm:$0x1] %vm38_vm2, %v2675_v0  ;;  %68 = vst.msk [vmem:[#allocation2 + $0x99] sm:$0x1] %vm38_vm2, %v2675_v0  ;;  %v2542_v41 = vld [vmem:[%s4126_s0 + $0xd1] ss:$2 sm:$0xff] }
  0x18   :  { %69 = vst.msk [vmem:[#allocation2 + $0xa9] sm:$0x1] %vm38_vm2, %v2675_v0  ;;  %78 = vst.msk [vmem:[#allocation2 + $0x139] sm:$0x1] %vm38_vm2, %v2675_v0  ;;  %v2493_v42 = vld [vmem:[%s4126_s0 + $0xa0] ss:$2 sm:$0xff]  ;;  %v280_v44 = vmax.f32 %v2526_v40, %v2542_v41 }
  0x19   :  { %308 = vst.msk [vmem:[#allocation2 + $0x21] sm:$0xff] %vm27_vm0, %v291_v17  ;;  %309 = vst.msk [vmem:[#allocation2 + $0x31] sm:$0xff] %vm27_vm0, %v292_v22  ;;  %v2509_v45 = vld [vmem:[%s4126_s0 + $0xa1] ss:$2 sm:$0xff]  ;;  %v2525_v46 = vld [vmem:[%s4126_s0 + $0xb0] ss:$2 sm:$0xff] }
  0x1a   :  { %307 = vst.msk [vmem:[#allocation2 + $0x11] sm:$0xff] %vm27_vm0, %v290_v26  ;;  %310 = vst.msk [vmem:[#allocation2 + $0x41] sm:$0xff] %vm27_vm0, %v293_v35  ;;  %v2541_v47 = vld [vmem:[%s4126_s0 + $0xb1] ss:$2 sm:$0xff]  ;;  %v199_v48 = vmax.f32 %v2493_v42, %v2509_v45  ;;  %v2495_v50 = vld [vmem:[%s4126_s0 + $0xe0] ss:$2 sm:$0xff]  ;;  %v296_v53 = vmax.f32 %v200_v39, %v280_v44 }
  0x1b   :  { %v279_v49 = vmax.f32 %v2525_v46, %v2541_v47  ;;  %v2511_v51 = vld [vmem:[%s4126_s0 + $0xe1] ss:$2 sm:$0xff]  ;;  %v2527_v52 = vld [vmem:[%s4126_s0 + $0xf0] ss:$2 sm:$0xff]  ;;  %311 = vst.msk [vmem:[#allocation2 + $0x51] sm:$0xff] %vm27_vm0, %v294_v43  ;;  %s2679_s11 = smov 16  }
  0x1c   :  { %v452_v34 = vld [vmem:[#allocation2 + $0x2] sm:$0xff]  ;;  %v201_v54 = vmax.f32 %v2495_v50, %v2511_v51  ;;  %v2543_v55 = vld [vmem:[%s4126_s0 + $0xf1] ss:$2 sm:$0xff]  ;;  %313 = vst.msk [vmem:[#allocation2 + $0x71] sm:$0xff] %vm27_vm0, %v296_v53  ;;  %v2528_v8 = vld [vmem:[%s4126_s0 + $0x110] ss:$2 sm:$0xff] }
  0x1d   :  { %484 = vrot.lane.b32.xlu0 %v452_v34, %s2677_s19  ;;  %v323_v56 = vld [vmem:[#allocation2] sm:$0xff]  ;;  %v295_v59 = vmax.f32 %v199_v48, %v279_v49  ;;  %v281_v60 = vmax.f32 %v2527_v52, %v2543_v55  ;;  %v2544_v9 = vld [vmem:[%s4126_s0 + $0x111] ss:$2 sm:$0xff]  ;;  %v2530_v20 = vld [vmem:[%s4126_s0 + $0x150] ss:$2 sm:$0xff]  ;;  %s2680_s12 = smov 20  }
  0x1e   :  { %339 = vst.msk [vmem:[#allocation4] sm:$0xff] %vm27_vm0, %v323_v56  ;;  %v2496_v3 = vld [vmem:[%s4126_s0 + $0x100] ss:$2 sm:$0xff]  ;;  %v2512_v4 = vld [vmem:[%s4126_s0 + $0x101] ss:$2 sm:$0xff]  ;;  %v282_v12 = vmax.f32 %v2528_v8, %v2544_v9  ;;  %s2681_s24 = smov 24  }
  0x1f   :  { %312 = vst.msk [vmem:[#allocation2 + $0x61] sm:$0xff] %vm27_vm0, %v295_v59  ;;  %v297_v2 = vmax.f32 %v201_v54, %v281_v60  ;;  %v202_v7 = vmax.f32 %v2496_v3, %v2512_v4  ;;  %v2498_v13 = vld [vmem:[%s4126_s0 + $0x140] ss:$2 sm:$0xff]  ;;  %v2514_v14 = vld [vmem:[%s4126_s0 + $0x141] ss:$2 sm:$0xff]  ;;  %s2682_s25 = smov 28  }
  0x20   :  { %v2923_v57 = vld [vmem:[#allocation2 + $0x21] sm:$0xff]  ;;  %v2930_v61 = vld [vmem:[#allocation2 + $0x30] sm:$0xff]  ;;  %v204_v19 = vmax.f32 %v2498_v13, %v2514_v14  ;;  %s2683_s28 = smov 32   ;;  %vm1201_vm3 = vcmask 1041408   ;;  %vm435_vm4 = vcmask 64544   ;;  %vm532_vm5 = vcmask 97344  }
  0x21   :  { %v2925_v58 = vld [vmem:[#allocation2 + $0x20] sm:$0xff]  ;;  %391 = vrot.lane.b32.xlu1 %v2923_v57, %s2676_s18  ;;  %v2935_v62 = vld [vmem:[#allocation2 + $0x31] sm:$0xff]  ;;  %342 = vst.msk [vmem:[#allocation4 + $0x18] sm:$0xff] %vm27_vm0, %v2930_v61  ;;  %314 = vst.msk [vmem:[#allocation2 + $0x81] sm:$0xff] %vm27_vm0, %v297_v2  ;;  %v298_v16 = vmax.f32 %v202_v7, %v282_v12  ;;  %vm629_vm6 = vcmask 130144   ;;  %vm726_vm7 = vcmask 162944  }
  0x22   :  { %341 = vst.msk [vmem:[#allocation4 + $0x10] sm:$0xff] %vm27_vm0, %v2925_v58  ;;  %v356_v63 = vld [vmem:[#allocation2 + $0x11] sm:$0xff]  ;;  %v2948_v5 = vld [vmem:[#allocation2 + $0x22] sm:$0xff]  ;;  %v2669_v55 = vld [vmem:[%s4127_s1 + $0x10] ss:$0 sps:$4 sm:$0x33]  }
  0x23   :  { %v549_v1 = vld [vmem:[#allocation2 + $0x10] sm:$0xff]  ;;  %389 = vrot.lane.b32.xlu0 %v356_v63, %s2676_s18  ;;  %v2950_v6 = vld [vmem:[#allocation2 + $0x40] sm:$0xff]  ;;  %315 = vst.msk [vmem:[#allocation2 + $0xb1] sm:$0xff] %vm27_vm0, %v298_v16  ;;  %v2668_v54 = vld [vmem:[%s4127_s1 + $0x8] sm:$0xff]   ;;  %v1203_v59 = vsel %vm1201_vm3, %v2669_v55, 0  ;;  %vm823_vm8 = vcmask 195744  }
  0x24   :  { %340 = vst.msk [vmem:[#allocation4 + $0x8] sm:$0xff] %vm27_vm0, %v549_v1  ;;  %343 = vst.msk [vmem:[#allocation4 + $0x20] sm:$0xff] %vm27_vm0, %v2950_v6  ;;  %v453_v10 = vld [vmem:[#allocation2 + $0x12] sm:$0xff]  ;;  %v2497_v22 = vld [vmem:[%s4126_s0 + $0x120] ss:$2 sm:$0xff]  ;;  %vm921_vm9 = vcmask 228544  }
  0x25   :  { %393 = vrot.lane.b32.xlu1 %v2935_v62, %s2676_s18  ;;  %v2963_v11 = vld [vmem:[#allocation2 + $0x50] sm:$0xff]  ;;  %v2513_v24 = vld [vmem:[%s4126_s0 + $0x121] ss:$2 sm:$0xff]  ;;  %v2499_v30 = vld [vmem:[%s4126_s0 + $0x160] ss:$2 sm:$0xff]  ;;  %vm1018_vm10 = vcmask 261344  }
  0x26   :  { %344 = vst.msk [vmem:[#allocation4 + $0x28] sm:$0xff] %vm27_vm0, %v2963_v11  ;;  %v2975_v15 = vld [vmem:[#allocation2 + $0x70] sm:$0xff]  ;;  %v2980_v18 = vld [vmem:[#allocation2 + $0x60] sm:$0xff]  ;;  %v203_v28 = vmax.f32 %v2497_v22, %v2513_v24  ;;  %vm1115_vm11 = vcmask 294144   ;;  %vm1176_vm12 = vcmask 293888   ;;  %vm79_vm13 = vcmask 64512  }
  0x27   :  { %488 = vrot.lane.b32.xlu0 %v2948_v5, %s2677_s19  ;;  %v2978_v17 = vld [vmem:[#allocation2 + $0x32] sm:$0xff]  ;;  %346 = vst.msk [vmem:[#allocation4 + $0x38] sm:$0xff] %vm27_vm0, %v2975_v15  ;;  %345 = vst.msk [vmem:[#allocation4 + $0x30] sm:$0xff] %vm27_vm0, %v2980_v18  ;;  %v2515_v31 = vld [vmem:[%s4126_s0 + $0x161] ss:$2 sm:$0xff]  ;;  %vm90_vm14 = vcmask 57344  }
  0x28   :  { %v2546_v21 = vld [vmem:[%s4126_s0 + $0x151] ss:$2 sm:$0xff]  ;;  %v2529_v25 = vld [vmem:[%s4126_s0 + $0x130] ss:$2 sm:$0xff]  ;;  %v205_v32 = vmax.f32 %v2499_v30, %v2515_v31  ;;  %v649_v41 = vld [vmem:[#allocation2 + $0x41] sm:$0xff]  ;;  %80 = vst.msk [vmem:[#allocation3] sm:$0xff] %vm79_vm13, %v2675_v0 }
  0x29   :  { %486 = vrot.lane.b32.xlu1 %v453_v10, %s2677_s19  ;;  %v284_v23 = vmax.f32 %v2530_v20, %v2546_v21  ;;  %v2545_v26 = vld [vmem:[%s4126_s0 + $0x131] ss:$2 sm:$0xff]  ;;  %v2531_v33 = vld [vmem:[%s4126_s0 + $0x170] ss:$2 sm:$0xff]  ;;  %v2500_v43 = vld [vmem:[%s4126_s0 + $0x180] ss:$2 sm:$0xff] }
  0x2a   :  { %v283_v29 = vmax.f32 %v2529_v25, %v2545_v26  ;;  %v2547_v34 = vld [vmem:[%s4126_s0 + $0x171] ss:$2 sm:$0xff]  ;;  %v2516_v44 = vld [vmem:[%s4126_s0 + $0x181] ss:$2 sm:$0xff]  ;;  %v2532_v45 = vld [vmem:[%s4126_s0 + $0x190] ss:$2 sm:$0xff] }
  0x2b   :  { %581 = vrot.lane.b32.xlu0 %v549_v1, %s2678_s17  ;;  %v300_v27 = vmax.f32 %v204_v19, %v284_v23  ;;  %v285_v36 = vmax.f32 %v2531_v33, %v2547_v34  ;;  %v3026_v37 = vld [vmem:[#allocation2 + $0xb0] sm:$0xff]  ;;  %v206_v46 = vmax.f32 %v2500_v43, %v2516_v44  ;;  %v746_v48 = vld [vmem:[#allocation2 + $0x42] sm:$0xff]  ;;  %83 = vst.msk [vmem:[#allocation3 + $0xa0] sm:$0xff] %vm79_vm13, %v2675_v0  ;;  %86 = vst.msk [vmem:[#allocation3 + $0x90] sm:$0xff] %vm79_vm13, %v2675_v0  ;;  %vm81_vm15 = vcmask 58368  }
  0x2c   :  { %v299_v35 = vmax.f32 %v203_v28, %v283_v29  ;;  %348 = vst.msk [vmem:[#allocation4 + $0x48] sm:$0xff] %vm27_vm0, %v3026_v37  ;;  %v2548_v47 = vld [vmem:[%s4126_s0 + $0x191] ss:$2 sm:$0xff]  ;;  %v2667_v52 = vld [vmem:[%s4127_s1] sm:$0xff]   ;;  %v2533_v2 = vld [vmem:[%s4126_s0 + $0x1b0] ss:$2 sm:$0xff] }
  0x2d   :  { %490 = vrot.lane.b32.xlu1 %v2978_v17, %s2677_s19  ;;  %317 = vst.msk [vmem:[#allocation2 + $0xd1] sm:$0xff] %vm27_vm0, %v300_v27  ;;  %v301_v38 = vmax.f32 %v205_v32, %v285_v36  ;;  %v286_v49 = vmax.f32 %v2532_v45, %v2548_v47  ;;  %v941_v53 = vld [vmem:[#allocation2 + $0x51] sm:$0xff]  ;;  %2604 = vmatprep.subr.bf16.mxu0 %v2667_v52  ;;  %v2502_v56 = vld [vmem:[%s4126_s0 + $0x1c0] ss:$2 sm:$0xff]  ;;  %v2517_v1 = vld [vmem:[%s4126_s0 + $0x1a1] ss:$2 sm:$0xff] }
  0x2e   :  { %316 = vst.msk [vmem:[#allocation2 + $0xc1] sm:$0xff] %vm27_vm0, %v299_v35  ;;  %2605 = vmatpush3.bf16.msra.mxu0 %v2667_v52  ;;  %v2549_v3 = vld [vmem:[%s4126_s0 + $0x1b1] ss:$2 sm:$0xff]  ;;  %v361_v4 = vld [vmem:[#allocation2 + $0x61] sm:$0xff]  ;;  %v2535_v16 = vld [vmem:[%s4126_s0 + $0x1f0] ss:$2 sm:$0xff] }
  0x2f   :  { %585 = vrot.lane.b32.xlu0 %v2930_v61, %s2678_s17  ;;  %318 = vst.msk [vmem:[#allocation2 + $0xe1] sm:$0xff] %vm27_vm0, %v301_v38  ;;  %v302_v50 = vmax.f32 %v206_v46, %v286_v49  ;;  %2606 = vmatprep.subr.bf16.mxu0 %v2668_v54  ;;  %v1038_v8 = vld [vmem:[#allocation2 + $0x52] sm:$0xff]  ;;  %v458_v12 = vld [vmem:[#allocation2 + $0x62] sm:$0xff]  ;;  %vm1590_vm1 = vcmask 195712   ;;  %vm2275_vm2 = vcmask 1043456  }
  0x30   :  { %v2503_v13 = vld [vmem:[%s4126_s0 + $0x1e0] ss:$2 sm:$0xff]  ;;  %v2519_v14 = vld [vmem:[%s4126_s0 + $0x1e1] ss:$2 sm:$0xff]  ;;  %v2551_v19 = vld [vmem:[%s4126_s0 + $0x1f1] ss:$2 sm:$0xff] }
  0x31   :  { %583 = vrot.lane.b32.xlu1 %v2925_v58, %s2678_s17  ;;  %319 = vst.msk [vmem:[#allocation2 + $0xf1] sm:$0xff] %vm27_vm0, %v302_v50  ;;  %v459_v20 = vld [vmem:[#allocation2 + $0x72] sm:$0xff]  ;;  %v289_v21 = vmax.f32 %v2535_v16, %v2551_v19  ;;  %v556_v24 = vld [vmem:[#allocation2 + $0x80] sm:$0xff] }
  0x32   :  { %2607 = vmatpush3.bf16.msra.mxu0 %v2668_v54  ;;  %v653_v25 = vld [vmem:[#allocation2 + $0x81] sm:$0xff]  ;;  %v848_v27 = vld [vmem:[#allocation2 + $0x90] sm:$0xff]  ;;  %88 = vst.msk [vmem:[#allocation3 + $0x130] sm:$0xff] %vm79_vm13, %v2675_v0 }
  0x33   :  { %678 = vrot.lane.b32.xlu0 %v356_v63, %s2679_s11  ;;  %2652 = vmatprep.subr.msk.bf16.mxu0 %vm1201_vm3, %v2669_v55  ;;  %v750_v26 = vld [vmem:[#allocation2 + $0x82] sm:$0xff]  ;;  %v945_v30 = vld [vmem:[#allocation2 + $0x91] sm:$0xff]  ;;  %100 = vst.msk [vmem:[#allocation3 + $0x90] sm:$0x1] %vm90_vm14, %v2675_v0  ;;  %91 = vst.msk [vmem:[#allocation3] sm:$0x1] %vm90_vm14, %v2675_v0 }
  0x34   :  { %v3034_v39 = vld [vmem:[#allocation2 + $0xd0] sm:$0xff]  ;;  %v331_v29 = vld [vmem:[#allocation2 + $0xa0] sm:$0xff]  ;;  %92 = vst.msk [vmem:[#allocation3 + $0x10] sm:$0x1] %vm90_vm14, %v2675_v0  ;;  %93 = vst.msk [vmem:[#allocation3 + $0x20] sm:$0x1] %vm90_vm14, %v2675_v0 }
  0x35   :  { %587 = vrot.lane.b32.xlu1 %v2950_v6, %s2678_s17  ;;  %350 = vst.msk [vmem:[#allocation4 + $0x58] sm:$0xff] %vm27_vm0, %v3034_v39  ;;  %v3040_v40 = vld [vmem:[#allocation2 + $0xc0] sm:$0xff]  ;;  %347 = vst.msk [vmem:[#allocation4 + $0x40] sm:$0xff] %vm27_vm0, %v331_v29  ;;  %v364_v35 = vld [vmem:[#allocation2 + $0xb1] sm:$0xff]  ;;  %vm1687_vm3 = vcmask 261312  }
  0x36   :  { %349 = vst.msk [vmem:[#allocation4 + $0x50] sm:$0xff] %vm27_vm0, %v3040_v40  ;;  %v3046_v42 = vld [vmem:[#allocation2 + $0xe0] sm:$0xff]  ;;  %2609 = vmatpush3.bf16.msra.mxu0 %v1203_v59  ;;  %v1042_v43 = vld [vmem:[#allocation2 + $0x92] sm:$0xff] }
  0x37   :  { %682 = vrot.lane.b32.xlu0 %v2935_v62, %s2679_s11  ;;  %351 = vst.msk [vmem:[#allocation4 + $0x60] sm:$0xff] %vm27_vm0, %v3046_v42  ;;  %v363_v31 = vld [vmem:[#allocation2 + $0xa1] sm:$0xff]  ;;  %v3203_v47 = vld [vmem:[#allocation2 + $0xd1] sm:$0xff] }
  0x38   :  { %v3080_v51 = vld [vmem:[#allocation2 + $0xf0] sm:$0xff]  ;;  %v3195_v38 = vld [vmem:[#allocation2 + $0xc1] sm:$0xff]  ;;  %94 = vst.msk [vmem:[#allocation3 + $0x30] sm:$0x1] %vm90_vm14, %v2675_v0  ;;  %95 = vst.msk [vmem:[#allocation3 + $0x40] sm:$0x1] %vm90_vm14, %v2675_v0 }
  0x39   :  { %680 = vrot.lane.b32.xlu1 %v2923_v57, %s2679_s11  ;;  %352 = vst.msk [vmem:[#allocation4 + $0x68] sm:$0xff] %vm27_vm0, %v3080_v51  ;;  %v460_v45 = vld [vmem:[#allocation2 + $0xa2] sm:$0xff]  ;;  %v461_v52 = vld [vmem:[#allocation2 + $0xb2] sm:$0xff] }
  0x3a   :  { %v3208_v49 = vld [vmem:[#allocation2 + $0xc2] sm:$0xff]  ;;  %v3217_v55 = vld [vmem:[#allocation2 + $0xd2] sm:$0xff]  ;;  %96 = vst.msk [vmem:[#allocation3 + $0x50] sm:$0x1] %vm90_vm14, %v2675_v0  ;;  %97 = vst.msk [vmem:[#allocation3 + $0x60] sm:$0x1] %vm90_vm14, %v2675_v0 }
  0x3b   :  { %775 = vrot.lane.b32.xlu0 %v453_v10, %s2680_s12  ;;  %v362_v10 = vld [vmem:[#allocation2 + $0x71] sm:$0xff]  ;;  %98 = vst.msk [vmem:[#allocation3 + $0x70] sm:$0x1] %vm90_vm14, %v2675_v0  ;;  %99 = vst.msk [vmem:[#allocation3 + $0x80] sm:$0x1] %vm90_vm14, %v2675_v0 }
  0x3c   :  { %v1046_v29 = vld [vmem:[#allocation2 + $0xf2] sm:$0xff]  ;;  %101 = vst.msk [vmem:[#allocation3 + $0xa0] sm:$0x1] %vm90_vm14, %v2675_v0  ;;  %102 = vst.msk [vmem:[#allocation3 + $0xb0] sm:$0x1] %vm90_vm14, %v2675_v0 }
  0x3d   :  { %684 = vrot.lane.b32.xlu1 %v649_v41, %s2679_s11  ;;  %103 = vst.msk [vmem:[#allocation3 + $0xc0] sm:$0x1] %vm90_vm14, %v2675_v0  ;;  %104 = vst.msk [vmem:[#allocation3 + $0xd0] sm:$0x1] %vm90_vm14, %v2675_v0 }
  0x3e   :  { %105 = vst.msk [vmem:[#allocation3 + $0xe0] sm:$0x1] %vm90_vm14, %v2675_v0  ;;  %106 = vst.msk [vmem:[#allocation3 + $0xf0] sm:$0x1] %vm90_vm14, %v2675_v0 }
  0x3f   :  { %779 = vrot.lane.b32.xlu0 %v2978_v17, %s2680_s12  ;;  %107 = vst.msk [vmem:[#allocation3 + $0x100] sm:$0x1] %vm90_vm14, %v2675_v0  ;;  %108 = vst.msk [vmem:[#allocation3 + $0x110] sm:$0x1] %vm90_vm14, %v2675_v0 }
  0x40   :  { %109 = vst.msk [vmem:[#allocation3 + $0x120] sm:$0x1] %vm90_vm14, %v2675_v0  ;;  %110 = vst.msk [vmem:[#allocation3 + $0x130] sm:$0x1] %vm90_vm14, %v2675_v0 }
  0x41   :  { %777 = vrot.lane.b32.xlu1 %v2948_v5, %s2680_s12  ;;  %112 = vst.msk [vmem:[#allocation3 + $0x19] sm:$0x1] %vm90_vm14, %v2675_v0  ;;  %113 = vst.msk [vmem:[#allocation3 + $0x29] sm:$0x1] %vm90_vm14, %v2675_v0 }
  0x42   :  { %114 = vst.msk [vmem:[#allocation3 + $0x39] sm:$0x1] %vm90_vm14, %v2675_v0  ;;  %115 = vst.msk [vmem:[#allocation3 + $0x49] sm:$0x1] %vm90_vm14, %v2675_v0 }
  0x43   :  { %873 = vrot.lane.b32.xlu0 %v2925_v58, %s2681_s24  ;;  %v2534_v58 = vld [vmem:[%s4126_s0 + $0x1d0] ss:$2 sm:$0xff]  ;;  %116 = vst.msk [vmem:[#allocation3 + $0x59] sm:$0x1] %vm90_vm14, %v2675_v0  ;;  %117 = vst.msk [vmem:[#allocation3 + $0x69] sm:$0x1] %vm90_vm14, %v2675_v0 }
  0x44   :  { %118 = vst.msk [vmem:[#allocation3 + $0x79] sm:$0x1] %vm90_vm14, %v2675_v0  ;;  %119 = vst.msk [vmem:[#allocation3 + $0x89] sm:$0x1] %vm90_vm14, %v2675_v0 }
  0x45   :  { %781 = vrot.lane.b32.xlu1 %v746_v48, %s2680_s12  ;;  %122 = vst.msk [vmem:[#allocation3 + $0xb9] sm:$0x1] %vm90_vm14, %v2675_v0  ;;  %123 = vst.msk [vmem:[#allocation3 + $0xc9] sm:$0x1] %vm90_vm14, %v2675_v0 }
  0x46   :  { %124 = vst.msk [vmem:[#allocation3 + $0xd9] sm:$0x1] %vm90_vm14, %v2675_v0  ;;  %125 = vst.msk [vmem:[#allocation3 + $0xe9] sm:$0x1] %vm90_vm14, %v2675_v0 }
  0x47   :  { %877 = vrot.lane.b32.xlu0 %v2950_v6, %s2681_s24  ;;  %v287_v6 = vmax.f32 %v2533_v2, %v2549_v3  ;;  %126 = vst.msk [vmem:[#allocation3 + $0xf9] sm:$0x1] %vm90_vm14, %v2675_v0  ;;  %127 = vst.msk [vmem:[#allocation3 + $0x109] sm:$0x1] %vm90_vm14, %v2675_v0 }
  0x48   :  { %128 = vst.msk [vmem:[#allocation3 + $0x119] sm:$0x1] %vm90_vm14, %v2675_v0  ;;  %129 = vst.msk [vmem:[#allocation3 + $0x129] sm:$0x1] %vm90_vm14, %v2675_v0 }
  0x49   :  { %875 = vrot.lane.b32.xlu1 %v2930_v61, %s2681_s24  ;;  %v2550_v61 = vld [vmem:[%s4126_s0 + $0x1d1] ss:$2 sm:$0xff]  ;;  %82 = vst.msk [vmem:[#allocation3 + $0x8] sm:$0x3] %vm81_vm15, %v2675_v0  ;;  %84 = vst.msk [vmem:[#allocation3 + $0xa8] sm:$0x3] %vm81_vm15, %v2675_v0 }
  0x4a   :  { %v288_v63 = vmax.f32 %v2534_v58, %v2550_v61  ;;  %87 = vst.msk [vmem:[#allocation3 + $0x98] sm:$0x3] %vm81_vm15, %v2675_v0  ;;  %89 = vst.msk [vmem:[#allocation3 + $0x138] sm:$0x3] %vm81_vm15, %v2675_v0 }
  0x4b   :  { %970 = vrot.lane.b32.xlu0 %v2923_v57, %s2682_s25  ;;  %v2518_v57 = vld [vmem:[%s4126_s0 + $0x1c1] ss:$2 sm:$0xff]  ;;  %111 = vst.msk [vmem:[#allocation3 + $0x9] sm:$0x1] %vm90_vm14, %v2675_v0  ;;  %120 = vst.msk [vmem:[#allocation3 + $0x99] sm:$0x1] %vm90_vm14, %v2675_v0 }
  0x4c   :  { %v208_v60 = vmax.f32 %v2502_v56, %v2518_v57  ;;  %121 = vst.msk [vmem:[#allocation3 + $0xa9] sm:$0x1] %vm90_vm14, %v2675_v0  ;;  %130 = vst.msk [vmem:[#allocation3 + $0x139] sm:$0x1] %vm90_vm14, %v2675_v0 }
  0x4d   :  { %879 = vrot.lane.b32.xlu1 %v2963_v11, %s2681_s24 }
  0x4e   :  { %v304_v7 = vmax.f32 %v208_v60, %v288_v63  ;;  %v657_v63 = vld [vmem:[#allocation2 + $0xe1] sm:$0xff] }
  0x4f   :  { %974 = vrot.lane.b32.xlu0 %v649_v41, %s2682_s25 }
  0x50   :  { %321 = vst.msk [vmem:[#allocation2 + $0x111] sm:$0xff] %vm27_vm0, %v304_v7 }
  0x51   :  { %972 = vrot.lane.b32.xlu1 %v2935_v62, %s2682_s25  ;;  %v2501_v62 = vld [vmem:[%s4126_s0 + $0x1a0] ss:$2 sm:$0xff]  ;;  %s2684_s0 = smov 48  }
  0x53   :  { %1067 = vrot.lane.b32.xlu0 %v2948_v5, %s2683_s28  ;;  %v207_v5 = vmax.f32 %v2501_v62, %v2517_v1 }
  0x55   :  { %976 = vrot.lane.b32.xlu1 %v941_v53, %s2682_s25  ;;  %v303_v9 = vmax.f32 %v207_v5, %v287_v6  ;;  %v3252_v5 = vld [vmem:[#allocation2 + $0xe2] sm:$0xff] }
  0x57   :  { %395 = vrot.lane.b32.xlu0 %v649_v41, %s2676_s18  ;;  %320 = vst.msk [vmem:[#allocation2 + $0x101] sm:$0xff] %vm27_vm0, %v303_v9 }
  0x59   :  { %1069 = vrot.lane.b32.xlu1 %v2978_v17, %s2683_s28  ;;  %v209_v17 = vmax.f32 %v2503_v13, %v2519_v14  ;;  %v3277_v13 = vld [vmem:[#allocation2 + $0xf1] sm:$0xff] }
  0x5b   :  { %1071 = vrot.lane.b32.xlu0 %v746_v48, %s2683_s28  ;;  %v305_v22 = vmax.f32 %v209_v17, %v289_v21 }
  0x5d   :  { %397 = vrot.lane.b32.xlu1 %v941_v53, %s2676_s18  ;;  %322 = vst.msk [vmem:[#allocation2 + $0x121] sm:$0xff] %vm27_vm0, %v305_v22 }
  0x5e   :  { %v3154_v23 = vld [vmem:[#allocation2 + $0x100] sm:$0xff] }
  0x5f   :  { %399 = vrot.lane.b32.xlu0 %v361_v4, %s2676_s18  ;;  %353 = vst.msk [vmem:[#allocation4 + $0x70] sm:$0xff] %vm27_vm0, %v3154_v23 }
  0x61   :  { %1073 = vrot.lane.b32.xlu1 %v1038_v8, %s2683_s28 }
  0x63   :  { %492 = vrot.lane.b32.xlu0 %v746_v48, %s2677_s19 }
  0x65   :  { %401 = vrot.lane.b32.xlu1 %v362_v10, %s2676_s18 }
  0x67   :  { %496 = vrot.lane.b32.xlu0 %v458_v12, %s2677_s19 }
  0x69   :  { %494 = vrot.lane.b32.xlu1 %v1038_v8, %s2677_s19 }
  0x6b   :  { %589 = vrot.lane.b32.xlu0 %v2963_v11, %s2678_s17  ;;  %v3161_v11 = vld [vmem:[#allocation2 + $0x110] sm:$0xff] }
  0x6c   :  { %354 = vst.msk [vmem:[#allocation4 + $0x78] sm:$0xff] %vm27_vm0, %v3161_v11  ;;  %vm1493_vm0 = vcmask 130112  }
  0x6d   :  { %498 = vrot.lane.b32.xlu1 %v459_v20, %s2677_s19 }
  0x6f   :  { %593 = vrot.lane.b32.xlu0 %v2975_v15, %s2678_s17 }
  0x71   :  { %591 = vrot.lane.b32.xlu1 %v2980_v18, %s2678_s17 }
  0x73   :  { %686 = vrot.lane.b32.xlu0 %v941_v53, %s2679_s11 }
  0x75   :  { %595 = vrot.lane.b32.xlu1 %v556_v24, %s2678_s17 }
  0x77   :  { %690 = vrot.lane.b32.xlu0 %v362_v10, %s2679_s11 }
  0x79   :  { %688 = vrot.lane.b32.xlu1 %v361_v4, %s2679_s11 }
  0x7b   :  { %783 = vrot.lane.b32.xlu0 %v1038_v8, %s2680_s12 }
  0x7d   :  { %692 = vrot.lane.b32.xlu1 %v653_v25, %s2679_s11 }
  0x7f   :  { %787 = vrot.lane.b32.xlu0 %v459_v20, %s2680_s12 }
  0x81   :  { %785 = vrot.lane.b32.xlu1 %v458_v12, %s2680_s12 }
  0x83   :  { %881 = vrot.lane.b32.xlu0 %v2980_v18, %s2681_s24 }
  0x85   :  { %789 = vrot.lane.b32.xlu1 %v750_v26, %s2680_s12  ;;  %v388_v28 = vpop.permute.xlu0 %387 }
  0x86   :  { %436 = vst.msk [vmem:[#allocation4] sm:$0xff] %vm435_vm4, %v388_v28 }
  0x87   :  { %885 = vrot.lane.b32.xlu0 %v556_v24, %s2681_s24 }
  0x89   :  { %883 = vrot.lane.b32.xlu1 %v2975_v15, %s2681_s24 }
  0x8b   :  { %978 = vrot.lane.b32.xlu0 %v361_v4, %s2682_s25 }
  0x8d   :  { %887 = vrot.lane.b32.xlu1 %v848_v27, %s2681_s24  ;;  %v3295_v27 = vld [vmem:[#allocation2 + $0x101] sm:$0xff] }
  0x8f   :  { %982 = vrot.lane.b32.xlu0 %v653_v25, %s2682_s25  ;;  %v485_v18 = vpop.permute.xlu0 %484 }
  0x90   :  { %533 = vst.msk [vmem:[#allocation4] sm:$0xff] %vm532_vm5, %v485_v18 }
  0x91   :  { %980 = vrot.lane.b32.xlu1 %v362_v10, %s2682_s25 }
  0x93   :  { %v392_v15 = vpop.permute.xlu1 %391  ;;  %1075 = vrot.lane.b32.xlu0 %v458_v12, %s2683_s28 }
  0x94   :  { %438 = vst.msk [vmem:[#allocation4 + $0x10] sm:$0xff] %vm435_vm4, %v392_v15  ;;  %v3305_v15 = vld [vmem:[#allocation2 + $0x111] sm:$0xff] }
  0x95   :  { %984 = vrot.lane.b32.xlu1 %v945_v30, %s2682_s25  ;;  %v390_v32 = vpop.permute.xlu0 %389 }
  0x96   :  { %437 = vst.msk [vmem:[#allocation4 + $0x8] sm:$0xff] %vm435_vm4, %v390_v32  ;;  %v3311_v32 = vld [vmem:[#allocation2 + $0x102] sm:$0xff] }
  0x97   :  { %v394_v33 = vpop.permute.xlu1 %393  ;;  %403 = vrot.lane.b32.xlu0 %v363_v31, %s2676_s18 }
  0x98   :  { %439 = vst.msk [vmem:[#allocation4 + $0x18] sm:$0xff] %vm435_vm4, %v394_v33 }
  0x99   :  { %1077 = vrot.lane.b32.xlu1 %v459_v20, %s2683_s28  ;;  %v489_v34 = vpop.permute.xlu0 %488 }
  0x9a   :  { %535 = vst.msk [vmem:[#allocation4 + $0x10] sm:$0xff] %vm532_vm5, %v489_v34 }
  0x9b   :  { %v487_v36 = vpop.permute.xlu1 %486  ;;  %1079 = vrot.lane.b32.xlu0 %v750_v26, %s2683_s28 }
  0x9c   :  { %534 = vst.msk [vmem:[#allocation4 + $0x8] sm:$0xff] %vm532_vm5, %v487_v36  ;;  %v3320_v36 = vld [vmem:[#allocation2 + $0x112] sm:$0xff] }
  0x9d   :  { %405 = vrot.lane.b32.xlu1 %v364_v35, %s2676_s18  ;;  %v582_v41 = vpop.permute.xlu0 %581 }
  0x9e   :  { %630 = vst.msk [vmem:[#allocation4] sm:$0xff] %vm629_vm6, %v582_v41 }
  0x9f   :  { %v491_v44 = vpop.permute.xlu1 %490  ;;  %407 = vrot.lane.b32.xlu0 %v3195_v38, %s2676_s18 }
  0xa0   :  { %536 = vst.msk [vmem:[#allocation4 + $0x18] sm:$0xff] %vm532_vm5, %v491_v44 }
  0xa1   :  { %1081 = vrot.lane.b32.xlu1 %v1042_v43, %s2683_s28  ;;  %v586_v46 = vpop.permute.xlu0 %585 }
  0xa2   :  { %632 = vst.msk [vmem:[#allocation4 + $0x10] sm:$0xff] %vm629_vm6, %v586_v46 }
  0xa3   :  { %v584_v48 = vpop.permute.xlu1 %583  ;;  %500 = vrot.lane.b32.xlu0 %v460_v45, %s2677_s19  ;;  %v564_v45 = vld [vmem:[#allocation2 + $0x120] sm:$0xff] }
  0xa4   :  { %631 = vst.msk [vmem:[#allocation4 + $0x8] sm:$0xff] %vm629_vm6, %v584_v48 }
  0xa5   :  { %409 = vrot.lane.b32.xlu1 %v3203_v47, %s2676_s18  ;;  %v679_v50 = vpop.permute.xlu0 %678 }
  0xa6   :  { %727 = vst.msk [vmem:[#allocation4] sm:$0xff] %vm726_vm7, %v679_v50 }
  0xa7   :  { %v588_v53 = vpop.permute.xlu1 %587  ;;  %504 = vrot.lane.b32.xlu0 %v3208_v49, %s2677_s19 }
  0xa8   :  { %633 = vst.msk [vmem:[#allocation4 + $0x18] sm:$0xff] %vm629_vm6, %v588_v53 }
  0xa9   :  { %502 = vrot.lane.b32.xlu1 %v461_v52, %s2677_s19  ;;  %v683_v54 = vpop.permute.xlu0 %682 }
  0xaa   :  { %729 = vst.msk [vmem:[#allocation4 + $0x10] sm:$0xff] %vm726_vm7, %v683_v54 }
  0xab   :  { %v681_v56 = vpop.permute.xlu1 %680  ;;  %597 = vrot.lane.b32.xlu0 %v3026_v37, %s2678_s17 }
  0xac   :  { %728 = vst.msk [vmem:[#allocation4 + $0x8] sm:$0xff] %vm726_vm7, %v681_v56 }
  0xad   :  { %506 = vrot.lane.b32.xlu1 %v3217_v55, %s2677_s19  ;;  %v776_v57 = vpop.permute.xlu0 %775 }
  0xae   :  { %824 = vst.msk [vmem:[#allocation4] sm:$0xff] %vm823_vm8, %v776_v57 }
  0xaf   :  { %v685_v58 = vpop.permute.xlu1 %684  ;;  %601 = vrot.lane.b32.xlu0 %v3034_v39, %s2678_s17 }
  0xb0   :  { %730 = vst.msk [vmem:[#allocation4 + $0x18] sm:$0xff] %vm726_vm7, %v685_v58 }
  0xb1   :  { %599 = vrot.lane.b32.xlu1 %v3040_v40, %s2678_s17  ;;  %v780_v59 = vpop.permute.xlu0 %779 }
  0xb2   :  { %826 = vst.msk [vmem:[#allocation4 + $0x10] sm:$0xff] %vm823_vm8, %v780_v59 }
  0xb3   :  { %v778_v37 = vpop.permute.xlu1 %777  ;;  %694 = vrot.lane.b32.xlu0 %v364_v35, %s2679_s11 }
  0xb4   :  { %825 = vst.msk [vmem:[#allocation4 + $0x8] sm:$0xff] %vm823_vm8, %v778_v37  ;;  %v856_v37 = vld [vmem:[#allocation2 + $0x130] sm:$0xff] }
  0xb5   :  { %603 = vrot.lane.b32.xlu1 %v3046_v42, %s2678_s17  ;;  %v874_v60 = vpop.permute.xlu0 %873 }
  0xb6   :  { %922 = vst.msk [vmem:[#allocation4] sm:$0xff] %vm921_vm9, %v874_v60 }
  0xb7   :  { %v782_v61 = vpop.permute.xlu1 %781  ;;  %698 = vrot.lane.b32.xlu0 %v3203_v47, %s2679_s11 }
  0xb8   :  { %827 = vst.msk [vmem:[#allocation4 + $0x18] sm:$0xff] %vm823_vm8, %v782_v61 }
  0xb9   :  { %696 = vrot.lane.b32.xlu1 %v3195_v38, %s2679_s11  ;;  %v878_v62 = vpop.permute.xlu0 %877 }
  0xba   :  { %924 = vst.msk [vmem:[#allocation4 + $0x10] sm:$0xff] %vm921_vm9, %v878_v62 }
  0xbb   :  { %v876_v1 = vpop.permute.xlu1 %875  ;;  %791 = vrot.lane.b32.xlu0 %v461_v52, %s2680_s12 }
  0xbc   :  { %923 = vst.msk [vmem:[#allocation4 + $0x8] sm:$0xff] %vm921_vm9, %v876_v1 }
  0xbd   :  { %700 = vrot.lane.b32.xlu1 %v657_v63, %s2679_s11  ;;  %v971_v2 = vpop.permute.xlu0 %970 }
  0xbe   :  { %1019 = vst.msk [vmem:[#allocation4] sm:$0xff] %vm1018_vm10, %v971_v2 }
  0xbf   :  { %v880_v3 = vpop.permute.xlu1 %879  ;;  %795 = vrot.lane.b32.xlu0 %v3217_v55, %s2680_s12 }
  0xc0   :  { %925 = vst.msk [vmem:[#allocation4 + $0x18] sm:$0xff] %vm921_vm9, %v880_v3 }
  0xc1   :  { %793 = vrot.lane.b32.xlu1 %v3208_v49, %s2680_s12  ;;  %v975_v4 = vpop.permute.xlu0 %974 }
  0xc2   :  { %1021 = vst.msk [vmem:[#allocation4 + $0x10] sm:$0xff] %vm1018_vm10, %v975_v4 }
  0xc3   :  { %v973_v6 = vpop.permute.xlu1 %972  ;;  %889 = vrot.lane.b32.xlu0 %v3040_v40, %s2681_s24 }
  0xc4   :  { %1020 = vst.msk [vmem:[#allocation4 + $0x8] sm:$0xff] %vm1018_vm10, %v973_v6 }
  0xc5   :  { %797 = vrot.lane.b32.xlu1 %v3252_v5, %s2680_s12  ;;  %v1068_v7 = vpop.permute.xlu0 %1067 }
  0xc6   :  { %1116 = vst.msk [vmem:[#allocation4] sm:$0xff] %vm1115_vm11, %v1068_v7 }
  0xc7   :  { %v977_v8 = vpop.permute.xlu1 %976  ;;  %893 = vrot.lane.b32.xlu0 %v3046_v42, %s2681_s24 }
  0xc8   :  { %1022 = vst.msk [vmem:[#allocation4 + $0x18] sm:$0xff] %vm1018_vm10, %v977_v8  ;;  %v1050_v8 = vld [vmem:[#allocation2 + $0x132] sm:$0xff] }
  0xc9   :  { %891 = vrot.lane.b32.xlu1 %v3034_v39, %s2681_s24  ;;  %v396_v9 = vpop.permute.xlu0 %395 }
  0xca   :  { %440 = vst.msk [vmem:[#allocation4 + $0x20] sm:$0xff] %vm435_vm4, %v396_v9 }
  0xcb   :  { %v1070_v40 = vpop.permute.xlu1 %1069  ;;  %986 = vrot.lane.b32.xlu0 %v3195_v38, %s2682_s25 }
  0xcc   :  { %1117 = vst.msk [vmem:[#allocation4 + $0x8] sm:$0xff] %vm1115_vm11, %v1070_v40 }
  0xcd   :  { %895 = vrot.lane.b32.xlu1 %v3080_v51, %s2681_s24  ;;  %v1072_v10 = vpop.permute.xlu0 %1071  ;;  %v1132_v39 = vld [vmem:[#allocation4] sm:$0xff] }
  0xce   :  { %1118 = vst.msk [vmem:[#allocation4 + $0x10] sm:$0xff] %vm1115_vm11, %v1072_v10 }
  0xcf   :  { %v398_v42 = vpop.permute.xlu1 %397  ;;  %990 = vrot.lane.b32.xlu0 %v657_v63, %s2682_s25 }
  0xd0   :  { %441 = vst.msk [vmem:[#allocation4 + $0x28] sm:$0xff] %vm435_vm4, %v398_v42 }
  0xd1   :  { %988 = vrot.lane.b32.xlu1 %v3203_v47, %s2682_s25  ;;  %v400_v12 = vpop.permute.xlu0 %399 }
  0xd2   :  { %442 = vst.msk [vmem:[#allocation4 + $0x30] sm:$0xff] %vm435_vm4, %v400_v12 }
  0xd3   :  { %v1074_v14 = vpop.permute.xlu1 %1073  ;;  %v1133_v16 = vld [vmem:[#allocation4 + $0x8] sm:$0xff]  ;;  %1083 = vrot.lane.b32.xlu0 %v3208_v49, %s2683_s28 }
  0xd4   :  { %1119 = vst.msk [vmem:[#allocation4 + $0x18] sm:$0xff] %vm1115_vm11, %v1074_v14  ;;  %v1148_v17 = vpack.c.bf16 %v1133_v16, %v1132_v39  ;;  %v661_v49 = vld [vmem:[#allocation2 + $0x121] sm:$0xff] }
  0xd5   :  { %992 = vrot.lane.b32.xlu1 %v3277_v13, %s2682_s25  ;;  %v493_v19 = vpop.permute.xlu0 %492  ;;  %v1134_v21 = vld [vmem:[#allocation4 + $0x10] sm:$0xff] }
  0xd6   :  { %2610 = vmatprep.mubr.msk.bf16.mxu0 %vm1176_vm12, %v1148_v17  ;;  %537 = vst.msk [vmem:[#allocation4 + $0x20] sm:$0xff] %vm532_vm5, %v493_v19 }
  0xd7   :  { %v402_v20 = vpop.permute.xlu1 %401  ;;  %411 = vrot.lane.b32.xlu0 %v657_v63, %s2676_s18  ;;  %v953_v63 = vld [vmem:[#allocation2 + $0x131] sm:$0xff] }
  0xd8   :  { %443 = vst.msk [vmem:[#allocation4 + $0x38] sm:$0xff] %vm435_vm4, %v402_v20 }
  0xd9   :  { %1085 = vrot.lane.b32.xlu1 %v3217_v55, %s2683_s28  ;;  %v497_v22 = vpop.permute.xlu0 %496  ;;  %v758_v55 = vld [vmem:[#allocation2 + $0x122] sm:$0xff] }
  0xda   :  { %539 = vst.msk [vmem:[#allocation4 + $0x30] sm:$0xff] %vm532_vm5, %v497_v22 }
  0xdb   :  { %v495_v24 = vpop.permute.xlu1 %494  ;;  %v1135_v25 = vld [vmem:[#allocation4 + $0x18] sm:$0xff]  ;;  %1087 = vrot.lane.b32.xlu0 %v3252_v5, %s2683_s28 }
  0xdc   :  { %538 = vst.msk [vmem:[#allocation4 + $0x28] sm:$0xff] %vm532_vm5, %v495_v24  ;;  %v1149_v26 = vpack.c.bf16 %v1135_v25, %v1134_v21  ;;  %v1906_v25 = vld [vmem:[#allocation3 + $0x90] sm:$0xff] }
  0xdd   :  { %413 = vrot.lane.b32.xlu1 %v3277_v13, %s2676_s18  ;;  %v590_v28 = vpop.permute.xlu0 %589 }
  0xde   :  { %2611 = vmatmul.mubr.msk.bf16.vlgmr.msra.gmra.mrb[0].mxu0 %vm1176_vm12, %v1149_v26  ;;  %634 = vst.msk [vmem:[#allocation4 + $0x20] sm:$0xff] %vm629_vm6, %v590_v28  ;;  %v1413_v26 = vld [vmem:[#allocation3 + $0x1] sm:$0xff]  ;;  %v2003_v28 = vld [vmem:[#allocation3 + $0x91] sm:$0xff] }
  0xdf   :  { %v499_v18 = vpop.permute.xlu1 %498  ;;  %415 = vrot.lane.b32.xlu0 %v3295_v27, %s2676_s18 }
  0xe0   :  { %540 = vst.msk [vmem:[#allocation4 + $0x38] sm:$0xff] %vm532_vm5, %v499_v18 }
  0xe1   :  { %1089 = vrot.lane.b32.xlu1 %v1046_v29, %s2683_s28  ;;  %v594_v30 = vpop.permute.xlu0 %593 }
  0xe2   :  { %636 = vst.msk [vmem:[#allocation4 + $0x30] sm:$0xff] %vm629_vm6, %v594_v30 }
  0xe3   :  { %v592_v31 = vpop.permute.xlu1 %591  ;;  %508 = vrot.lane.b32.xlu0 %v3252_v5, %s2677_s19 }
  0xe4   :  { %635 = vst.msk [vmem:[#allocation4 + $0x28] sm:$0xff] %vm629_vm6, %v592_v31  ;;  %v1421_v31 = vld [vmem:[#allocation3 + $0xa1] sm:$0xff] }
  0xe5   :  { %417 = vrot.lane.b32.xlu1 %v3305_v15, %s2676_s18  ;;  %v687_v33 = vpop.permute.xlu0 %686  ;;  %s2685_s18 = smov 56  }
  0xe6   :  { %731 = vst.msk [vmem:[#allocation4 + $0x20] sm:$0xff] %vm726_vm7, %v687_v33 }
  0xe7   :  { %v596_v34 = vpop.permute.xlu1 %595  ;;  %512 = vrot.lane.b32.xlu0 %v3311_v32, %s2677_s19 }
  0xe8   :  { %637 = vst.msk [vmem:[#allocation4 + $0x38] sm:$0xff] %vm629_vm6, %v596_v34 }
  0xe9   :  { %510 = vrot.lane.b32.xlu1 %v1046_v29, %s2677_s19  ;;  %v691_v35 = vpop.permute.xlu0 %690 }
  0xea   :  { %733 = vst.msk [vmem:[#allocation4 + $0x30] sm:$0xff] %vm726_vm7, %v691_v35 }
  0xeb   :  { %v689_v38 = vpop.permute.xlu1 %688  ;;  %605 = vrot.lane.b32.xlu0 %v3080_v51, %s2678_s17 }
  0xec   :  { %732 = vst.msk [vmem:[#allocation4 + $0x28] sm:$0xff] %vm726_vm7, %v689_v38 }
  0xed   :  { %514 = vrot.lane.b32.xlu1 %v3320_v36, %s2677_s19  ;;  %v784_v41 = vpop.permute.xlu0 %783 }
  0xee   :  { %828 = vst.msk [vmem:[#allocation4 + $0x20] sm:$0xff] %vm823_vm8, %v784_v41 }
  0xef   :  { %v693_v43 = vpop.permute.xlu1 %692  ;;  %609 = vrot.lane.b32.xlu0 %v3161_v11, %s2678_s17 }
  0xf0   :  { %734 = vst.msk [vmem:[#allocation4 + $0x38] sm:$0xff] %vm726_vm7, %v693_v43 }
  0xf1   :  { %607 = vrot.lane.b32.xlu1 %v3154_v23, %s2678_s17  ;;  %v788_v44 = vpop.permute.xlu0 %787 }
  0xf2   :  { %830 = vst.msk [vmem:[#allocation4 + $0x30] sm:$0xff] %vm823_vm8, %v788_v44 }
  0xf3   :  { %v786_v51 = vpop.permute.xlu1 %785  ;;  %702 = vrot.lane.b32.xlu0 %v3277_v13, %s2679_s11 }
  0xf4   :  { %829 = vst.msk [vmem:[#allocation4 + $0x28] sm:$0xff] %vm823_vm8, %v786_v51 }
  0xf5   :  { %611 = vrot.lane.b32.xlu1 %v564_v45, %s2678_s17  ;;  %v882_v46 = vpop.permute.xlu0 %881  ;;  %s2686_s17 = smov 64  }
  0xf6   :  { %926 = vst.msk [vmem:[#allocation4 + $0x20] sm:$0xff] %vm921_vm9, %v882_v46 }
  0xf7   :  { %v790_v47 = vpop.permute.xlu1 %789  ;;  %706 = vrot.lane.b32.xlu0 %v3305_v15, %s2679_s11 }
  0xf8   :  { %831 = vst.msk [vmem:[#allocation4 + $0x38] sm:$0xff] %vm823_vm8, %v790_v47 }
  0xf9   :  { %704 = vrot.lane.b32.xlu1 %v3295_v27, %s2679_s11  ;;  %v886_v48 = vpop.permute.xlu0 %885 }
  0xfa   :  { %928 = vst.msk [vmem:[#allocation4 + $0x30] sm:$0xff] %vm921_vm9, %v886_v48 }
  0xfb   :  { %v884_v50 = vpop.permute.xlu1 %883  ;;  %799 = vrot.lane.b32.xlu0 %v1046_v29, %s2680_s12  ;;  %v1510_v29 = vld [vmem:[#allocation3 + $0x2] sm:$0xff] }
  0xfc   :  { %927 = vst.msk [vmem:[#allocation4 + $0x28] sm:$0xff] %vm921_vm9, %v884_v50 }
  0xfd   :  { %708 = vrot.lane.b32.xlu1 %v661_v49, %s2679_s11  ;;  %v979_v52 = vpop.permute.xlu0 %978 }
  0xfe   :  { %1023 = vst.msk [vmem:[#allocation4 + $0x20] sm:$0xff] %vm1018_vm10, %v979_v52 }
  0xff   :  { %v888_v53 = vpop.permute.xlu1 %887  ;;  %803 = vrot.lane.b32.xlu0 %v3320_v36, %s2680_s12 }
 0x100   :  { %929 = vst.msk [vmem:[#allocation4 + $0x38] sm:$0xff] %vm921_vm9, %v888_v53 }
 0x101   :  { %801 = vrot.lane.b32.xlu1 %v3311_v32, %s2680_s12  ;;  %v983_v54 = vpop.permute.xlu0 %982 }
 0x102   :  { %1025 = vst.msk [vmem:[#allocation4 + $0x30] sm:$0xff] %vm1018_vm10, %v983_v54 }
 0x103   :  { %v981_v56 = vpop.permute.xlu1 %980  ;;  %897 = vrot.lane.b32.xlu0 %v3154_v23, %s2681_s24 }
 0x104   :  { %1024 = vst.msk [vmem:[#allocation4 + $0x28] sm:$0xff] %vm1018_vm10, %v981_v56 }
 0x105   :  { %805 = vrot.lane.b32.xlu1 %v758_v55, %s2680_s12  ;;  %v1076_v57 = vpop.permute.xlu0 %1075 }
 0x106   :  { %1120 = vst.msk [vmem:[#allocation4 + $0x20] sm:$0xff] %vm1115_vm11, %v1076_v57 }
 0x107   :  { %v985_v58 = vpop.permute.xlu1 %984  ;;  %901 = vrot.lane.b32.xlu0 %v564_v45, %s2681_s24 }
 0x108   :  { %1026 = vst.msk [vmem:[#allocation4 + $0x38] sm:$0xff] %vm1018_vm10, %v985_v58 }
 0x109   :  { %899 = vrot.lane.b32.xlu1 %v3161_v11, %s2681_s24  ;;  %v404_v59 = vpop.permute.xlu0 %403 }
 0x10a   :  { %444 = vst.msk [vmem:[#allocation4 + $0x40] sm:$0xff] %vm435_vm4, %v404_v59 }
 0x10b   :  { %v1078_v23 = vpop.permute.xlu1 %1077  ;;  %994 = vrot.lane.b32.xlu0 %v3295_v27, %s2682_s25 }
 0x10c   :  { %1121 = vst.msk [vmem:[#allocation4 + $0x28] sm:$0xff] %vm1115_vm11, %v1078_v23 }
 0x10d   :  { %903 = vrot.lane.b32.xlu1 %v856_v37, %s2681_s24  ;;  %v1080_v60 = vpop.permute.xlu0 %1079  ;;  %v1136_v11 = vld [vmem:[#allocation4 + $0x20] sm:$0xff] }
 0x10e   :  { %1122 = vst.msk [vmem:[#allocation4 + $0x30] sm:$0xff] %vm1115_vm11, %v1080_v60 }
 0x10f   :  { %v406_v61 = vpop.permute.xlu1 %405  ;;  %998 = vrot.lane.b32.xlu0 %v661_v49, %s2682_s25 }
 0x110   :  { %445 = vst.msk [vmem:[#allocation4 + $0x48] sm:$0xff] %vm435_vm4, %v406_v61 }
 0x111   :  { %996 = vrot.lane.b32.xlu1 %v3305_v15, %s2682_s25  ;;  %v408_v62 = vpop.permute.xlu0 %407  ;;  %v2100_v15 = vld [vmem:[#allocation3 + $0x92] sm:$0xff] }
 0x112   :  { %446 = vst.msk [vmem:[#allocation4 + $0x50] sm:$0xff] %vm435_vm4, %v408_v62 }
 0x113   :  { %v1082_v1 = vpop.permute.xlu1 %1081  ;;  %v1137_v2 = vld [vmem:[#allocation4 + $0x28] sm:$0xff]  ;;  %1091 = vrot.lane.b32.xlu0 %v3311_v32, %s2683_s28 }
 0x114   :  { %1123 = vst.msk [vmem:[#allocation4 + $0x38] sm:$0xff] %vm1115_vm11, %v1082_v1  ;;  %v1150_v3 = vpack.c.bf16 %v1137_v2, %v1136_v11 }
 0x115   :  { %1000 = vrot.lane.b32.xlu1 %v953_v63, %s2682_s25  ;;  %v501_v4 = vpop.permute.xlu0 %500  ;;  %v1138_v6 = vld [vmem:[#allocation4 + $0x30] sm:$0xff] }
 0x116   :  { %2614 = vmatprep.mubr.msk.bf16.mxu0 %vm1176_vm12, %v1150_v3  ;;  %541 = vst.msk [vmem:[#allocation4 + $0x40] sm:$0xff] %vm532_vm5, %v501_v4 }
 0x117   :  { %v410_v5 = vpop.permute.xlu1 %409  ;;  %1095 = vrot.lane.b32.xlu0 %v758_v55, %s2683_s28 }
 0x118   :  { %447 = vst.msk [vmem:[#allocation4 + $0x58] sm:$0xff] %vm435_vm4, %v410_v5 }
 0x119   :  { %1093 = vrot.lane.b32.xlu1 %v3320_v36, %s2683_s28  ;;  %v505_v7 = vpop.permute.xlu0 %504 }
 0x11a   :  { %543 = vst.msk [vmem:[#allocation4 + $0x50] sm:$0xff] %vm532_vm5, %v505_v7 }
 0x11b   :  { %v503_v9 = vpop.permute.xlu1 %502  ;;  %v1139_v40 = vld [vmem:[#allocation4 + $0x38] sm:$0xff]  ;;  %1445 = vrot.lane.b32.xlu0 %v1413_v26, %s2677_s19 }
 0x11c   :  { %542 = vst.msk [vmem:[#allocation4 + $0x48] sm:$0xff] %vm532_vm5, %v503_v9  ;;  %v1151_v10 = vpack.c.bf16 %v1139_v40, %v1138_v6 }
 0x11d   :  { %1097 = vrot.lane.b32.xlu1 %v1050_v8, %s2683_s28  ;;  %v598_v42 = vpop.permute.xlu0 %597 }
 0x11e   :  { %2615 = vmatmul.mubr.msk.bf16.gmra.mrb[4].mxu0 %vm1176_vm12, %v1151_v10  ;;  %638 = vst.msk [vmem:[#allocation4 + $0x40] sm:$0xff] %vm629_vm6, %v598_v42 }
 0x11f   :  { %v507_v39 = vpop.permute.xlu1 %506  ;;  %1542 = vrot.lane.b32.xlu0 %v1510_v29, %s2679_s11 }
 0x120   :  { %544 = vst.msk [vmem:[#allocation4 + $0x58] sm:$0xff] %vm532_vm5, %v507_v39 }
 0x121   :  { %v602_v12 = vpop.permute.xlu0 %601  ;;  %1945 = vrot.lane.b32.xlu1 %v1906_v25, %s2684_s0 }
 0x122   :  { %640 = vst.msk [vmem:[#allocation4 + $0x50] sm:$0xff] %vm629_vm6, %v602_v12 }
 0x123   :  { %v600_v13 = vpop.permute.xlu1 %599  ;;  %1461 = vrot.lane.b32.xlu0 %v1421_v31, %s2677_s19 }
 0x124   :  { %639 = vst.msk [vmem:[#allocation4 + $0x48] sm:$0xff] %vm629_vm6, %v600_v13 }
 0x125   :  { %v695_v14 = vpop.permute.xlu0 %694  ;;  %2042 = vrot.lane.b32.xlu1 %v2003_v28, %s2685_s18  ;;  %v3560_v28 = vld [vmem:[%s4128_s2] ss:$0 sm:$0xff]  ;;  %s2687_s2 = smov 40  }
 0x126   :  { %735 = vst.msk [vmem:[#allocation4 + $0x40] sm:$0xff] %vm726_vm7, %v695_v14 }
 0x127   :  { %v604_v16 = vpop.permute.xlu1 %603 }
 0x128   :  { %641 = vst.msk [vmem:[#allocation4 + $0x58] sm:$0xff] %vm629_vm6, %v604_v16 }
 0x129   :  { %v699_v17 = vpop.permute.xlu0 %698  ;;  %2139 = vrot.lane.b32.xlu1 %v2100_v15, %s2686_s17 }
 0x12a   :  { %737 = vst.msk [vmem:[#allocation4 + $0x50] sm:$0xff] %vm726_vm7, %v699_v17 }
 0x12b   :  { %v697_v19 = vpop.permute.xlu1 %696 }
 0x12c   :  { %736 = vst.msk [vmem:[#allocation4 + $0x48] sm:$0xff] %vm726_vm7, %v697_v19 }
 0x12d   :  { %v792_v20 = vpop.permute.xlu0 %791 }
 0x12e   :  { %832 = vst.msk [vmem:[#allocation4 + $0x40] sm:$0xff] %vm823_vm8, %v792_v20 }
 0x12f   :  { %v701_v21 = vpop.permute.xlu1 %700 }
 0x130   :  { %738 = vst.msk [vmem:[#allocation4 + $0x58] sm:$0xff] %vm726_vm7, %v701_v21 }
 0x131   :  { %v796_v22 = vpop.permute.xlu0 %795 }
 0x132   :  { %834 = vst.msk [vmem:[#allocation4 + $0x50] sm:$0xff] %vm823_vm8, %v796_v22 }
 0x133   :  { %v794_v24 = vpop.permute.xlu1 %793 }
 0x134   :  { %833 = vst.msk [vmem:[#allocation4 + $0x48] sm:$0xff] %vm823_vm8, %v794_v24  ;;  %v1381_v24 = vld [vmem:[#allocation3] sm:$0xff] }
 0x135   :  { %v890_v27 = vpop.permute.xlu0 %889  ;;  %1397 = vst.msk [vmem:[#allocation5] sm:$0xff] %vm79_vm13, %v1381_v24 }
 0x136   :  { %930 = vst.msk [vmem:[#allocation4 + $0x40] sm:$0xff] %vm921_vm9, %v890_v27  ;;  %v1389_v27 = vld [vmem:[#allocation3 + $0xa0] sm:$0xff] }
 0x137   :  { %v798_v0 = vpop.permute.xlu1 %797  ;;  %1405 = vst.msk [vmem:[#allocation5 + $0x40] sm:$0xff] %vm79_vm13, %v1389_v27 }
 0x138   :  { %835 = vst.msk [vmem:[#allocation4 + $0x58] sm:$0xff] %vm823_vm8, %v798_v0 }
 0x139   :  { %v894_v18 = vpop.permute.xlu0 %893 }
 0x13a   :  { %932 = vst.msk [vmem:[#allocation4 + $0x50] sm:$0xff] %vm921_vm9, %v894_v18  ;;  %v3566_v18 = vld [vmem:[%s4129_s3] ss:$0 sm:$0xff] }
 0x13b   :  { %v892_v30 = vpop.permute.xlu1 %891 }
 0x13c   :  { %931 = vst.msk [vmem:[#allocation4 + $0x48] sm:$0xff] %vm921_vm9, %v892_v30 }
 0x13d   :  { %v987_v32 = vpop.permute.xlu0 %986 }
 0x13e   :  { %1027 = vst.msk [vmem:[#allocation4 + $0x40] sm:$0xff] %vm1018_vm10, %v987_v32 }
 0x13f   :  { %v896_v33 = vpop.permute.xlu1 %895 }
 0x140   :  { %933 = vst.msk [vmem:[#allocation4 + $0x58] sm:$0xff] %vm921_vm9, %v896_v33 }
 0x141   :  { %v991_v34 = vpop.permute.xlu0 %990 }
 0x142   :  { %1029 = vst.msk [vmem:[#allocation4 + $0x50] sm:$0xff] %vm1018_vm10, %v991_v34 }
 0x143   :  { %v989_v35 = vpop.permute.xlu1 %988 }
 0x144   :  { %1028 = vst.msk [vmem:[#allocation4 + $0x48] sm:$0xff] %vm1018_vm10, %v989_v35 }
 0x145   :  { %v1084_v36 = vpop.permute.xlu0 %1083 }
 0x146   :  { %1124 = vst.msk [vmem:[#allocation4 + $0x40] sm:$0xff] %vm1115_vm11, %v1084_v36 }
 0x147   :  { %v993_v38 = vpop.permute.xlu1 %992 }
 0x148   :  { %1030 = vst.msk [vmem:[#allocation4 + $0x58] sm:$0xff] %vm1018_vm10, %v993_v38 }
 0x149   :  { %v412_v41 = vpop.permute.xlu0 %411 }
 0x14a   :  { %448 = vst.msk [vmem:[#allocation4 + $0x60] sm:$0xff] %vm435_vm4, %v412_v41 }
 0x14b   :  { %v1086_v43 = vpop.permute.xlu1 %1085 }
 0x14c   :  { %1125 = vst.msk [vmem:[#allocation4 + $0x48] sm:$0xff] %vm1115_vm11, %v1086_v43 }
 0x14d   :  { %v1088_v44 = vpop.permute.xlu0 %1087  ;;  %v1140_v51 = vld [vmem:[#allocation4 + $0x40] sm:$0xff] }
 0x14e   :  { %1126 = vst.msk [vmem:[#allocation4 + $0x50] sm:$0xff] %vm1115_vm11, %v1088_v44 }
 0x14f   :  { %v414_v45 = vpop.permute.xlu1 %413 }
 0x150   :  { %449 = vst.msk [vmem:[#allocation4 + $0x68] sm:$0xff] %vm435_vm4, %v414_v45 }
 0x151   :  { %v416_v46 = vpop.permute.xlu0 %415 }
 0x152   :  { %450 = vst.msk [vmem:[#allocation4 + $0x70] sm:$0xff] %vm435_vm4, %v416_v46 }
 0x153   :  { %v1090_v47 = vpop.permute.xlu1 %1089  ;;  %v1141_v48 = vld [vmem:[#allocation4 + $0x48] sm:$0xff] }
 0x154   :  { %1127 = vst.msk [vmem:[#allocation4 + $0x58] sm:$0xff] %vm1115_vm11, %v1090_v47  ;;  %v1152_v49 = vpack.c.bf16 %v1141_v48, %v1140_v51 }
 0x155   :  { %v509_v50 = vpop.permute.xlu0 %508  ;;  %v1142_v53 = vld [vmem:[#allocation4 + $0x50] sm:$0xff] }
 0x156   :  { %2618 = vmatprep.mubr.msk.bf16.mxu0 %vm1176_vm12, %v1152_v49  ;;  %545 = vst.msk [vmem:[#allocation4 + $0x60] sm:$0xff] %vm532_vm5, %v509_v50 }
 0x157   :  { %v418_v52 = vpop.permute.xlu1 %417 }
 0x158   :  { %451 = vst.msk [vmem:[#allocation4 + $0x78] sm:$0xff] %vm435_vm4, %v418_v52  ;;  %vm1784_vm4 = vcmask 326912  }
 0x159   :  { %v513_v54 = vpop.permute.xlu0 %512 }
 0x15a   :  { %547 = vst.msk [vmem:[#allocation4 + $0x70] sm:$0xff] %vm532_vm5, %v513_v54 }
 0x15b   :  { %v511_v55 = vpop.permute.xlu1 %510  ;;  %v1143_v56 = vld [vmem:[#allocation4 + $0x58] sm:$0xff] }
 0x15c   :  { %546 = vst.msk [vmem:[#allocation4 + $0x68] sm:$0xff] %vm532_vm5, %v511_v55  ;;  %v1153_v57 = vpack.c.bf16 %v1143_v56, %v1142_v53 }
 0x15d   :  { %v606_v58 = vpop.permute.xlu0 %605 }
 0x15e   :  { %2619 = vmatmul.mubr.msk.bf16.gmra.mrb[8].mxu0 %vm1176_vm12, %v1153_v57  ;;  %642 = vst.msk [vmem:[#allocation4 + $0x60] sm:$0xff] %vm629_vm6, %v606_v58 }
 0x15f   :  { %v515_v59 = vpop.permute.xlu1 %514 }
 0x160   :  { %548 = vst.msk [vmem:[#allocation4 + $0x78] sm:$0xff] %vm532_vm5, %v515_v59  ;;  %vm1881_vm5 = vcmask 392512  }
 0x161   :  { %v610_v37 = vpop.permute.xlu0 %609 }
 0x162   :  { %644 = vst.msk [vmem:[#allocation4 + $0x70] sm:$0xff] %vm629_vm6, %v610_v37 }
 0x163   :  { %v608_v23 = vpop.permute.xlu1 %607 }
 0x164   :  { %643 = vst.msk [vmem:[#allocation4 + $0x68] sm:$0xff] %vm629_vm6, %v608_v23 }
 0x165   :  { %v703_v60 = vpop.permute.xlu0 %702 }
 0x166   :  { %739 = vst.msk [vmem:[#allocation4 + $0x60] sm:$0xff] %vm726_vm7, %v703_v60 }
 0x167   :  { %v612_v61 = vpop.permute.xlu1 %611 }
 0x168   :  { %645 = vst.msk [vmem:[#allocation4 + $0x78] sm:$0xff] %vm629_vm6, %v612_v61  ;;  %vm1979_vm6 = vcmask 458112  }
 0x169   :  { %v707_v11 = vpop.permute.xlu0 %706 }
 0x16a   :  { %741 = vst.msk [vmem:[#allocation4 + $0x70] sm:$0xff] %vm726_vm7, %v707_v11 }
 0x16b   :  { %v705_v62 = vpop.permute.xlu1 %704 }
 0x16c   :  { %740 = vst.msk [vmem:[#allocation4 + $0x68] sm:$0xff] %vm726_vm7, %v705_v62 }
 0x16d   :  { %v800_v63 = vpop.permute.xlu0 %799 }
 0x16e   :  { %836 = vst.msk [vmem:[#allocation4 + $0x60] sm:$0xff] %vm823_vm8, %v800_v63 }
 0x16f   :  { %v709_v1 = vpop.permute.xlu1 %708 }
 0x170   :  { %742 = vst.msk [vmem:[#allocation4 + $0x78] sm:$0xff] %vm726_vm7, %v709_v1  ;;  %vm2076_vm7 = vcmask 523712  }
 0x171   :  { %v804_v2 = vpop.permute.xlu0 %803 }
 0x172   :  { %838 = vst.msk [vmem:[#allocation4 + $0x70] sm:$0xff] %vm823_vm8, %v804_v2 }
 0x173   :  { %v802_v3 = vpop.permute.xlu1 %801 }
 0x174   :  { %837 = vst.msk [vmem:[#allocation4 + $0x68] sm:$0xff] %vm823_vm8, %v802_v3 }
 0x175   :  { %v898_v4 = vpop.permute.xlu0 %897 }
 0x176   :  { %934 = vst.msk [vmem:[#allocation4 + $0x60] sm:$0xff] %vm921_vm9, %v898_v4 }
 0x177   :  { %v806_v5 = vpop.permute.xlu1 %805 }
 0x178   :  { %839 = vst.msk [vmem:[#allocation4 + $0x78] sm:$0xff] %vm823_vm8, %v806_v5  ;;  %vm2173_vm8 = vcmask 589312  }
 0x179   :  { %v902_v6 = vpop.permute.xlu0 %901 }
 0x17a   :  { %936 = vst.msk [vmem:[#allocation4 + $0x70] sm:$0xff] %vm921_vm9, %v902_v6 }
 0x17b   :  { %v900_v7 = vpop.permute.xlu1 %899 }
 0x17c   :  { %935 = vst.msk [vmem:[#allocation4 + $0x68] sm:$0xff] %vm921_vm9, %v900_v7 }
 0x17d   :  { %v995_v8 = vpop.permute.xlu0 %994 }
 0x17e   :  { %1031 = vst.msk [vmem:[#allocation4 + $0x60] sm:$0xff] %vm1018_vm10, %v995_v8 }
 0x17f   :  { %v904_v9 = vpop.permute.xlu1 %903 }
 0x180   :  { %937 = vst.msk [vmem:[#allocation4 + $0x78] sm:$0xff] %vm921_vm9, %v904_v9  ;;  %vm2250_vm9 = vcmask 588800  }
 0x181   :  { %v999_v40 = vpop.permute.xlu0 %998 }
 0x182   :  { %1033 = vst.msk [vmem:[#allocation4 + $0x70] sm:$0xff] %vm1018_vm10, %v999_v40 }
 0x183   :  { %v997_v10 = vpop.permute.xlu1 %996 }
 0x184   :  { %1032 = vst.msk [vmem:[#allocation4 + $0x68] sm:$0xff] %vm1018_vm10, %v997_v10 }
 0x185   :  { %v1092_v42 = vpop.permute.xlu0 %1091 }
 0x186   :  { %1128 = vst.msk [vmem:[#allocation4 + $0x60] sm:$0xff] %vm1115_vm11, %v1092_v42 }
 0x187   :  { %v1001_v39 = vpop.permute.xlu1 %1000 }
 0x188   :  { %1034 = vst.msk [vmem:[#allocation4 + $0x78] sm:$0xff] %vm1018_vm10, %v1001_v39 }
 0x189   :  { %v1096_v12 = vpop.permute.xlu0 %1095 }
 0x18a   :  { %1130 = vst.msk [vmem:[#allocation4 + $0x70] sm:$0xff] %vm1115_vm11, %v1096_v12 }
 0x18b   :  { %v1094_v13 = vpop.permute.xlu1 %1093 }
 0x18c   :  { %1129 = vst.msk [vmem:[#allocation4 + $0x68] sm:$0xff] %vm1115_vm11, %v1094_v13  ;;  %v2670_v13 = vld [vmem:[%s4130_s4] sm:$0xff]  }
 0x18d   :  { %v1144_v16 = vld [vmem:[#allocation4 + $0x60] sm:$0xff]  ;;  %v1446_v25 = vpop.permute.xlu0 %1445  ;;  %2626 = vmatprep.subr.bf16.mxu1 %v2670_v13 }
 0x18e   :  { %1494 = vst.msk [vmem:[#allocation5] sm:$0xff] %vm1493_vm0, %v1446_v25  ;;  %2627 = vmatpush3.bf16.msra.mxu1 %v2670_v13 }
 0x18f   :  { %v1098_v14 = vpop.permute.xlu1 %1097 }
 0x190   :  { %1131 = vst.msk [vmem:[#allocation4 + $0x78] sm:$0xff] %vm1115_vm11, %v1098_v14  ;;  %v2671_v14 = vld [vmem:[%s4130_s4 + $0x8] sm:$0xff]  }
 0x191   :  { %v1146_v20 = vld [vmem:[#allocation4 + $0x70] sm:$0xff]  ;;  %v1543_v26 = vpop.permute.xlu0 %1542  ;;  %2628 = vmatprep.subr.bf16.mxu1 %v2671_v14 }
 0x192   :  { %1591 = vst.msk [vmem:[#allocation5] sm:$0xff] %vm1590_vm1, %v1543_v26  ;;  %2629 = vmatpush3.bf16.msra.mxu1 %v2671_v14 }
 0x193   :  { %v1145_v17 = vld [vmem:[#allocation4 + $0x68] sm:$0xff]  ;;  %v3664_v27 = vpop.permute.xlu1 %1945 }
 0x194   :  { %v1154_v19 = vpack.c.bf16 %v1145_v17, %v1144_v16  ;;  %v2672_v17 = vld [vmem:[%s4130_s4 + $0x10] sm:$0xff]  }
 0x195   :  { %v1462_v0 = vpop.permute.xlu0 %1461  ;;  %2630 = vmatprep.subr.bf16.mxu1 %v2672_v17 }
 0x196   :  { %2622 = vmatprep.mubr.msk.bf16.mxu0 %vm1176_vm12, %v1154_v19  ;;  %1502 = vst.msk [vmem:[#allocation5 + $0x40] sm:$0xff] %vm1493_vm0, %v1462_v0  ;;  %2631 = vmatpush3.bf16.msra.mxu1 %v2672_v17 }
 0x197   :  { %v1147_v21 = vld [vmem:[#allocation4 + $0x78] sm:$0xff] }
 0x198   :  { %v1155_v22 = vpack.c.bf16 %v1147_v21, %v1146_v20  ;;  %v2673_v20 = vld [vmem:[%s4130_s4 + $0x18] sm:$0xff]  }
 0x199   :  { %2632 = vmatprep.subr.bf16.mxu1 %v2673_v20 }
 0x19a   :  { %2623 = vmatmul.mubr.msk.bf16.gmra.mrb[12].mxu0 %vm1176_vm12, %v1155_v22  ;;  %v2674_v22 = vld [vmem:[%s4130_s4 + $0x20] ss:$0 sps:$4 sm:$0xff]   ;;  %2633 = vmatpush3.bf16.msra.mxu1 %v2673_v20 }
 0x19b   :  { %2653 = vmatprep.subr.msk.bf16.mxu1 %vm2275_vm2, %v2674_v22  ;;  %v2277_v24 = vsel %vm2275_vm2, %v2674_v22, 0 }
 0x19e   :  { %2635 = vmatpush3.bf16.msra.mxu1 %v2277_v24 }
 0x1b1   :  { %v2612_v29 = vpop.f32.mrb[0].mxu0 }
 0x1b2   :  { %v1311_v30 = vmul.f32 %v2612_v29, %v3560_v28  ;;  %v1239_v15 = vpop.f32.mrb[1].mxu0  ;;  %v3668_v29 = vpop.permute.xlu1 %2042 }
 0x1b3   :  { %v1309_v31 = vmul.f32 %v3560_v28, %v1239_v15  ;;  %v2613_v32 = vpop.f32.mrb[2].mxu0 }
 0x1b4   :  { %v1334_v33 = vadd.f32 %v3566_v18, %v1311_v30  ;;  %v1312_v34 = vmul.f32 %v2613_v32, %v3560_v28  ;;  %v1242_v35 = vpop.f32.mrb[3].mxu0 }
 0x1b5   :  { %v1332_v36 = vadd.f32 %v3566_v18, %v1309_v31  ;;  %v1310_v38 = vmul.f32 %v3560_v28, %v1242_v35 }
 0x1b6   :  { %v1350_v41 = vmax.f32 %v1334_v33, 0.0  ;;  %v1335_v43 = vadd.f32 %v3566_v18, %v1312_v34  ;;  %v3675_v15 = vpop.permute.xlu1 %2139 }
 0x1b7   :  { %v1348_v44 = vmax.f32 %v1332_v36, 0.0  ;;  %v1333_v45 = vadd.f32 %v3566_v18, %v1310_v38 }
 0x1b8   :  { %1367 = vst.msk [vmem:[#allocation3 + $0x31] sm:$0xff] %vm79_vm13, %v1350_v41  ;;  %v1351_v51 = vmax.f32 %v1335_v43, 0.0 }
 0x1b9   :  { %1365 = vst.msk [vmem:[#allocation3 + $0x11] sm:$0xff] %vm79_vm13, %v1348_v44  ;;  %v1349_v46 = vmax.f32 %v1333_v45, 0.0  ;;  %v1518_v45 = vld [vmem:[#allocation3 + $0xa2] sm:$0xff] }
 0x1ba   :  { %1368 = vst.msk [vmem:[#allocation3 + $0x41] sm:$0xff] %vm79_vm13, %v1351_v51 }
 0x1bb   :  { %1366 = vst.msk [vmem:[#allocation3 + $0x21] sm:$0xff] %vm79_vm13, %v1349_v46 }
 0x1bf   :  { %v1609_v47 = vld [vmem:[#allocation3 + $0x30] sm:$0xff] }
 0x1c0   :  { %v1416_v48 = vld [vmem:[#allocation3 + $0x31] sm:$0xff]  ;;  %1643 = vrot.lane.b32.xlu0 %v1609_v47, %s2681_s24  ;;  %1400 = vst.msk [vmem:[#allocation5 + $0x18] sm:$0xff] %vm79_vm13, %v1609_v47 }
 0x1c1   :  { %1451 = vrot.lane.b32.xlu1 %v1416_v48, %s2677_s19  ;;  %v1607_v49 = vld [vmem:[#allocation3 + $0x10] sm:$0xff]  ;;  %v1901_v50 = vld [vmem:[#allocation3 + $0x40] sm:$0xff] }
 0x1c2   :  { %1398 = vst.msk [vmem:[#allocation5 + $0x8] sm:$0xff] %vm79_vm13, %v1607_v49  ;;  %v1608_v52 = vld [vmem:[#allocation3 + $0x20] sm:$0xff]  ;;  %1401 = vst.msk [vmem:[#allocation5 + $0x20] sm:$0xff] %vm79_vm13, %v1901_v50  ;;  %v1513_v53 = vld [vmem:[#allocation3 + $0x32] sm:$0xff] }
 0x1c3   :  { %1399 = vst.msk [vmem:[#allocation5 + $0x10] sm:$0xff] %vm79_vm13, %v1608_v52  ;;  %v1704_v54 = vld [vmem:[#allocation3 + $0x11] sm:$0xff]  ;;  %v1998_v56 = vld [vmem:[#allocation3 + $0x41] sm:$0xff] }
 0x1c4   :  { %1740 = vrot.lane.b32.xlu0 %v1416_v48, %s2683_s28  ;;  %v1801_v55 = vld [vmem:[#allocation3 + $0x12] sm:$0xff]  ;;  %v1804_v57 = vld [vmem:[#allocation3 + $0x42] sm:$0xff] }
 0x1c5   :  { %1548 = vrot.lane.b32.xlu1 %v1513_v53, %s2679_s11  ;;  %v1705_v58 = vld [vmem:[#allocation3 + $0x21] sm:$0xff] }
 0x1c6   :  { %v1802_v59 = vld [vmem:[#allocation3 + $0x22] sm:$0xff] }
 0x1c8   :  { %1837 = vrot.lane.b32.xlu0 %v1513_v53, %s2687_s2 }
 0x1c9   :  { %1933 = vrot.lane.b32.xlu1 %v1609_v47, %s2684_s0 }
 0x1cc   :  { %1639 = vrot.lane.b32.xlu0 %v1607_v49, %s2681_s24 }
 0x1cd   :  { %2030 = vrot.lane.b32.xlu1 %v1416_v48, %s2685_s18 }
 0x1d0   :  { %1736 = vrot.lane.b32.xlu0 %v1704_v54, %s2683_s28 }
 0x1d1   :  { %2127 = vrot.lane.b32.xlu1 %v1513_v53, %s2686_s17 }
 0x1d4   :  { %1833 = vrot.lane.b32.xlu0 %v1801_v55, %s2687_s2 }
 0x1d5   :  { %1447 = vrot.lane.b32.xlu1 %v1704_v54, %s2677_s19 }
 0x1d8   :  { %1935 = vrot.lane.b32.xlu0 %v1901_v50, %s2684_s0 }
 0x1d9   :  { %1544 = vrot.lane.b32.xlu1 %v1801_v55, %s2679_s11 }
 0x1dc   :  { %2032 = vrot.lane.b32.xlu0 %v1998_v56, %s2685_s18 }
 0x1dd   :  { %1645 = vrot.lane.b32.xlu1 %v1901_v50, %s2681_s24 }
 0x1e0   :  { %1453 = vrot.lane.b32.xlu0 %v1998_v56, %s2677_s19 }
 0x1e1   :  { %1742 = vrot.lane.b32.xlu1 %v1998_v56, %s2683_s28 }
 0x1e4   :  { %2129 = vrot.lane.b32.xlu0 %v1804_v57, %s2686_s17 }
 0x1e5   :  { %1839 = vrot.lane.b32.xlu1 %v1804_v57, %s2687_s2 }
 0x1e8   :  { %1550 = vrot.lane.b32.xlu0 %v1804_v57, %s2679_s11 }
 0x1e9   :  { %1641 = vrot.lane.b32.xlu1 %v1608_v52, %s2681_s24 }
 0x1ec   :  { %1449 = vrot.lane.b32.xlu0 %v1705_v58, %s2677_s19 }
 0x1ed   :  { %1738 = vrot.lane.b32.xlu1 %v1705_v58, %s2683_s28 }
 0x1f0   :  { %1546 = vrot.lane.b32.xlu0 %v1802_v59, %s2679_s11 }
 0x1f1   :  { %1835 = vrot.lane.b32.xlu1 %v1802_v59, %s2687_s2  ;;  %v2616_v37 = vpop.f32.mrb[4].mxu0 }
 0x1f2   :  { %v1315_v23 = vmul.f32 %v2616_v37, %v3560_v28  ;;  %v1255_v60 = vpop.f32.mrb[5].mxu0 }
 0x1f3   :  { %v1313_v61 = vmul.f32 %v3560_v28, %v1255_v60  ;;  %v2617_v11 = vpop.f32.mrb[6].mxu0 }
 0x1f4   :  { %v1338_v62 = vadd.f32 %v3566_v18, %v1315_v23  ;;  %v1316_v63 = vmul.f32 %v2617_v11, %v3560_v28  ;;  %1931 = vrot.lane.b32.xlu0 %v1608_v52, %s2684_s0  ;;  %v1258_v1 = vpop.f32.mrb[7].mxu0 }
 0x1f5   :  { %v1336_v2 = vadd.f32 %v3566_v18, %v1313_v61  ;;  %v1314_v3 = vmul.f32 %v3560_v28, %v1258_v1 }
 0x1f6   :  { %v1354_v4 = vmax.f32 %v1338_v62, 0.0  ;;  %v1339_v5 = vadd.f32 %v3566_v18, %v1316_v63 }
 0x1f7   :  { %v1352_v6 = vmax.f32 %v1336_v2, 0.0  ;;  %v1337_v7 = vadd.f32 %v3566_v18, %v1314_v3 }
 0x1f8   :  { %1371 = vst.msk [vmem:[#allocation3 + $0x71] sm:$0xff] %vm79_vm13, %v1354_v4  ;;  %v1355_v8 = vmax.f32 %v1339_v5, 0.0  ;;  %2028 = vrot.lane.b32.xlu0 %v1705_v58, %s2685_s18 }
 0x1f9   :  { %1369 = vst.msk [vmem:[#allocation3 + $0x51] sm:$0xff] %vm79_vm13, %v1352_v6  ;;  %v1353_v9 = vmax.f32 %v1337_v7, 0.0 }
 0x1fa   :  { %1372 = vst.msk [vmem:[#allocation3 + $0x81] sm:$0xff] %vm79_vm13, %v1355_v8 }
 0x1fb   :  { %1370 = vst.msk [vmem:[#allocation3 + $0x61] sm:$0xff] %vm79_vm13, %v1353_v9 }
 0x1fc   :  { %2125 = vrot.lane.b32.xlu0 %v1802_v59, %s2686_s17 }
 0x1ff   :  { %v1613_v40 = vld [vmem:[#allocation3 + $0x70] sm:$0xff] }
 0x200   :  { %v1420_v10 = vld [vmem:[#allocation3 + $0x71] sm:$0xff]  ;;  %1651 = vrot.lane.b32.xlu0 %v1613_v40, %s2681_s24  ;;  %1404 = vst.msk [vmem:[#allocation5 + $0x38] sm:$0xff] %vm79_vm13, %v1613_v40 }
 0x201   :  { %1459 = vrot.lane.b32.xlu1 %v1420_v10, %s2677_s19  ;;  %v1611_v42 = vld [vmem:[#allocation3 + $0x50] sm:$0xff]  ;;  %v1905_v21 = vld [vmem:[#allocation3 + $0x80] sm:$0xff] }
 0x202   :  { %1402 = vst.msk [vmem:[#allocation5 + $0x28] sm:$0xff] %vm79_vm13, %v1611_v42  ;;  %v3629_v39 = vld [vmem:[#allocation3 + $0x60] sm:$0xff]  ;;  %v1517_v12 = vld [vmem:[#allocation3 + $0x72] sm:$0xff] }
 0x203   :  { %1403 = vst.msk [vmem:[#allocation5 + $0x30] sm:$0xff] %vm79_vm13, %v3629_v39  ;;  %v1708_v16 = vld [vmem:[#allocation3 + $0x51] sm:$0xff]  ;;  %v2002_v25 = vld [vmem:[#allocation3 + $0x81] sm:$0xff] }
 0x204   :  { %1748 = vrot.lane.b32.xlu0 %v1420_v10, %s2683_s28  ;;  %v1805_v19 = vld [vmem:[#allocation3 + $0x52] sm:$0xff]  ;;  %v2099_v26 = vld [vmem:[#allocation3 + $0x82] sm:$0xff] }
 0x205   :  { %1556 = vrot.lane.b32.xlu1 %v1517_v12, %s2679_s11  ;;  %v1419_v0 = vld [vmem:[#allocation3 + $0x61] sm:$0xff] }
 0x206   :  { %v1516_v30 = vld [vmem:[#allocation3 + $0x62] sm:$0xff] }
 0x208   :  { %1845 = vrot.lane.b32.xlu0 %v1517_v12, %s2687_s2 }
 0x209   :  { %1941 = vrot.lane.b32.xlu1 %v1613_v40, %s2684_s0 }
 0x20c   :  { %1647 = vrot.lane.b32.xlu0 %v1611_v42, %s2681_s24 }
 0x20d   :  { %2038 = vrot.lane.b32.xlu1 %v1420_v10, %s2685_s18 }
 0x210   :  { %1744 = vrot.lane.b32.xlu0 %v1708_v16, %s2683_s28 }
 0x211   :  { %2135 = vrot.lane.b32.xlu1 %v1517_v12, %s2686_s17 }
 0x214   :  { %1841 = vrot.lane.b32.xlu0 %v1805_v19, %s2687_s2 }
 0x215   :  { %1937 = vrot.lane.b32.xlu1 %v1611_v42, %s2684_s0 }
 0x218   :  { %1943 = vrot.lane.b32.xlu0 %v1905_v21, %s2684_s0 }
 0x219   :  { %2034 = vrot.lane.b32.xlu1 %v1708_v16, %s2685_s18 }
 0x21c   :  { %2040 = vrot.lane.b32.xlu0 %v2002_v25, %s2685_s18 }
 0x21d   :  { %1455 = vrot.lane.b32.xlu1 %v1708_v16, %s2677_s19 }
 0x220   :  { %2137 = vrot.lane.b32.xlu0 %v2099_v26, %s2686_s17 }
 0x221   :  { %2131 = vrot.lane.b32.xlu1 %v1805_v19, %s2686_s17 }
 0x224   :  { %1457 = vrot.lane.b32.xlu0 %v1419_v0, %s2677_s19 }
 0x225   :  { %1552 = vrot.lane.b32.xlu1 %v1805_v19, %s2679_s11 }
 0x228   :  { %1554 = vrot.lane.b32.xlu0 %v1516_v30, %s2679_s11 }
 0x229   :  { %1653 = vrot.lane.b32.xlu1 %v1905_v21, %s2681_s24 }
 0x22c   :  { %1939 = vrot.lane.b32.xlu0 %v3629_v39, %s2684_s0 }
 0x22d   :  { %1750 = vrot.lane.b32.xlu1 %v2002_v25, %s2683_s28 }
 0x230   :  { %2036 = vrot.lane.b32.xlu0 %v1419_v0, %s2685_s18 }
 0x231   :  { %1847 = vrot.lane.b32.xlu1 %v2099_v26, %s2687_s2  ;;  %v2620_v31 = vpop.f32.mrb[8].mxu0 }
 0x232   :  { %v1319_v32 = vmul.f32 %v2620_v31, %v3560_v28  ;;  %v3680_v33 = vpop.permute.xlu0 %1643  ;;  %v1271_v35 = vpop.f32.mrb[9].mxu0 }
 0x233   :  { %v1452_v34 = vpop.permute.xlu1 %1451  ;;  %v1317_v38 = vmul.f32 %v3560_v28, %v1271_v35  ;;  %v2621_v41 = vpop.f32.mrb[10].mxu0 }
 0x234   :  { %1497 = vst.msk [vmem:[#allocation5 + $0x18] sm:$0xff] %vm1493_vm0, %v1452_v34  ;;  %v1342_v36 = vadd.f32 %v3566_v18, %v1319_v32  ;;  %2133 = vrot.lane.b32.xlu0 %v1516_v30, %s2686_s17  ;;  %v1320_v43 = vmul.f32 %v2621_v41, %v3560_v28  ;;  %v1274_v44 = vpop.f32.mrb[11].mxu0 }
 0x235   :  { %1649 = vrot.lane.b32.xlu1 %v3629_v39, %s2681_s24  ;;  %v1340_v46 = vadd.f32 %v3566_v18, %v1317_v38  ;;  %v1318_v47 = vmul.f32 %v3560_v28, %v1274_v44 }
 0x236   :  { %v1358_v51 = vmax.f32 %v1342_v36, 0.0  ;;  %v3691_v48 = vpop.permute.xlu0 %1740  ;;  %v1343_v50 = vadd.f32 %v3566_v18, %v1320_v43 }
 0x237   :  { %v1549_v49 = vpop.permute.xlu1 %1548  ;;  %v1356_v52 = vmax.f32 %v1340_v46, 0.0  ;;  %v1341_v53 = vadd.f32 %v3566_v18, %v1318_v47 }
 0x238   :  { %1594 = vst.msk [vmem:[#allocation5 + $0x18] sm:$0xff] %vm1590_vm1, %v1549_v49  ;;  %1558 = vrot.lane.b32.xlu0 %v1518_v45, %s2679_s11  ;;  %v1359_v54 = vmax.f32 %v1343_v50, 0.0 }
 0x239   :  { %1375 = vst.msk [vmem:[#allocation3 + $0xd1] sm:$0xff] %vm79_vm13, %v1358_v51  ;;  %1746 = vrot.lane.b32.xlu1 %v1419_v0, %s2683_s28  ;;  %1373 = vst.msk [vmem:[#allocation3 + $0xb1] sm:$0xff] %vm79_vm13, %v1356_v52  ;;  %v1357_v55 = vmax.f32 %v1341_v53, 0.0 }
 0x23a   :  { %v3700_v56 = vpop.permute.xlu0 %1837  ;;  %1376 = vst.msk [vmem:[#allocation3 + $0xe1] sm:$0xff] %vm79_vm13, %v1359_v54 }
 0x23b   :  { %v3702_v57 = vpop.permute.xlu1 %1933  ;;  %1374 = vst.msk [vmem:[#allocation3 + $0xc1] sm:$0xff] %vm79_vm13, %v1357_v55 }
 0x23d   :  { %1843 = vrot.lane.b32.xlu1 %v1516_v30, %s2687_s2 }
 0x23e   :  { %v1640_v59 = vpop.permute.xlu0 %1639 }
 0x23f   :  { %v3707_v58 = vpop.permute.xlu1 %2030  ;;  %1688 = vst.msk [vmem:[#allocation5] sm:$0xff] %vm1687_vm3, %v1640_v59 }
 0x240   :  { %v3710_v37 = vld [vmem:[#allocation3 + $0xd1] sm:$0xff] }
 0x241   :  { %v3712_v23 = vld [vmem:[#allocation3 + $0xd0] sm:$0xff]  ;;  %1467 = vrot.lane.b32.xlu1 %v3710_v37, %s2677_s19  ;;  %v3720_v62 = vld [vmem:[#allocation3 + $0xe0] sm:$0xff] }
 0x242   :  { %1408 = vst.msk [vmem:[#allocation5 + $0x58] sm:$0xff] %vm79_vm13, %v3712_v23  ;;  %v1615_v60 = vld [vmem:[#allocation3 + $0xb0] sm:$0xff]  ;;  %v1737_v11 = vpop.permute.xlu0 %1736  ;;  %v3724_v63 = vld [vmem:[#allocation3 + $0xc1] sm:$0xff]  ;;  %1409 = vst.msk [vmem:[#allocation5 + $0x60] sm:$0xff] %vm79_vm13, %v3720_v62 }
 0x243   :  { %v3718_v61 = vpop.permute.xlu1 %2127  ;;  %1406 = vst.msk [vmem:[#allocation5 + $0x48] sm:$0xff] %vm79_vm13, %v1615_v60  ;;  %v1422_v1 = vld [vmem:[#allocation3 + $0xb1] sm:$0xff]  ;;  %v1616_v2 = vld [vmem:[#allocation3 + $0xc0] sm:$0xff]  ;;  %1465 = vrot.lane.b32.xlu0 %v3724_v63, %s2677_s19 }
 0x244   :  { %1785 = vst.msk [vmem:[#allocation5] sm:$0xff] %vm1784_vm4, %v1737_v11  ;;  %v3734_v5 = vld [vmem:[#allocation3 + $0xc2] sm:$0xff]  ;;  %v1519_v6 = vld [vmem:[#allocation3 + $0xb2] sm:$0xff] }
 0x245   :  { %1463 = vrot.lane.b32.xlu1 %v1422_v1, %s2677_s19  ;;  %1407 = vst.msk [vmem:[#allocation5 + $0x50] sm:$0xff] %vm79_vm13, %v1616_v2  ;;  %v3740_v9 = vld [vmem:[#allocation3 + $0xd2] sm:$0xff]  ;;  %v3761_v17 = vld [vmem:[#allocation3 + $0xe1] sm:$0xff] }
 0x246   :  { %v1834_v3 = vpop.permute.xlu0 %1833  ;;  %v3774_v24 = vld [vmem:[#allocation3 + $0xe2] sm:$0xff] }
 0x247   :  { %v1448_v4 = vpop.permute.xlu1 %1447  ;;  %1882 = vst.msk [vmem:[#allocation5] sm:$0xff] %vm1881_vm5, %v1834_v3  ;;  %1562 = vrot.lane.b32.xlu0 %v3734_v5, %s2679_s11 }
 0x248   :  { %1495 = vst.msk [vmem:[#allocation5 + $0x8] sm:$0xff] %vm1493_vm0, %v1448_v4 }
 0x249   :  { %1560 = vrot.lane.b32.xlu1 %v1519_v6, %s2679_s11 }
 0x24a   :  { %v1936_v8 = vpop.permute.xlu0 %1935 }
 0x24b   :  { %v1545_v7 = vpop.permute.xlu1 %1544  ;;  %1655 = vrot.lane.b32.xlu0 %v1615_v60, %s2681_s24 }
 0x24c   :  { %1592 = vst.msk [vmem:[#allocation5 + $0x8] sm:$0xff] %vm1590_vm1, %v1545_v7 }
 0x24d   :  { %1564 = vrot.lane.b32.xlu1 %v3740_v9, %s2679_s11 }
 0x24e   :  { %v2033_v40 = vpop.permute.xlu0 %2032 }
 0x24f   :  { %v1646_v10 = vpop.permute.xlu1 %1645  ;;  %1659 = vrot.lane.b32.xlu0 %v3712_v23, %s2681_s24 }
 0x250   :  { %1691 = vst.msk [vmem:[#allocation5 + $0x18] sm:$0xff] %vm1687_vm3, %v1646_v10 }
 0x251   :  { %1657 = vrot.lane.b32.xlu1 %v1616_v2, %s2681_s24 }
 0x252   :  { %v1454_v39 = vpop.permute.xlu0 %1453 }
 0x253   :  { %v1743_v42 = vpop.permute.xlu1 %1742  ;;  %1498 = vst.msk [vmem:[#allocation5 + $0x20] sm:$0xff] %vm1493_vm0, %v1454_v39  ;;  %1752 = vrot.lane.b32.xlu0 %v1422_v1, %s2683_s28 }
 0x254   :  { %1788 = vst.msk [vmem:[#allocation5 + $0x18] sm:$0xff] %vm1784_vm4, %v1743_v42 }
 0x255   :  { %1661 = vrot.lane.b32.xlu1 %v3720_v62, %s2681_s24 }
 0x256   :  { %v2130_v13 = vpop.permute.xlu0 %2129 }
 0x257   :  { %v1840_v12 = vpop.permute.xlu1 %1839  ;;  %1756 = vrot.lane.b32.xlu0 %v3710_v37, %s2683_s28 }
 0x258   :  { %1885 = vst.msk [vmem:[#allocation5 + $0x18] sm:$0xff] %vm1881_vm5, %v1840_v12 }
 0x259   :  { %1754 = vrot.lane.b32.xlu1 %v3724_v63, %s2683_s28 }
 0x25a   :  { %v1551_v14 = vpop.permute.xlu0 %1550 }
 0x25b   :  { %v1642_v16 = vpop.permute.xlu1 %1641  ;;  %1595 = vst.msk [vmem:[#allocation5 + $0x20] sm:$0xff] %vm1590_vm1, %v1551_v14  ;;  %1849 = vrot.lane.b32.xlu0 %v1519_v6, %s2687_s2 }
 0x25c   :  { %1689 = vst.msk [vmem:[#allocation5 + $0x8] sm:$0xff] %vm1687_vm3, %v1642_v16 }
 0x25d   :  { %1758 = vrot.lane.b32.xlu1 %v3761_v17, %s2683_s28 }
 0x25e   :  { %v1450_v20 = vpop.permute.xlu0 %1449 }
 0x25f   :  { %v1739_v19 = vpop.permute.xlu1 %1738  ;;  %1496 = vst.msk [vmem:[#allocation5 + $0x10] sm:$0xff] %vm1493_vm0, %v1450_v20  ;;  %1853 = vrot.lane.b32.xlu0 %v3740_v9, %s2687_s2 }
 0x260   :  { %1786 = vst.msk [vmem:[#allocation5 + $0x8] sm:$0xff] %vm1784_vm4, %v1739_v19 }
 0x261   :  { %1851 = vrot.lane.b32.xlu1 %v3734_v5, %s2687_s2 }
 0x262   :  { %v1547_v22 = vpop.permute.xlu0 %1546 }
 0x263   :  { %v1836_v21 = vpop.permute.xlu1 %1835  ;;  %1593 = vst.msk [vmem:[#allocation5 + $0x10] sm:$0xff] %vm1590_vm1, %v1547_v22  ;;  %1947 = vrot.lane.b32.xlu0 %v1616_v2, %s2684_s0 }
 0x264   :  { %1883 = vst.msk [vmem:[#allocation5 + $0x8] sm:$0xff] %vm1881_vm5, %v1836_v21 }
 0x265   :  { %1981 = vst.msk [vmem:[#allocation5 + $0x8] sm:$0xff] %vm1979_vm6, %v3702_v57  ;;  %1855 = vrot.lane.b32.xlu1 %v3774_v24, %s2687_s2 }
 0x266   :  { %1690 = vst.msk [vmem:[#allocation5 + $0x10] sm:$0xff] %vm1687_vm3, %v3680_v33  ;;  %v1932_v25 = vpop.permute.xlu0 %1931 }
 0x267   :  { %2078 = vst.msk [vmem:[#allocation5 + $0x8] sm:$0xff] %vm2076_vm7, %v3707_v58  ;;  %1951 = vrot.lane.b32.xlu0 %v3720_v62, %s2684_s0 }
 0x268   :  { %1787 = vst.msk [vmem:[#allocation5 + $0x10] sm:$0xff] %vm1784_vm4, %v3691_v48 }
 0x269   :  { %2175 = vst.msk [vmem:[#allocation5 + $0x8] sm:$0xff] %vm2173_vm8, %v3718_v61  ;;  %1949 = vrot.lane.b32.xlu1 %v3712_v23, %s2684_s0 }
 0x26a   :  { %1884 = vst.msk [vmem:[#allocation5 + $0x10] sm:$0xff] %vm1881_vm5, %v3700_v56  ;;  %v2029_v26 = vpop.permute.xlu0 %2028 }
 0x26b   :  { %1982 = vst.msk [vmem:[#allocation5 + $0x10] sm:$0xff] %vm1979_vm6, %v1936_v8  ;;  %1980 = vst.msk [vmem:[#allocation5] sm:$0xff] %vm1979_vm6, %v1932_v25  ;;  %2044 = vrot.lane.b32.xlu0 %v3724_v63, %s2685_s18 }
 0x26c   :  { %2079 = vst.msk [vmem:[#allocation5 + $0x10] sm:$0xff] %vm2076_vm7, %v2033_v40  ;;  %2077 = vst.msk [vmem:[#allocation5] sm:$0xff] %vm2076_vm7, %v2029_v26 }
 0x26d   :  { %2176 = vst.msk [vmem:[#allocation5 + $0x10] sm:$0xff] %vm2173_vm8, %v2130_v13  ;;  %v2624_v0 = vpop.f32.mrb[12].mxu0 }
 0x26e   :  { %v1323_v30 = vmul.f32 %v2624_v0, %v3560_v28  ;;  %v2126_v31 = vpop.permute.xlu0 %2125  ;;  %v1287_v32 = vpop.f32.mrb[13].mxu0 }
 0x26f   :  { %2174 = vst.msk [vmem:[#allocation5] sm:$0xff] %vm2173_vm8, %v2126_v31  ;;  %v1321_v33 = vmul.f32 %v3560_v28, %v1287_v32  ;;  %v2625_v34 = vpop.f32.mrb[14].mxu0  ;;  %2048 = vrot.lane.b32.xlu0 %v3761_v17, %s2685_s18 }
 0x270   :  { %v1346_v35 = vadd.f32 %v3566_v18, %v1323_v30  ;;  %v1324_v36 = vmul.f32 %v2625_v34, %v3560_v28  ;;  %v1290_v38 = vpop.f32.mrb[15].mxu0  ;;  %v2191_v54 = vld [vmem:[#allocation5 + $0x8] sm:$0xff] }
 0x271   :  { %v1344_v41 = vadd.f32 %v3566_v18, %v1321_v33  ;;  %v1322_v43 = vmul.f32 %v3560_v28, %v1290_v38 }
 0x272   :  { %v1362_v44 = vmax.f32 %v1346_v35, 0.0  ;;  %v1347_v45 = vadd.f32 %v3566_v18, %v1324_v36  ;;  %v3812_v51 = vpop.permute.xlu0 %1651 }
 0x273   :  { %v1460_v46 = vpop.permute.xlu1 %1459  ;;  %v1360_v47 = vmax.f32 %v1344_v41, 0.0  ;;  %v1345_v48 = vadd.f32 %v3566_v18, %v1322_v43  ;;  %2141 = vrot.lane.b32.xlu0 %v3734_v5, %s2686_s17 }
 0x274   :  { %1501 = vst.msk [vmem:[#allocation5 + $0x38] sm:$0xff] %vm1493_vm0, %v1460_v46  ;;  %v1363_v49 = vmax.f32 %v1347_v45, 0.0  ;;  %v2192_v13 = vld [vmem:[#allocation5 + $0x10] sm:$0xff] }
 0x275   :  { %1379 = vst.msk [vmem:[#allocation3 + $0x111] sm:$0xff] %vm79_vm13, %v1362_v44  ;;  %1377 = vst.msk [vmem:[#allocation3 + $0xf1] sm:$0xff] %vm79_vm13, %v1360_v47  ;;  %v1361_v28 = vmax.f32 %v1345_v48, 0.0  ;;  %v1914_v45 = vld [vmem:[#allocation3 + $0x130] sm:$0xff] }
 0x276   :  { %1380 = vst.msk [vmem:[#allocation3 + $0x121] sm:$0xff] %vm79_vm13, %v1363_v49  ;;  %v3821_v50 = vpop.permute.xlu0 %1748  ;;  %v2190_v53 = vld [vmem:[#allocation5] sm:$0xff] }
 0x277   :  { %v1557_v52 = vpop.permute.xlu1 %1556  ;;  %1378 = vst.msk [vmem:[#allocation3 + $0x101] sm:$0xff] %vm79_vm13, %v1361_v28  ;;  %v2206_v18 = vpack.c.bf16 %v2191_v54, %v2190_v53  ;;  %1469 = vrot.lane.b32.xlu0 %v3761_v17, %s2677_s19  ;;  %v2011_v28 = vld [vmem:[#allocation3 + $0x131] sm:$0xff] }
 0x278   :  { %1598 = vst.msk [vmem:[#allocation5 + $0x38] sm:$0xff] %vm1590_vm1, %v1557_v52 }
 0x279   :  { %2636 = vmatprep.mubr.msk.bf16.mxu1 %vm2250_vm9, %v2206_v18  ;;  %v2108_v18 = vld [vmem:[#allocation3 + $0x132] sm:$0xff] }
 0x27a   :  { %v3828_v55 = vpop.permute.xlu0 %1845 }
 0x27b   :  { %v3830_v56 = vpop.permute.xlu1 %1941  ;;  %2145 = vrot.lane.b32.xlu0 %v3774_v24, %s2686_s17 }
 0x27c   :  { %v3832_v57 = vld [vmem:[#allocation3 + $0x110] sm:$0xff] }
 0x27d   :  { %v1910_v58 = vld [vmem:[#allocation3 + $0xf0] sm:$0xff]  ;;  %1412 = vst.msk [vmem:[#allocation5 + $0x78] sm:$0xff] %vm79_vm13, %v3832_v57  ;;  %v1816_v31 = vld [vmem:[#allocation3 + $0x122] sm:$0xff] }
 0x27e   :  { %1953 = vrot.lane.b32.xlu1 %v1910_v58, %s2684_s0  ;;  %1410 = vst.msk [vmem:[#allocation5 + $0x68] sm:$0xff] %vm79_vm13, %v1910_v58  ;;  %v1648_v23 = vpop.permute.xlu0 %1647  ;;  %v3842_v60 = vld [vmem:[#allocation3 + $0x101] sm:$0xff]  ;;  %v2007_v63 = vld [vmem:[#allocation3 + $0xf1] sm:$0xff] }
 0x27f   :  { %v3840_v59 = vpop.permute.xlu1 %2038  ;;  %v3844_v61 = vld [vmem:[#allocation3 + $0x100] sm:$0xff]  ;;  %1692 = vst.msk [vmem:[#allocation5 + $0x20] sm:$0xff] %vm1687_vm3, %v1648_v23  ;;  %1473 = vrot.lane.b32.xlu0 %v3842_v60, %s2677_s19  ;;  %v2104_v7 = vld [vmem:[#allocation3 + $0xf2] sm:$0xff] }
 0x280   :  { %1411 = vst.msk [vmem:[#allocation5 + $0x70] sm:$0xff] %vm79_vm13, %v3844_v61  ;;  %v3861_v3 = vld [vmem:[#allocation3 + $0x102] sm:$0xff]  ;;  %v3876_v40 = vld [vmem:[#allocation3 + $0x111] sm:$0xff] }
 0x281   :  { %v3890_v17 = vld [vmem:[#allocation3 + $0x112] sm:$0xff] }
 0x282   :  { %2046 = vrot.lane.b32.xlu1 %v3710_v37, %s2685_s18  ;;  %v1745_v62 = vpop.permute.xlu0 %1744 }
 0x283   :  { %v3853_v11 = vpop.permute.xlu1 %2135  ;;  %1789 = vst.msk [vmem:[#allocation5 + $0x20] sm:$0xff] %vm1784_vm4, %v1745_v62  ;;  %1566 = vrot.lane.b32.xlu0 %v3774_v24, %s2679_s11  ;;  %v1622_v24 = vld [vmem:[#allocation3 + $0x120] sm:$0xff] }
 0x286   :  { %2050 = vrot.lane.b32.xlu1 %v2007_v63, %s2685_s18  ;;  %v1842_v2 = vpop.permute.xlu0 %1841 }
 0x287   :  { %v1938_v1 = vpop.permute.xlu1 %1937  ;;  %1886 = vst.msk [vmem:[#allocation5 + $0x20] sm:$0xff] %vm1881_vm5, %v1842_v2  ;;  %1570 = vrot.lane.b32.xlu0 %v3861_v3, %s2679_s11 }
 0x288   :  { %1983 = vst.msk [vmem:[#allocation5 + $0x18] sm:$0xff] %vm1979_vm6, %v1938_v1 }
 0x28a   :  { %2143 = vrot.lane.b32.xlu1 %v3740_v9, %s2686_s17  ;;  %v1944_v4 = vpop.permute.xlu0 %1943 }
 0x28b   :  { %v2035_v37 = vpop.permute.xlu1 %2034  ;;  %1663 = vrot.lane.b32.xlu0 %v1910_v58, %s2681_s24 }
 0x28c   :  { %2080 = vst.msk [vmem:[#allocation5 + $0x18] sm:$0xff] %vm2076_vm7, %v2035_v37 }
 0x28e   :  { %1471 = vrot.lane.b32.xlu1 %v2007_v63, %s2677_s19  ;;  %v2041_v6 = vpop.permute.xlu0 %2040 }
 0x28f   :  { %v1456_v5 = vpop.permute.xlu1 %1455  ;;  %1667 = vrot.lane.b32.xlu0 %v3832_v57, %s2681_s24 }
 0x290   :  { %1499 = vst.msk [vmem:[#allocation5 + $0x28] sm:$0xff] %vm1493_vm0, %v1456_v5 }
 0x292   :  { %2147 = vrot.lane.b32.xlu1 %v2104_v7, %s2686_s17  ;;  %v2138_v9 = vpop.permute.xlu0 %2137 }
 0x293   :  { %v2132_v8 = vpop.permute.xlu1 %2131  ;;  %1760 = vrot.lane.b32.xlu0 %v2007_v63, %s2683_s28 }
 0x294   :  { %2177 = vst.msk [vmem:[#allocation5 + $0x18] sm:$0xff] %vm2173_vm8, %v2132_v8 }
 0x296   :  { %1475 = vrot.lane.b32.xlu1 %v3876_v40, %s2677_s19  ;;  %v1458_v42 = vpop.permute.xlu0 %1457 }
 0x297   :  { %v1553_v10 = vpop.permute.xlu1 %1552  ;;  %1500 = vst.msk [vmem:[#allocation5 + $0x30] sm:$0xff] %vm1493_vm0, %v1458_v42  ;;  %1764 = vrot.lane.b32.xlu0 %v3876_v40, %s2683_s28 }
 0x298   :  { %1596 = vst.msk [vmem:[#allocation5 + $0x28] sm:$0xff] %vm1590_vm1, %v1553_v10 }
 0x29a   :  { %1568 = vrot.lane.b32.xlu1 %v2104_v7, %s2679_s11  ;;  %v1555_v12 = vpop.permute.xlu0 %1554 }
 0x29b   :  { %v1654_v39 = vpop.permute.xlu1 %1653  ;;  %v2193_v14 = vld [vmem:[#allocation5 + $0x18] sm:$0xff]  ;;  %1597 = vst.msk [vmem:[#allocation5 + $0x30] sm:$0xff] %vm1590_vm1, %v1555_v12  ;;  %1857 = vrot.lane.b32.xlu0 %v2104_v7, %s2687_s2 }
 0x29c   :  { %1695 = vst.msk [vmem:[#allocation5 + $0x38] sm:$0xff] %vm1687_vm3, %v1654_v39  ;;  %v2207_v16 = vpack.c.bf16 %v2193_v14, %v2192_v13  ;;  %1694 = vst.msk [vmem:[#allocation5 + $0x30] sm:$0xff] %vm1687_vm3, %v3812_v51 }
 0x29d   :  { %1791 = vst.msk [vmem:[#allocation5 + $0x30] sm:$0xff] %vm1784_vm4, %v3821_v50 }
 0x29e   :  { %2637 = vmatmul.mubr.msk.bf16.vlgmr.msra.gmra.mrb[0].mxu1 %vm2250_vm9, %v2207_v16  ;;  %1572 = vrot.lane.b32.xlu1 %v3890_v17, %s2679_s11  ;;  %1888 = vst.msk [vmem:[#allocation5 + $0x30] sm:$0xff] %vm1881_vm5, %v3828_v55  ;;  %v1940_v20 = vpop.permute.xlu0 %1939 }
 0x29f   :  { %v1751_v19 = vpop.permute.xlu1 %1750  ;;  %1986 = vst.msk [vmem:[#allocation5 + $0x30] sm:$0xff] %vm1979_vm6, %v1944_v4  ;;  %1984 = vst.msk [vmem:[#allocation5 + $0x20] sm:$0xff] %vm1979_vm6, %v1940_v20  ;;  %1861 = vrot.lane.b32.xlu0 %v3890_v17, %s2687_s2 }
 0x2a0   :  { %1792 = vst.msk [vmem:[#allocation5 + $0x38] sm:$0xff] %vm1784_vm4, %v1751_v19 }
 0x2a1   :  { %2083 = vst.msk [vmem:[#allocation5 + $0x30] sm:$0xff] %vm2076_vm7, %v2041_v6 }
 0x2a2   :  { %2180 = vst.msk [vmem:[#allocation5 + $0x30] sm:$0xff] %vm2173_vm8, %v2138_v9  ;;  %1665 = vrot.lane.b32.xlu1 %v3844_v61, %s2681_s24  ;;  %v2037_v22 = vpop.permute.xlu0 %2036 }
 0x2a3   :  { %v1848_v21 = vpop.permute.xlu1 %1847  ;;  %2081 = vst.msk [vmem:[#allocation5 + $0x20] sm:$0xff] %vm2076_vm7, %v2037_v22  ;;  %1955 = vrot.lane.b32.xlu0 %v3844_v61, %s2684_s0 }
 0x2a4   :  { %1889 = vst.msk [vmem:[#allocation5 + $0x38] sm:$0xff] %vm1881_vm5, %v1848_v21 }
 0x2a5   :  { %1987 = vst.msk [vmem:[#allocation5 + $0x38] sm:$0xff] %vm1979_vm6, %v3664_v27 }
 0x2a6   :  { %2084 = vst.msk [vmem:[#allocation5 + $0x38] sm:$0xff] %vm2076_vm7, %v3668_v29  ;;  %1669 = vrot.lane.b32.xlu1 %v1622_v24, %s2681_s24  ;;  %v2134_v26 = vpop.permute.xlu0 %2133  ;;  %v1719_v29 = vld [vmem:[#allocation3 + $0x121] sm:$0xff] }
 0x2a7   :  { %2181 = vst.msk [vmem:[#allocation5 + $0x38] sm:$0xff] %vm2173_vm8, %v3675_v15  ;;  %v1650_v25 = vpop.permute.xlu1 %1649  ;;  %2178 = vst.msk [vmem:[#allocation5 + $0x20] sm:$0xff] %vm2173_vm8, %v2134_v26  ;;  %1959 = vrot.lane.b32.xlu0 %v1622_v24, %s2684_s0 }
 0x2a8   :  { %1693 = vst.msk [vmem:[#allocation5 + $0x28] sm:$0xff] %vm1687_vm3, %v1650_v25 }
 0x2a9   :  { %v2196_v44 = vld [vmem:[#allocation5 + $0x30] sm:$0xff] }
 0x2aa   :  { %1762 = vrot.lane.b32.xlu1 %v3842_v60, %s2683_s28  ;;  %v1559_v0 = vpop.permute.xlu0 %1558 }
 0x2ab   :  { %v1747_v27 = vpop.permute.xlu1 %1746  ;;  %1599 = vst.msk [vmem:[#allocation5 + $0x40] sm:$0xff] %vm1590_vm1, %v1559_v0  ;;  %2052 = vrot.lane.b32.xlu0 %v3842_v60, %s2685_s18 }
 0x2ac   :  { %1790 = vst.msk [vmem:[#allocation5 + $0x28] sm:$0xff] %vm1784_vm4, %v1747_v27 }
 0x2ae   :  { %1766 = vrot.lane.b32.xlu1 %v1719_v29, %s2683_s28  ;;  %v2197_v34 = vld [vmem:[#allocation5 + $0x38] sm:$0xff]  ;;  %v2194_v35 = vld [vmem:[#allocation5 + $0x20] sm:$0xff] }
 0x2af   :  { %v1844_v15 = vpop.permute.xlu1 %1843  ;;  %2056 = vrot.lane.b32.xlu0 %v1719_v29, %s2685_s18  ;;  %v2209_v51 = vpack.c.bf16 %v2197_v34, %v2196_v44 }
 0x2b0   :  { %1887 = vst.msk [vmem:[#allocation5 + $0x28] sm:$0xff] %vm1881_vm5, %v1844_v15 }
 0x2b1   :  { %1985 = vst.msk [vmem:[#allocation5 + $0x28] sm:$0xff] %vm1979_vm6, %v3830_v56 }
 0x2b2   :  { %2082 = vst.msk [vmem:[#allocation5 + $0x28] sm:$0xff] %vm2076_vm7, %v3840_v59  ;;  %1859 = vrot.lane.b32.xlu1 %v3861_v3, %s2687_s2 }
 0x2b3   :  { %2179 = vst.msk [vmem:[#allocation5 + $0x28] sm:$0xff] %vm2173_vm8, %v3853_v11  ;;  %v1468_v30 = vpop.permute.xlu1 %1467  ;;  %2149 = vrot.lane.b32.xlu0 %v3861_v3, %s2686_s17 }
 0x2b4   :  { %1505 = vst.msk [vmem:[#allocation5 + $0x58] sm:$0xff] %vm1493_vm0, %v1468_v30 }
 0x2b5   :  { %v1466_v32 = vpop.permute.xlu0 %1465 }
 0x2b6   :  { %1863 = vrot.lane.b32.xlu1 %v1816_v31, %s2687_s2  ;;  %1504 = vst.msk [vmem:[#allocation5 + $0x50] sm:$0xff] %vm1493_vm0, %v1466_v32 }
 0x2b7   :  { %v1464_v33 = vpop.permute.xlu1 %1463  ;;  %2153 = vrot.lane.b32.xlu0 %v1816_v31, %s2686_s17 }
 0x2b8   :  { %1503 = vst.msk [vmem:[#allocation5 + $0x48] sm:$0xff] %vm1493_vm0, %v1464_v33 }
 0x2b9   :  { %v1563_v38 = vpop.permute.xlu0 %1562 }
 0x2ba   :  { %1957 = vrot.lane.b32.xlu1 %v3832_v57, %s2684_s0  ;;  %v2195_v36 = vld [vmem:[#allocation5 + $0x28] sm:$0xff]  ;;  %1601 = vst.msk [vmem:[#allocation5 + $0x50] sm:$0xff] %vm1590_vm1, %v1563_v38 }
 0x2bb   :  { %v1561_v41 = vpop.permute.xlu1 %1560  ;;  %v2208_v43 = vpack.c.bf16 %v2195_v36, %v2194_v35 }
 0x2bc   :  { %1600 = vst.msk [vmem:[#allocation5 + $0x48] sm:$0xff] %vm1590_vm1, %v1561_v41 }
 0x2bd   :  { %2640 = vmatprep.mubr.msk.bf16.mxu1 %vm2250_vm9, %v2208_v43  ;;  %v1656_v46 = vpop.permute.xlu0 %1655 }
 0x2be   :  { %2641 = vmatmul.mubr.msk.bf16.gmra.mrb[4].mxu1 %vm2250_vm9, %v2209_v51  ;;  %1961 = vrot.lane.b32.xlu1 %v1914_v45, %s2684_s0  ;;  %1696 = vst.msk [vmem:[#allocation5 + $0x40] sm:$0xff] %vm1687_vm3, %v1656_v46 }
 0x2bf   :  { %v1565_v47 = vpop.permute.xlu1 %1564 }
 0x2c0   :  { %1602 = vst.msk [vmem:[#allocation5 + $0x58] sm:$0xff] %vm1590_vm1, %v1565_v47 }
 0x2c1   :  { %v1660_v48 = vpop.permute.xlu0 %1659 }
 0x2c2   :  { %2054 = vrot.lane.b32.xlu1 %v3876_v40, %s2685_s18  ;;  %1698 = vst.msk [vmem:[#allocation5 + $0x50] sm:$0xff] %vm1687_vm3, %v1660_v48 }
 0x2c3   :  { %v1658_v49 = vpop.permute.xlu1 %1657 }
 0x2c4   :  { %1697 = vst.msk [vmem:[#allocation5 + $0x48] sm:$0xff] %vm1687_vm3, %v1658_v49 }
 0x2c5   :  { %v1753_v50 = vpop.permute.xlu0 %1752 }
 0x2c6   :  { %2058 = vrot.lane.b32.xlu1 %v2011_v28, %s2685_s18  ;;  %1793 = vst.msk [vmem:[#allocation5 + $0x40] sm:$0xff] %vm1784_vm4, %v1753_v50 }
 0x2c7   :  { %v1662_v52 = vpop.permute.xlu1 %1661 }
 0x2c8   :  { %1699 = vst.msk [vmem:[#allocation5 + $0x58] sm:$0xff] %vm1687_vm3, %v1662_v52 }
 0x2c9   :  { %v1757_v53 = vpop.permute.xlu0 %1756 }
 0x2ca   :  { %2151 = vrot.lane.b32.xlu1 %v3890_v17, %s2686_s17  ;;  %1795 = vst.msk [vmem:[#allocation5 + $0x50] sm:$0xff] %vm1784_vm4, %v1757_v53  ;;  %v4023_v53 = vld [vmem:[%s4131_s5] ss:$0 sm:$0xff] }
 0x2cb   :  { %v1755_v54 = vpop.permute.xlu1 %1754 }
 0x2cc   :  { %1794 = vst.msk [vmem:[#allocation5 + $0x48] sm:$0xff] %vm1784_vm4, %v1755_v54 }
 0x2cd   :  { %v1850_v55 = vpop.permute.xlu0 %1849 }
 0x2ce   :  { %2155 = vrot.lane.b32.xlu1 %v2108_v18, %s2686_s17  ;;  %1890 = vst.msk [vmem:[#allocation5 + $0x40] sm:$0xff] %vm1881_vm5, %v1850_v55  ;;  %v4028_v18 = vld [vmem:[%s4132_s6] ss:$0 sm:$0xff] }
 0x2cf   :  { %v1759_v56 = vpop.permute.xlu1 %1758 }
 0x2d0   :  { %1796 = vst.msk [vmem:[#allocation5 + $0x58] sm:$0xff] %vm1784_vm4, %v1759_v56 }
 0x2d1   :  { %v1854_v57 = vpop.permute.xlu0 %1853 }
 0x2d2   :  { %1892 = vst.msk [vmem:[#allocation5 + $0x50] sm:$0xff] %vm1881_vm5, %v1854_v57 }
 0x2d3   :  { %v1852_v58 = vpop.permute.xlu1 %1851 }
 0x2d4   :  { %1891 = vst.msk [vmem:[#allocation5 + $0x48] sm:$0xff] %vm1881_vm5, %v1852_v58 }
 0x2d5   :  { %v1948_v59 = vpop.permute.xlu0 %1947 }
 0x2d6   :  { %1988 = vst.msk [vmem:[#allocation5 + $0x40] sm:$0xff] %vm1979_vm6, %v1948_v59 }
 0x2d7   :  { %v1856_v23 = vpop.permute.xlu1 %1855 }
 0x2d8   :  { %1893 = vst.msk [vmem:[#allocation5 + $0x58] sm:$0xff] %vm1881_vm5, %v1856_v23 }
 0x2d9   :  { %v1952_v60 = vpop.permute.xlu0 %1951 }
 0x2da   :  { %1990 = vst.msk [vmem:[#allocation5 + $0x50] sm:$0xff] %vm1979_vm6, %v1952_v60 }
 0x2db   :  { %v1950_v61 = vpop.permute.xlu1 %1949 }
 0x2dc   :  { %1989 = vst.msk [vmem:[#allocation5 + $0x48] sm:$0xff] %vm1979_vm6, %v1950_v61 }
 0x2dd   :  { %v2045_v11 = vpop.permute.xlu0 %2044 }
 0x2de   :  { %2085 = vst.msk [vmem:[#allocation5 + $0x40] sm:$0xff] %vm2076_vm7, %v2045_v11 }
 0x2e1   :  { %v2049_v62 = vpop.permute.xlu0 %2048 }
 0x2e2   :  { %2087 = vst.msk [vmem:[#allocation5 + $0x50] sm:$0xff] %vm2076_vm7, %v2049_v62 }
 0x2e5   :  { %v2142_v63 = vpop.permute.xlu0 %2141 }
 0x2e6   :  { %2182 = vst.msk [vmem:[#allocation5 + $0x40] sm:$0xff] %vm2173_vm8, %v2142_v63 }
 0x2e9   :  { %v1470_v1 = vpop.permute.xlu0 %1469 }
 0x2ea   :  { %1506 = vst.msk [vmem:[#allocation5 + $0x60] sm:$0xff] %vm1493_vm0, %v1470_v1 }
 0x2ed   :  { %v2146_v2 = vpop.permute.xlu0 %2145  ;;  %v2198_v39 = vld [vmem:[#allocation5 + $0x40] sm:$0xff] }
 0x2ee   :  { %2184 = vst.msk [vmem:[#allocation5 + $0x50] sm:$0xff] %vm2173_vm8, %v2146_v2 }
 0x2f0   :  { %v1954_v3 = vpop.permute.xlu1 %1953 }
 0x2f1   :  { %1991 = vst.msk [vmem:[#allocation5 + $0x58] sm:$0xff] %vm1979_vm6, %v1954_v3  ;;  %v1474_v37 = vpop.permute.xlu0 %1473 }
 0x2f2   :  { %1508 = vst.msk [vmem:[#allocation5 + $0x70] sm:$0xff] %vm1493_vm0, %v1474_v37 }
 0x2f4   :  { %v2047_v4 = vpop.permute.xlu1 %2046 }
 0x2f5   :  { %2086 = vst.msk [vmem:[#allocation5 + $0x48] sm:$0xff] %vm2076_vm7, %v2047_v4  ;;  %v1567_v5 = vpop.permute.xlu0 %1566  ;;  %v2200_v20 = vld [vmem:[#allocation5 + $0x50] sm:$0xff] }
 0x2f6   :  { %1603 = vst.msk [vmem:[#allocation5 + $0x60] sm:$0xff] %vm1590_vm1, %v1567_v5 }
 0x2f8   :  { %v2051_v6 = vpop.permute.xlu1 %2050 }
 0x2f9   :  { %2088 = vst.msk [vmem:[#allocation5 + $0x58] sm:$0xff] %vm2076_vm7, %v2051_v6  ;;  %v1571_v7 = vpop.permute.xlu0 %1570 }
 0x2fa   :  { %1605 = vst.msk [vmem:[#allocation5 + $0x70] sm:$0xff] %vm1590_vm1, %v1571_v7 }
 0x2fc   :  { %v2144_v8 = vpop.permute.xlu1 %2143 }
 0x2fd   :  { %2183 = vst.msk [vmem:[#allocation5 + $0x48] sm:$0xff] %vm2173_vm8, %v2144_v8  ;;  %v1664_v9 = vpop.permute.xlu0 %1663 }
 0x2fe   :  { %1700 = vst.msk [vmem:[#allocation5 + $0x60] sm:$0xff] %vm1687_vm3, %v1664_v9 }
 0x300   :  { %v1472_v40 = vpop.permute.xlu1 %1471 }
 0x301   :  { %1507 = vst.msk [vmem:[#allocation5 + $0x68] sm:$0xff] %vm1493_vm0, %v1472_v40  ;;  %v1668_v10 = vpop.permute.xlu0 %1667 }
 0x302   :  { %1702 = vst.msk [vmem:[#allocation5 + $0x70] sm:$0xff] %vm1687_vm3, %v1668_v10 }
 0x304   :  { %v2148_v42 = vpop.permute.xlu1 %2147  ;;  %v2199_v12 = vld [vmem:[#allocation5 + $0x48] sm:$0xff] }
 0x305   :  { %2185 = vst.msk [vmem:[#allocation5 + $0x58] sm:$0xff] %vm2173_vm8, %v2148_v42  ;;  %v2210_v13 = vpack.c.bf16 %v2199_v12, %v2198_v39  ;;  %v1761_v14 = vpop.permute.xlu0 %1760 }
 0x306   :  { %1797 = vst.msk [vmem:[#allocation5 + $0x60] sm:$0xff] %vm1784_vm4, %v1761_v14 }
 0x307   :  { %2644 = vmatprep.mubr.msk.bf16.mxu1 %vm2250_vm9, %v2210_v13 }
 0x308   :  { %v1476_v16 = vpop.permute.xlu1 %1475 }
 0x309   :  { %1509 = vst.msk [vmem:[#allocation5 + $0x78] sm:$0xff] %vm1493_vm0, %v1476_v16  ;;  %v1765_v17 = vpop.permute.xlu0 %1764 }
 0x30a   :  { %1799 = vst.msk [vmem:[#allocation5 + $0x70] sm:$0xff] %vm1784_vm4, %v1765_v17 }
 0x30c   :  { %v1569_v19 = vpop.permute.xlu1 %1568  ;;  %v2201_v21 = vld [vmem:[#allocation5 + $0x58] sm:$0xff] }
 0x30d   :  { %1604 = vst.msk [vmem:[#allocation5 + $0x68] sm:$0xff] %vm1590_vm1, %v1569_v19  ;;  %v2211_v22 = vpack.c.bf16 %v2201_v21, %v2200_v20  ;;  %v1858_v24 = vpop.permute.xlu0 %1857 }
 0x30e   :  { %1894 = vst.msk [vmem:[#allocation5 + $0x60] sm:$0xff] %vm1881_vm5, %v1858_v24 }
 0x30f   :  { %2645 = vmatmul.mubr.msk.bf16.gmra.mrb[8].mxu1 %vm2250_vm9, %v2211_v22 }
 0x310   :  { %v1573_v25 = vpop.permute.xlu1 %1572 }
 0x311   :  { %1606 = vst.msk [vmem:[#allocation5 + $0x78] sm:$0xff] %vm1590_vm1, %v1573_v25  ;;  %v1862_v26 = vpop.permute.xlu0 %1861 }
 0x312   :  { %1896 = vst.msk [vmem:[#allocation5 + $0x70] sm:$0xff] %vm1881_vm5, %v1862_v26 }
 0x314   :  { %v1666_v27 = vpop.permute.xlu1 %1665 }
 0x315   :  { %1701 = vst.msk [vmem:[#allocation5 + $0x68] sm:$0xff] %vm1687_vm3, %v1666_v27  ;;  %v1956_v0 = vpop.permute.xlu0 %1955 }
 0x316   :  { %1992 = vst.msk [vmem:[#allocation5 + $0x60] sm:$0xff] %vm1979_vm6, %v1956_v0 }
 0x318   :  { %v1670_v29 = vpop.permute.xlu1 %1669 }
 0x319   :  { %1703 = vst.msk [vmem:[#allocation5 + $0x78] sm:$0xff] %vm1687_vm3, %v1670_v29  ;;  %v1960_v15 = vpop.permute.xlu0 %1959 }
 0x31a   :  { %1994 = vst.msk [vmem:[#allocation5 + $0x70] sm:$0xff] %vm1979_vm6, %v1960_v15 }
 0x31c   :  { %v1763_v30 = vpop.permute.xlu1 %1762 }
 0x31d   :  { %1798 = vst.msk [vmem:[#allocation5 + $0x68] sm:$0xff] %vm1784_vm4, %v1763_v30  ;;  %v2053_v31 = vpop.permute.xlu0 %2052 }
 0x31e   :  { %2089 = vst.msk [vmem:[#allocation5 + $0x60] sm:$0xff] %vm2076_vm7, %v2053_v31 }
 0x320   :  { %v1767_v32 = vpop.permute.xlu1 %1766 }
 0x321   :  { %1800 = vst.msk [vmem:[#allocation5 + $0x78] sm:$0xff] %vm1784_vm4, %v1767_v32  ;;  %v2057_v33 = vpop.permute.xlu0 %2056 }
 0x322   :  { %2091 = vst.msk [vmem:[#allocation5 + $0x70] sm:$0xff] %vm2076_vm7, %v2057_v33 }
 0x324   :  { %v1860_v34 = vpop.permute.xlu1 %1859 }
 0x325   :  { %1895 = vst.msk [vmem:[#allocation5 + $0x68] sm:$0xff] %vm1881_vm5, %v1860_v34  ;;  %v2150_v35 = vpop.permute.xlu0 %2149 }
 0x326   :  { %2186 = vst.msk [vmem:[#allocation5 + $0x60] sm:$0xff] %vm2173_vm8, %v2150_v35 }
 0x328   :  { %v1864_v36 = vpop.permute.xlu1 %1863 }
 0x329   :  { %1897 = vst.msk [vmem:[#allocation5 + $0x78] sm:$0xff] %vm1881_vm5, %v1864_v36  ;;  %v2154_v38 = vpop.permute.xlu0 %2153 }
 0x32a   :  { %2188 = vst.msk [vmem:[#allocation5 + $0x70] sm:$0xff] %vm2173_vm8, %v2154_v38 }
 0x32c   :  { %v1958_v41 = vpop.permute.xlu1 %1957 }
 0x32d   :  { %1993 = vst.msk [vmem:[#allocation5 + $0x68] sm:$0xff] %vm1979_vm6, %v1958_v41  ;;  %v2202_v47 = vld [vmem:[#allocation5 + $0x60] sm:$0xff] }
 0x330   :  { %v1962_v43 = vpop.permute.xlu1 %1961 }
 0x331   :  { %1995 = vst.msk [vmem:[#allocation5 + $0x78] sm:$0xff] %vm1979_vm6, %v1962_v43  ;;  %v2204_v28 = vld [vmem:[#allocation5 + $0x70] sm:$0xff] }
 0x334   :  { %v2055_v44 = vpop.permute.xlu1 %2054 }
 0x335   :  { %2090 = vst.msk [vmem:[#allocation5 + $0x68] sm:$0xff] %vm2076_vm7, %v2055_v44 }
 0x338   :  { %v2059_v45 = vpop.permute.xlu1 %2058 }
 0x339   :  { %2092 = vst.msk [vmem:[#allocation5 + $0x78] sm:$0xff] %vm2076_vm7, %v2059_v45 }
 0x33c   :  { %v2152_v51 = vpop.permute.xlu1 %2151 }
 0x33d   :  { %2187 = vst.msk [vmem:[#allocation5 + $0x68] sm:$0xff] %vm2173_vm8, %v2152_v51 }
 0x340   :  { %v2156_v46 = vpop.permute.xlu1 %2155 }
 0x341   :  { %2189 = vst.msk [vmem:[#allocation5 + $0x78] sm:$0xff] %vm2173_vm8, %v2156_v46 }
 0x344   :  { %v2203_v48 = vld [vmem:[#allocation5 + $0x68] sm:$0xff] }
 0x345   :  { %v2212_v49 = vpack.c.bf16 %v2203_v48, %v2202_v47 }
 0x347   :  { %2648 = vmatprep.mubr.msk.bf16.mxu1 %vm2250_vm9, %v2212_v49 }
 0x348   :  { %v2205_v50 = vld [vmem:[#allocation5 + $0x78] sm:$0xff] }
 0x349   :  { %v2213_v52 = vpack.c.bf16 %v2205_v50, %v2204_v28 }
 0x34b   :  { %2649 = vmatmul.mubr.msk.bf16.gmra.mrb[12].mxu1 %vm2250_vm9, %v2213_v52 }
 0x371   :  { %v2638_v54 = vpop.f32.mrb[0].mxu1 }
 0x372   :  { %v2385_v55 = vmul.f32 %v2638_v54, %v4023_v53  ;;  %v2313_v56 = vpop.f32.mrb[1].mxu1 }
 0x373   :  { %v2383_v57 = vmul.f32 %v4023_v53, %v2313_v56  ;;  %v2639_v58 = vpop.f32.mrb[2].mxu1 }
 0x374   :  { %v2408_v59 = vadd.f32 %v4028_v18, %v2385_v55  ;;  %v2386_v23 = vmul.f32 %v2639_v58, %v4023_v53  ;;  %v2316_v60 = vpop.f32.mrb[3].mxu1 }
 0x375   :  { %v2406_v61 = vadd.f32 %v4028_v18, %v2383_v57  ;;  %v2384_v11 = vmul.f32 %v4023_v53, %v2316_v60 }
 0x376   :  { %v2424_v62 = vmax.f32 %v2408_v59, 0.0  ;;  %v2409_v63 = vadd.f32 %v4028_v18, %v2386_v23 }
 0x377   :  { %v2422_v1 = vmax.f32 %v2406_v61, 0.0  ;;  %v2407_v2 = vadd.f32 %v4028_v18, %v2384_v11 }
 0x378   :  { %2440 = vst.msk [vmem:[%s4133_s7 + $0x10] sm:$0xff] %vm79_vm13, %v2424_v62  ;;  %v2425_v3 = vmax.f32 %v2409_v63, 0.0 }
 0x379   :  { %2438 = vst.msk [vmem:[%s4133_s7] sm:$0xff] %vm79_vm13, %v2422_v1  ;;  %v2423_v37 = vmax.f32 %v2407_v2, 0.0 }
 0x37a   :  { %2441 = vst.msk [vmem:[%s4133_s7 + $0x18] sm:$0xff] %vm79_vm13, %v2425_v3 }
 0x37b   :  { %2439 = vst.msk [vmem:[%s4133_s7 + $0x8] sm:$0xff] %vm79_vm13, %v2423_v37 }
 0x391   :  { %v2642_v4 = vpop.f32.mrb[4].mxu1 }
 0x392   :  { %v2389_v5 = vmul.f32 %v2642_v4, %v4023_v53  ;;  %v2329_v6 = vpop.f32.mrb[5].mxu1 }
 0x393   :  { %v2387_v7 = vmul.f32 %v4023_v53, %v2329_v6  ;;  %v2643_v8 = vpop.f32.mrb[6].mxu1 }
 0x394   :  { %v2412_v9 = vadd.f32 %v4028_v18, %v2389_v5  ;;  %v2390_v40 = vmul.f32 %v2643_v8, %v4023_v53  ;;  %v2332_v10 = vpop.f32.mrb[7].mxu1 }
 0x395   :  { %v2410_v42 = vadd.f32 %v4028_v18, %v2387_v7  ;;  %v2388_v39 = vmul.f32 %v4023_v53, %v2332_v10 }
 0x396   :  { %v2428_v12 = vmax.f32 %v2412_v9, 0.0  ;;  %v2413_v13 = vadd.f32 %v4028_v18, %v2390_v40 }
 0x397   :  { %v2426_v14 = vmax.f32 %v2410_v42, 0.0  ;;  %v2411_v16 = vadd.f32 %v4028_v18, %v2388_v39 }
 0x398   :  { %2444 = vst.msk [vmem:[%s4133_s7 + $0x30] sm:$0xff] %vm79_vm13, %v2428_v12  ;;  %v2429_v17 = vmax.f32 %v2413_v13, 0.0 }
 0x399   :  { %2442 = vst.msk [vmem:[%s4133_s7 + $0x20] sm:$0xff] %vm79_vm13, %v2426_v14  ;;  %v2427_v19 = vmax.f32 %v2411_v16, 0.0 }
 0x39a   :  { %2445 = vst.msk [vmem:[%s4133_s7 + $0x38] sm:$0xff] %vm79_vm13, %v2429_v17 }
 0x39b   :  { %2443 = vst.msk [vmem:[%s4133_s7 + $0x28] sm:$0xff] %vm79_vm13, %v2427_v19 }
 0x3e2   :  { %v2646_v20 = vpop.f32.mrb[8].mxu1 }
 0x3e3   :  { %v2393_v21 = vmul.f32 %v2646_v20, %v4023_v53  ;;  %v2345_v22 = vpop.f32.mrb[9].mxu1 }
 0x3e4   :  { %v2391_v24 = vmul.f32 %v4023_v53, %v2345_v22  ;;  %v2647_v25 = vpop.f32.mrb[10].mxu1 }
 0x3e5   :  { %v2416_v26 = vadd.f32 %v4028_v18, %v2393_v21  ;;  %v2394_v27 = vmul.f32 %v2647_v25, %v4023_v53  ;;  %v2348_v0 = vpop.f32.mrb[11].mxu1 }
 0x3e6   :  { %v2414_v29 = vadd.f32 %v4028_v18, %v2391_v24  ;;  %v2392_v15 = vmul.f32 %v4023_v53, %v2348_v0 }
 0x3e7   :  { %v2432_v30 = vmax.f32 %v2416_v26, 0.0  ;;  %v2417_v31 = vadd.f32 %v4028_v18, %v2394_v27 }
 0x3e8   :  { %v2430_v32 = vmax.f32 %v2414_v29, 0.0  ;;  %v2415_v33 = vadd.f32 %v4028_v18, %v2392_v15 }
 0x3e9   :  { %2448 = vst.msk [vmem:[%s4133_s7 + $0x50] sm:$0xff] %vm79_vm13, %v2432_v30  ;;  %v2433_v34 = vmax.f32 %v2417_v31, 0.0 }
 0x3ea   :  { %2446 = vst.msk [vmem:[%s4133_s7 + $0x40] sm:$0xff] %vm79_vm13, %v2430_v32  ;;  %v2431_v35 = vmax.f32 %v2415_v33, 0.0 }
 0x3eb   :  { %2449 = vst.msk [vmem:[%s4133_s7 + $0x58] sm:$0xff] %vm79_vm13, %v2433_v34 }
 0x3ec   :  { %2447 = vst.msk [vmem:[%s4133_s7 + $0x48] sm:$0xff] %vm79_vm13, %v2431_v35 }
 0x41e   :  { %v2650_v36 = vpop.f32.mrb[12].mxu1 }
 0x41f   :  { %v2397_v38 = vmul.f32 %v2650_v36, %v4023_v53  ;;  %v2361_v41 = vpop.f32.mrb[13].mxu1 }
 0x420   :  { %v2395_v43 = vmul.f32 %v4023_v53, %v2361_v41  ;;  %v2651_v44 = vpop.f32.mrb[14].mxu1 }
 0x421   :  { %v2420_v45 = vadd.f32 %v4028_v18, %v2397_v38  ;;  %v2398_v51 = vmul.f32 %v2651_v44, %v4023_v53  ;;  %v2364_v46 = vpop.f32.mrb[15].mxu1 }
 0x422   :  { %v2418_v47 = vadd.f32 %v4028_v18, %v2395_v43  ;;  %v2396_v48 = vmul.f32 %v4023_v53, %v2364_v46 }
 0x423   :  { %v2436_v49 = vmax.f32 %v2420_v45, 0.0  ;;  %v2421_v28 = vadd.f32 %v4028_v18, %v2398_v51 }
 0x424   :  { %v2434_v50 = vmax.f32 %v2418_v47, 0.0  ;;  %v2419_v52 = vadd.f32 %v4028_v18, %v2396_v48 }
 0x425   :  { %2452 = vst.msk [vmem:[%s4133_s7 + $0x70] sm:$0xff] %vm79_vm13, %v2436_v49  ;;  %v2437_v54 = vmax.f32 %v2421_v28, 0.0 }
 0x426   :  { %2450 = vst.msk [vmem:[%s4133_s7 + $0x60] sm:$0xff] %vm79_vm13, %v2434_v50  ;;  %v2435_v55 = vmax.f32 %v2419_v52, 0.0 }
 0x427   :  { %2453 = vst.msk [vmem:[%s4133_s7 + $0x78] sm:$0xff] %vm79_vm13, %v2437_v54 }
 0x428   :  { %2451 = vst.msk [vmem:[%s4133_s7 + $0x68] sm:$0xff] %vm79_vm13, %v2435_v55 }

</bundles_post_ra>
